<compile_context>
chip_gen: v7x
topology: tpu7x:2x2x1
jax: 0.10.0
libtpu: 0.0.40
codegen_flags: <defaults>
</compile_context>

<pallas_src>
import jax
import jax.numpy as jnp
from jax import lax
from jax.experimental import pallas as pl
from jax.experimental.pallas import tpu as pltpu


# --------------------------------------------------------------------------
# In-kernel helper: 3x3 "same" conv (im2col, one MXU matmul) + bias + ReLU +
# fused 2x2/stride-2 max-pool, all on VMEM-resident data.
#   pad_ref : (H+2, W+2, Cin) f32 zero-padded input (scratch, already filled)
#   col_ref : (H, W, 9*Cin)   f32 im2col scratch
#   w_ref   : (9*Cin, Cout)   bf16 weights, HWIO flattened over (kh, kw, ci)
#   b_ref   : (1, Cout)       f32 bias
# Returns (H/2, W/2, Cout) f32.
# --------------------------------------------------------------------------
def _conv3x3_relu_pool(pad_ref, col_ref, w_ref, b_ref):
    H, W, nine_cin = col_ref.shape
    cin = pad_ref.shape[-1]
    cout = w_ref.shape[-1]

    # im2col: 9 shifted taps written side-by-side along the lane axis
    # (static offsets -> plain masked stores, no value concat / relayout).
    for kh in range(3):
        for kw in range(3):
            t = kh * 3 + kw
            col_ref[:, :, t * cin:(t + 1) * cin] = pad_ref[kh:kh + H, kw:kw + W, :]

    # One K = 9*Cin bf16 MXU matmul with f32 accumulation.
    patches = col_ref[...].reshape(H * W, nine_cin).astype(jnp.bfloat16)
    z = jnp.dot(patches, w_ref[...], preferred_element_type=jnp.float32)
    z = jnp.maximum(z + b_ref[...], 0.0)                      # bias + ReLU (f32 VPU)

    # Fused 2x2 max-pool: pure VPU work on VMEM values, no HBM round trip.
    h_out, w_out = H // 2, W // 2
    z = jnp.max(z.reshape(H * w_out, 2, cout), axis=1)        # pool along W
    z = jnp.max(z.reshape(h_out, 2, w_out, cout), axis=1)     # pool along H
    return z                                                  # (H/2, W/2, Cout) f32


# --------------------------------------------------------------------------
# Fused forward kernel: one grid step = one sample.
# --------------------------------------------------------------------------
def _fused_forward_kernel(x_ref, w1_ref, b1_ref, w2_ref, b2_ref,
                          wf1_ref, bf1_ref, wf2_ref, bf2_ref,
                          o_ref,
                          pad1_ref, col1_ref, pad2_ref, col2_ref, feat_ref):
    H, W = x_ref.shape[1], x_ref.shape[2]

    # ---- stage 1: conv1 + ReLU + pool (padding into VMEM scratch) ----
    pad1_ref[...] = jnp.zeros_like(pad1_ref)
    pad1_ref[1:1 + H, 1:1 + W, :] = x_ref[0]
    y1 = _conv3x3_relu_pool(pad1_ref, col1_ref, w1_ref, b1_ref)   # (H/2, W/2, 16) f32

    # ---- stage 2: conv2 + ReLU + pool ----
    H2, W2 = y1.shape[0], y1.shape[1]
    pad2_ref[...] = jnp.zeros_like(pad2_ref)
    pad2_ref[1:1 + H2, 1:1 + W2, :] = y1
    y2 = _conv3x3_relu_pool(pad2_ref, col2_ref, w2_ref, b2_ref)   # (H/4, W/4, 32) f32

    # ---- stage 3: flatten in NHWC order (wf1 rows are pre-permuted to match),
    #      done with static lane-offset stores into a VMEM scratch row ----
    hq, wq, c2 = y2.shape
    for s in range(hq * wq):
        hi, wi = divmod(s, wq)
        feat_ref[:, s * c2:(s + 1) * c2] = y2[hi, wi:wi + 1, :]

    # ---- stage 4: fc1 + ReLU + fc2 + AttentionLayer (softmax * logits) ----
    feats = feat_ref[...].astype(jnp.bfloat16)                    # (1, F)
    h1 = jnp.dot(feats, wf1_ref[...],
                 preferred_element_type=jnp.float32) + bf1_ref[...]
    h1 = jnp.maximum(h1, 0.0)
    logits = jnp.dot(h1.astype(jnp.bfloat16), wf2_ref[...],
                     preferred_element_type=jnp.float32) + bf2_ref[...]
    m = jnp.max(logits, axis=-1, keepdims=True)
    e = jnp.exp(logits - m)
    att = e * pl.reciprocal(jnp.sum(e, axis=-1, keepdims=True), approx=True)
    o_ref[0] = (logits * att).astype(o_ref.dtype)                 # (1, NC)


# --------------------------------------------------------------------------
# Parameter prep (one-time): flatten conv weights to (9*Cin, Cout), cast MXU
# operands to bf16, and permute fc1 rows from torch's (C,H,W) flatten order to
# the NHWC flatten order the kernel produces (identical numerics).
# --------------------------------------------------------------------------
def prepare_params(p, h, w):
    c2 = p['w2'].shape[-1]
    hq, wq = h // 4, w // 4
    hidden = p['wf1'].shape[-1]
    wf1_nhwc = jnp.transpose(p['wf1'].reshape(c2, hq, wq, hidden),
                             (1, 2, 0, 3)).reshape(hq * wq * c2, hidden)
    return {
        'w1':  p['w1'].reshape(9 * p['w1'].shape[2], p['w1'].shape[3]).astype(jnp.bfloat16),
        'b1':  p['b1'].reshape(1, -1).astype(jnp.float32),
        'w2':  p['w2'].reshape(9 * p['w2'].shape[2], p['w2'].shape[3]).astype(jnp.bfloat16),
        'b2':  p['b2'].reshape(1, -1).astype(jnp.float32),
        'wf1': wf1_nhwc.astype(jnp.bfloat16),
        'bf1': p['bf1'].reshape(1, -1).astype(jnp.float32),
        'wf2': p['wf2'].astype(jnp.bfloat16),
        'bf2': p['bf2'].reshape(1, -1).astype(jnp.float32),
    }


# --------------------------------------------------------------------------
# Full forward: InsectClassifier.forward (NCHW input, like PyTorch)
# --------------------------------------------------------------------------
def insect_classifier_forward(x_nchw, kp):
    N, Cin, H, W = x_nchw.shape
    assert H % 4 == 0 and W % 4 == 0
    x = jnp.transpose(x_nchw, (0, 2, 3, 1))                       # NCHW -> NHWC
    C1 = kp['w1'].shape[-1]
    C2 = kp['w2'].shape[-1]
    hidden = kp['wf1'].shape[-1]
    NC = kp['wf2'].shape[-1]
    H2, W2, H4, W4 = H // 2, W // 2, H // 4, W // 4
    F = H4 * W4 * C2
    assert kp['wf1'].shape[0] == F

    # At 224x224 (fc1: 32*56*56 -> 128) wf1 must be K-tiled/streamed with a VMEM
    # accumulator and the convs row-tiled; at the 16x16 test size everything is
    # VMEM resident, so we fully fuse instead.
    out = pl.pallas_call(
        _fused_forward_kernel,
        out_shape=jax.ShapeDtypeStruct((N, 1, NC), jnp.float32),
        grid_spec=pltpu.PrefetchScalarGridSpec(
            num_scalar_prefetch=0,
            grid=(N,),
            in_specs=[
                pl.BlockSpec((1, H, W, Cin), lambda n: (n, 0, 0, 0)),   # x (per sample)
                pl.BlockSpec((9 * Cin, C1),  lambda n: (0, 0)),         # w1 (resident)
                pl.BlockSpec((1, C1),        lambda n: (0, 0)),         # b1
                pl.BlockSpec((9 * C1, C2),   lambda n: (0, 0)),         # w2
                pl.BlockSpec((1, C2),        lambda n: (0, 0)),         # b2
                pl.BlockSpec((F, hidden),    lambda n: (0, 0)),         # wf1 (permuted)
                pl.BlockSpec((1, hidden),    lambda n: (0, 0)),         # bf1
                pl.BlockSpec((hidden, NC),   lambda n: (0, 0)),         # wf2
                pl.BlockSpec((1, NC),        lambda n: (0, 0)),         # bf2
            ],
            out_specs=pl.BlockSpec((1, 1, NC), lambda n: (n, 0, 0)),
            scratch_shapes=[
                pltpu.VMEM((H + 2, W + 2, Cin), jnp.float32),           # padded conv1 input
                pltpu.VMEM((H, W, 9 * Cin), jnp.float32),               # conv1 im2col
                pltpu.VMEM((H2 + 2, W2 + 2, C1), jnp.float32),          # padded conv2 input
                pltpu.VMEM((H2, W2, 9 * C1), jnp.float32),              # conv2 im2col
                pltpu.VMEM((1, F), jnp.float32),                        # flattened features
            ]),
        compiler_params=pltpu.CompilerParams(
            dimension_semantics=("parallel",)),                         # v7x: 1 sample / TC
    )(x, kp['w1'], kp['b1'], kp['w2'], kp['b2'],
      kp['wf1'], kp['bf1'], kp['wf2'], kp['bf2'])
    return out[:, 0, :]                                                 # (N, NC)


# --------------------------------------------------------------------------
# Deterministic synthetic parameters + pure-JAX f32 reference for verification
# --------------------------------------------------------------------------
def init_params(key, num_classes=10, h=16, w=16):
    ks = jax.random.split(key, 8)
    feat = 32 * (h // 4) * (w // 4)
    return {
        'w1':  jax.random.normal(ks[0], (3, 3, 3, 16), jnp.float32) * 0.10,
        'b1':  jax.random.normal(ks[1], (16,), jnp.float32) * 0.10,
        'w2':  jax.random.normal(ks[2], (3, 3, 16, 32), jnp.float32) * 0.05,
        'b2':  jax.random.normal(ks[3], (32,), jnp.float32) * 0.10,
        'wf1': jax.random.normal(ks[4], (feat, 128), jnp.float32) * 0.05,
        'bf1': jax.random.normal(ks[5], (128,), jnp.float32) * 0.10,
        'wf2': jax.random.normal(ks[6], (128, num_classes), jnp.float32) * 0.10,
        'bf2': jax.random.normal(ks[7], (num_classes,), jnp.float32) * 0.10,
    }


def reference_forward(x_nchw, p):
    x = jnp.transpose(x_nchw, (0, 2, 3, 1))

    def conv(x, w, b):
        y = lax.conv_general_dilated(x, w, (1, 1), ((1, 1), (1, 1)),
                                     dimension_numbers=('NHWC', 'HWIO', 'NHWC'))
        return jax.nn.relu(y + b)

    def pool(x):
        return lax.reduce_window(x, -jnp.inf, lax.max,
                                 (1, 2, 2, 1), (1, 2, 2, 1), 'VALID')

    y = pool(conv(x, p['w1'], p['b1']))
    y = pool(conv(y, p['w2'], p['b2']))
    N = x.shape[0]
    f = jnp.transpose(y, (0, 3, 1, 2)).reshape(N, -1)   # torch's (C,H,W) flatten
    h = jax.nn.relu(f @ p['wf1'] + p['bf1'])
    logits = h @ p['wf2'] + p['bf2']
    return logits * jax.nn.softmax(logits, axis=1)


if __name__ == "__main__":
    key = jax.random.PRNGKey(0)
    kx, kp = jax.random.split(key)
    H = W = 16
    x = jax.random.normal(kx, (2, 3, H, W), jnp.float32)          # NCHW like PyTorch
    params = init_params(kp, num_classes=10, h=H, w=W)
    kparams = prepare_params(params, h=H, w=W)                    # one-time prep

    fwd = jax.jit(insect_classifier_forward)
    out = jax.block_until_ready(fwd(x, kparams))

    ref = jax.block_until_ready(reference_forward(x, params))
    # bf16 MXU operands vs. f32 reference -> loose-ish tolerance.
    if not bool(jnp.allclose(out, ref, rtol=5e-2, atol=5e-2)):
        raise AssertionError(f"Pallas output mismatch: max abs err "
                             f"{float(jnp.max(jnp.abs(out - ref)))}")
    print("KERNEL_OK")
</pallas_src>

<mosaic_0001>
module attributes {stable_mosaic.version = 11 : i64} {
  func.func @_fused_forward_kernel(%arg0: i32, %arg1: memref<1x16x16x3xf32, #tpu.memory_space<vmem>>, %arg2: memref<27x16xbf16, #tpu.memory_space<vmem>>, %arg3: memref<1x16xf32, #tpu.memory_space<vmem>>, %arg4: memref<144x32xbf16, #tpu.memory_space<vmem>>, %arg5: memref<1x32xf32, #tpu.memory_space<vmem>>, %arg6: memref<512x128xbf16, #tpu.memory_space<vmem>>, %arg7: memref<1x128xf32, #tpu.memory_space<vmem>>, %arg8: memref<128x10xbf16, #tpu.memory_space<vmem>>, %arg9: memref<1x10xf32, #tpu.memory_space<vmem>>, %arg10: memref<1x1x10xf32, #tpu.memory_space<vmem>>, %arg11: memref<18x18x3xf32, #tpu.memory_space<vmem>>, %arg12: memref<16x16x27xf32, #tpu.memory_space<vmem>>, %arg13: memref<10x10x16xf32, #tpu.memory_space<vmem>>, %arg14: memref<8x8x144xf32, #tpu.memory_space<vmem>>, %arg15: memref<1x512xf32, #tpu.memory_space<vmem>>) attributes {dimension_semantics = [#tpu.dimension_semantics<parallel>], iteration_bounds = array<i64: 2>, scalar_prefetch = 0 : i64, scratch_operands = 5 : i64, tpu.core_type = #tpu.core_type<tc>, window_params = [{transform_indices = @transform_0, window_bounds = array<i64: 1, 16, 16, 3>}, {pipeline_mode = #tpu.pipeline_mode<synchronous>, transform_indices = @transform_1, window_bounds = array<i64: 27, 16>}, {pipeline_mode = #tpu.pipeline_mode<synchronous>, transform_indices = @transform_2, window_bounds = array<i64: 1, 16>}, {pipeline_mode = #tpu.pipeline_mode<synchronous>, transform_indices = @transform_3, window_bounds = array<i64: 144, 32>}, {pipeline_mode = #tpu.pipeline_mode<synchronous>, transform_indices = @transform_4, window_bounds = array<i64: 1, 32>}, {pipeline_mode = #tpu.pipeline_mode<synchronous>, transform_indices = @transform_5, window_bounds = array<i64: 512, 128>}, {pipeline_mode = #tpu.pipeline_mode<synchronous>, transform_indices = @transform_6, window_bounds = array<i64: 1, 128>}, {pipeline_mode = #tpu.pipeline_mode<synchronous>, transform_indices = @transform_7, window_bounds = array<i64: 128, 10>}, {pipeline_mode = #tpu.pipeline_mode<synchronous>, transform_indices = @transform_8, window_bounds = array<i64: 1, 10>}, {transform_indices = @transform_9, window_bounds = array<i64: 1, 1, 10>}]} {
    %cst = arith.constant 0.000000e+00 : f32
    %0 = vector.broadcast %cst : f32 to vector<18x18x3xf32>
    %c0 = arith.constant 0 : index
    %c0_0 = arith.constant 0 : index
    %c0_1 = arith.constant 0 : index
    %1 = vector.load %arg11[%c0, %c0_0, %c0_1] : memref<18x18x3xf32, #tpu.memory_space<vmem>>, vector<18x18x3xf32>
    tpu.vector_store %arg11[%c0, %c0_0, %c0_1], %0 {strides = array<i32>} : memref<18x18x3xf32, #tpu.memory_space<vmem>>, vector<18x18x3xf32>,
    %c0_2 = arith.constant 0 : index
    %c0_3 = arith.constant 0 : index
    %c0_4 = arith.constant 0 : index
    %c0_5 = arith.constant 0 : index
    %2 = vector.load %arg1[%c0_2, %c0_3, %c0_4, %c0_5] : memref<1x16x16x3xf32, #tpu.memory_space<vmem>>, vector<1x16x16x3xf32>
    %3 = vector.shape_cast %2 : vector<1x16x16x3xf32> to vector<16x16x3xf32>
    %c1 = arith.constant 1 : index
    %c1_6 = arith.constant 1 : index
    %c0_7 = arith.constant 0 : index
    %4 = vector.load %arg11[%c1, %c1_6, %c0_7] : memref<18x18x3xf32, #tpu.memory_space<vmem>>, vector<16x16x3xf32>
    tpu.vector_store %arg11[%c1, %c1_6, %c0_7], %3 {strides = array<i32>} : memref<18x18x3xf32, #tpu.memory_space<vmem>>, vector<16x16x3xf32>,
    %c0_8 = arith.constant 0 : index
    %c0_9 = arith.constant 0 : index
    %c0_10 = arith.constant 0 : index
    %5 = vector.load %arg11[%c0_8, %c0_9, %c0_10] : memref<18x18x3xf32, #tpu.memory_space<vmem>>, vector<16x16x3xf32>
    %c0_11 = arith.constant 0 : index
    %c0_12 = arith.constant 0 : index
    %c0_13 = arith.constant 0 : index
    %6 = vector.load %arg12[%c0_11, %c0_12, %c0_13] : memref<16x16x27xf32, #tpu.memory_space<vmem>>, vector<16x16x3xf32>
    tpu.vector_store %arg12[%c0_11, %c0_12, %c0_13], %5 {strides = array<i32>} : memref<16x16x27xf32, #tpu.memory_space<vmem>>, vector<16x16x3xf32>,
    %c0_14 = arith.constant 0 : index
    %c1_15 = arith.constant 1 : index
    %c0_16 = arith.constant 0 : index
    %7 = vector.load %arg11[%c0_14, %c1_15, %c0_16] : memref<18x18x3xf32, #tpu.memory_space<vmem>>, vector<16x16x3xf32>
    %c0_17 = arith.constant 0 : index
    %c0_18 = arith.constant 0 : index
    %c3 = arith.constant 3 : index
    %8 = vector.load %arg12[%c0_17, %c0_18, %c3] : memref<16x16x27xf32, #tpu.memory_space<vmem>>, vector<16x16x3xf32>
    tpu.vector_store %arg12[%c0_17, %c0_18, %c3], %7 {strides = array<i32>} : memref<16x16x27xf32, #tpu.memory_space<vmem>>, vector<16x16x3xf32>,
    %c0_19 = arith.constant 0 : index
    %c2 = arith.constant 2 : index
    %c0_20 = arith.constant 0 : index
    %9 = vector.load %arg11[%c0_19, %c2, %c0_20] : memref<18x18x3xf32, #tpu.memory_space<vmem>>, vector<16x16x3xf32>
    %c0_21 = arith.constant 0 : index
    %c0_22 = arith.constant 0 : index
    %c6 = arith.constant 6 : index
    %10 = vector.load %arg12[%c0_21, %c0_22, %c6] : memref<16x16x27xf32, #tpu.memory_space<vmem>>, vector<16x16x3xf32>
    tpu.vector_store %arg12[%c0_21, %c0_22, %c6], %9 {strides = array<i32>} : memref<16x16x27xf32, #tpu.memory_space<vmem>>, vector<16x16x3xf32>,
    %c1_23 = arith.constant 1 : index
    %c0_24 = arith.constant 0 : index
    %c0_25 = arith.constant 0 : index
    %11 = vector.load %arg11[%c1_23, %c0_24, %c0_25] : memref<18x18x3xf32, #tpu.memory_space<vmem>>, vector<16x16x3xf32>
    %c0_26 = arith.constant 0 : index
    %c0_27 = arith.constant 0 : index
    %c9 = arith.constant 9 : index
    %12 = vector.load %arg12[%c0_26, %c0_27, %c9] : memref<16x16x27xf32, #tpu.memory_space<vmem>>, vector<16x16x3xf32>
    tpu.vector_store %arg12[%c0_26, %c0_27, %c9], %11 {strides = array<i32>} : memref<16x16x27xf32, #tpu.memory_space<vmem>>, vector<16x16x3xf32>,
    %c1_28 = arith.constant 1 : index
    %c1_29 = arith.constant 1 : index
    %c0_30 = arith.constant 0 : index
    %13 = vector.load %arg11[%c1_28, %c1_29, %c0_30] : memref<18x18x3xf32, #tpu.memory_space<vmem>>, vector<16x16x3xf32>
    %c0_31 = arith.constant 0 : index
    %c0_32 = arith.constant 0 : index
    %c12 = arith.constant 12 : index
    %14 = vector.load %arg12[%c0_31, %c0_32, %c12] : memref<16x16x27xf32, #tpu.memory_space<vmem>>, vector<16x16x3xf32>
    tpu.vector_store %arg12[%c0_31, %c0_32, %c12], %13 {strides = array<i32>} : memref<16x16x27xf32, #tpu.memory_space<vmem>>, vector<16x16x3xf32>,
    %c1_33 = arith.constant 1 : index
    %c2_34 = arith.constant 2 : index
    %c0_35 = arith.constant 0 : index
    %15 = vector.load %arg11[%c1_33, %c2_34, %c0_35] : memref<18x18x3xf32, #tpu.memory_space<vmem>>, vector<16x16x3xf32>
    %c0_36 = arith.constant 0 : index
    %c0_37 = arith.constant 0 : index
    %c15 = arith.constant 15 : index
    %16 = vector.load %arg12[%c0_36, %c0_37, %c15] : memref<16x16x27xf32, #tpu.memory_space<vmem>>, vector<16x16x3xf32>
    tpu.vector_store %arg12[%c0_36, %c0_37, %c15], %15 {strides = array<i32>} : memref<16x16x27xf32, #tpu.memory_space<vmem>>, vector<16x16x3xf32>,
    %c2_38 = arith.constant 2 : index
    %c0_39 = arith.constant 0 : index
    %c0_40 = arith.constant 0 : index
    %17 = vector.load %arg11[%c2_38, %c0_39, %c0_40] : memref<18x18x3xf32, #tpu.memory_space<vmem>>, vector<16x16x3xf32>
    %c0_41 = arith.constant 0 : index
    %c0_42 = arith.constant 0 : index
    %c18 = arith.constant 18 : index
    %18 = vector.load %arg12[%c0_41, %c0_42, %c18] : memref<16x16x27xf32, #tpu.memory_space<vmem>>, vector<16x16x3xf32>
    tpu.vector_store %arg12[%c0_41, %c0_42, %c18], %17 {strides = array<i32>} : memref<16x16x27xf32, #tpu.memory_space<vmem>>, vector<16x16x3xf32>,
    %c2_43 = arith.constant 2 : index
    %c1_44 = arith.constant 1 : index
    %c0_45 = arith.constant 0 : index
    %19 = vector.load %arg11[%c2_43, %c1_44, %c0_45] : memref<18x18x3xf32, #tpu.memory_space<vmem>>, vector<16x16x3xf32>
    %c0_46 = arith.constant 0 : index
    %c0_47 = arith.constant 0 : index
    %c21 = arith.constant 21 : index
    %20 = vector.load %arg12[%c0_46, %c0_47, %c21] : memref<16x16x27xf32, #tpu.memory_space<vmem>>, vector<16x16x3xf32>
    tpu.vector_store %arg12[%c0_46, %c0_47, %c21], %19 {strides = array<i32>} : memref<16x16x27xf32, #tpu.memory_space<vmem>>, vector<16x16x3xf32>,
    %c2_48 = arith.constant 2 : index
    %c2_49 = arith.constant 2 : index
    %c0_50 = arith.constant 0 : index
    %21 = vector.load %arg11[%c2_48, %c2_49, %c0_50] : memref<18x18x3xf32, #tpu.memory_space<vmem>>, vector<16x16x3xf32>
    %c0_51 = arith.constant 0 : index
    %c0_52 = arith.constant 0 : index
    %c24 = arith.constant 24 : index
    %22 = vector.load %arg12[%c0_51, %c0_52, %c24] : memref<16x16x27xf32, #tpu.memory_space<vmem>>, vector<16x16x3xf32>
    tpu.vector_store %arg12[%c0_51, %c0_52, %c24], %21 {strides = array<i32>} : memref<16x16x27xf32, #tpu.memory_space<vmem>>, vector<16x16x3xf32>,
    %c0_53 = arith.constant 0 : index
    %c0_54 = arith.constant 0 : index
    %c0_55 = arith.constant 0 : index
    %23 = vector.load %arg12[%c0_53, %c0_54, %c0_55] : memref<16x16x27xf32, #tpu.memory_space<vmem>>, vector<16x16x27xf32>
    %24 = vector.shape_cast %23 : vector<16x16x27xf32> to vector<256x27xf32>
    %25 = arith.truncf %24 : vector<256x27xf32> to vector<256x27xbf16>
    %c0_56 = arith.constant 0 : index
    %c0_57 = arith.constant 0 : index
    %26 = vector.load %arg2[%c0_56, %c0_57] : memref<27x16xbf16, #tpu.memory_space<vmem>>, vector<27x16xbf16>
    %cst_58 = arith.constant dense<0.000000e+00> : vector<256x16xf32>
    %27 = tpu.matmul %25, %26, %cst_58 {dimension_numbers = #tpu.dot_dimension_numbers<[1], [0], [0], [1], [0, 0, 1, 1], [], []>} : vector<256x27xbf16>, vector<27x16xbf16>, vector<256x16xf32> -> vector<256x16xf32>
    %c0_59 = arith.constant 0 : index
    %c0_60 = arith.constant 0 : index
    %28 = vector.load %arg3[%c0_59, %c0_60] : memref<1x16xf32, #tpu.memory_space<vmem>>, vector<1x16xf32>
    %29 = vector.broadcast %28 : vector<1x16xf32> to vector<256x16xf32>
    %30 = arith.addf %27, %29 : vector<256x16xf32>
    %cst_61 = arith.constant 0.000000e+00 : f32
    %31 = vector.broadcast %cst_61 : f32 to vector<256x16xf32>
    %32 = arith.maximumf %30, %31 : vector<256x16xf32>
    %33 = vector.shape_cast %32 : vector<256x16xf32> to vector<128x2x16xf32>
    %cst_62 = arith.constant dense<0xFF800000> : vector<128x16xf32>
    %34 = vector.multi_reduction <maximumf>, %33, %cst_62 [1] : vector<128x2x16xf32> to vector<128x16xf32>
    %35 = vector.shape_cast %34 : vector<128x16xf32> to vector<8x2x8x16xf32>
    %cst_63 = arith.constant dense<0xFF800000> : vector<8x8x16xf32>
    %36 = vector.multi_reduction <maximumf>, %35, %cst_63 [1] : vector<8x2x8x16xf32> to vector<8x8x16xf32>
    %cst_64 = arith.constant 0.000000e+00 : f32
    %37 = vector.broadcast %cst_64 : f32 to vector<10x10x16xf32>
    %c0_65 = arith.constant 0 : index
    %c0_66 = arith.constant 0 : index
    %c0_67 = arith.constant 0 : index
    %38 = vector.load %arg13[%c0_65, %c0_66, %c0_67] : memref<10x10x16xf32, #tpu.memory_space<vmem>>, vector<10x10x16xf32>
    tpu.vector_store %arg13[%c0_65, %c0_66, %c0_67], %37 {strides = array<i32>} : memref<10x10x16xf32, #tpu.memory_space<vmem>>, vector<10x10x16xf32>,
    %c1_68 = arith.constant 1 : index
    %c1_69 = arith.constant 1 : index
    %c0_70 = arith.constant 0 : index
    %39 = vector.load %arg13[%c1_68, %c1_69, %c0_70] : memref<10x10x16xf32, #tpu.memory_space<vmem>>, vector<8x8x16xf32>
    tpu.vector_store %arg13[%c1_68, %c1_69, %c0_70], %36 {strides = array<i32>} : memref<10x10x16xf32, #tpu.memory_space<vmem>>, vector<8x8x16xf32>,
    %c0_71 = arith.constant 0 : index
    %c0_72 = arith.constant 0 : index
    %c0_73 = arith.constant 0 : index
    %40 = vector.load %arg13[%c0_71, %c0_72, %c0_73] : memref<10x10x16xf32, #tpu.memory_space<vmem>>, vector<8x8x16xf32>
    %c0_74 = arith.constant 0 : index
    %c0_75 = arith.constant 0 : index
    %c0_76 = arith.constant 0 : index
    %41 = vector.load %arg14[%c0_74, %c0_75, %c0_76] : memref<8x8x144xf32, #tpu.memory_space<vmem>>, vector<8x8x16xf32>
    tpu.vector_store %arg14[%c0_74, %c0_75, %c0_76], %40 {strides = array<i32>} : memref<8x8x144xf32, #tpu.memory_space<vmem>>, vector<8x8x16xf32>,
    %c0_77 = arith.constant 0 : index
    %c1_78 = arith.constant 1 : index
    %c0_79 = arith.constant 0 : index
    %42 = vector.load %arg13[%c0_77, %c1_78, %c0_79] : memref<10x10x16xf32, #tpu.memory_space<vmem>>, vector<8x8x16xf32>
    %c0_80 = arith.constant 0 : index
    %c0_81 = arith.constant 0 : index
    %c16 = arith.constant 16 : index
    %43 = vector.load %arg14[%c0_80, %c0_81, %c16] : memref<8x8x144xf32, #tpu.memory_space<vmem>>, vector<8x8x16xf32>
    tpu.vector_store %arg14[%c0_80, %c0_81, %c16], %42 {strides = array<i32>} : memref<8x8x144xf32, #tpu.memory_space<vmem>>, vector<8x8x16xf32>,
    %c0_82 = arith.constant 0 : index
    %c2_83 = arith.constant 2 : index
    %c0_84 = arith.constant 0 : index
    %44 = vector.load %arg13[%c0_82, %c2_83, %c0_84] : memref<10x10x16xf32, #tpu.memory_space<vmem>>, vector<8x8x16xf32>
    %c0_85 = arith.constant 0 : index
    %c0_86 = arith.constant 0 : index
    %c32 = arith.constant 32 : index
    %45 = vector.load %arg14[%c0_85, %c0_86, %c32] : memref<8x8x144xf32, #tpu.memory_space<vmem>>, vector<8x8x16xf32>
    tpu.vector_store %arg14[%c0_85, %c0_86, %c32], %44 {strides = array<i32>} : memref<8x8x144xf32, #tpu.memory_space<vmem>>, vector<8x8x16xf32>,
    %c1_87 = arith.constant 1 : index
    %c0_88 = arith.constant 0 : index
    %c0_89 = arith.constant 0 : index
    %46 = vector.load %arg13[%c1_87, %c0_88, %c0_89] : memref<10x10x16xf32, #tpu.memory_space<vmem>>, vector<8x8x16xf32>
    %c0_90 = arith.constant 0 : index
    %c0_91 = arith.constant 0 : index
    %c48 = arith.constant 48 : index
    %47 = vector.load %arg14[%c0_90, %c0_91, %c48] : memref<8x8x144xf32, #tpu.memory_space<vmem>>, vector<8x8x16xf32>
    tpu.vector_store %arg14[%c0_90, %c0_91, %c48], %46 {strides = array<i32>} : memref<8x8x144xf32, #tpu.memory_space<vmem>>, vector<8x8x16xf32>,
    %c1_92 = arith.constant 1 : index
    %c1_93 = arith.constant 1 : index
    %c0_94 = arith.constant 0 : index
    %48 = vector.load %arg13[%c1_92, %c1_93, %c0_94] : memref<10x10x16xf32, #tpu.memory_space<vmem>>, vector<8x8x16xf32>
    %c0_95 = arith.constant 0 : index
    %c0_96 = arith.constant 0 : index
    %c64 = arith.constant 64 : index
    %49 = vector.load %arg14[%c0_95, %c0_96, %c64] : memref<8x8x144xf32, #tpu.memory_space<vmem>>, vector<8x8x16xf32>
    tpu.vector_store %arg14[%c0_95, %c0_96, %c64], %48 {strides = array<i32>} : memref<8x8x144xf32, #tpu.memory_space<vmem>>, vector<8x8x16xf32>,
    %c1_97 = arith.constant 1 : index
    %c2_98 = arith.constant 2 : index
    %c0_99 = arith.constant 0 : index
    %50 = vector.load %arg13[%c1_97, %c2_98, %c0_99] : memref<10x10x16xf32, #tpu.memory_space<vmem>>, vector<8x8x16xf32>
    %c0_100 = arith.constant 0 : index
    %c0_101 = arith.constant 0 : index
    %c80 = arith.constant 80 : index
    %51 = vector.load %arg14[%c0_100, %c0_101, %c80] : memref<8x8x144xf32, #tpu.memory_space<vmem>>, vector<8x8x16xf32>
    tpu.vector_store %arg14[%c0_100, %c0_101, %c80], %50 {strides = array<i32>} : memref<8x8x144xf32, #tpu.memory_space<vmem>>, vector<8x8x16xf32>,
    %c2_102 = arith.constant 2 : index
    %c0_103 = arith.constant 0 : index
    %c0_104 = arith.constant 0 : index
    %52 = vector.load %arg13[%c2_102, %c0_103, %c0_104] : memref<10x10x16xf32, #tpu.memory_space<vmem>>, vector<8x8x16xf32>
    %c0_105 = arith.constant 0 : index
    %c0_106 = arith.constant 0 : index
    %c96 = arith.constant 96 : index
    %53 = vector.load %arg14[%c0_105, %c0_106, %c96] : memref<8x8x144xf32, #tpu.memory_space<vmem>>, vector<8x8x16xf32>
    tpu.vector_store %arg14[%c0_105, %c0_106, %c96], %52 {strides = array<i32>} : memref<8x8x144xf32, #tpu.memory_space<vmem>>, vector<8x8x16xf32>,
    %c2_107 = arith.constant 2 : index
    %c1_108 = arith.constant 1 : index
    %c0_109 = arith.constant 0 : index
    %54 = vector.load %arg13[%c2_107, %c1_108, %c0_109] : memref<10x10x16xf32, #tpu.memory_space<vmem>>, vector<8x8x16xf32>
    %c0_110 = arith.constant 0 : index
    %c0_111 = arith.constant 0 : index
    %c112 = arith.constant 112 : index
    %55 = vector.load %arg14[%c0_110, %c0_111, %c112] : memref<8x8x144xf32, #tpu.memory_space<vmem>>, vector<8x8x16xf32>
    tpu.vector_store %arg14[%c0_110, %c0_111, %c112], %54 {strides = array<i32>} : memref<8x8x144xf32, #tpu.memory_space<vmem>>, vector<8x8x16xf32>,
    %c2_112 = arith.constant 2 : index
    %c2_113 = arith.constant 2 : index
    %c0_114 = arith.constant 0 : index
    %56 = vector.load %arg13[%c2_112, %c2_113, %c0_114] : memref<10x10x16xf32, #tpu.memory_space<vmem>>, vector<8x8x16xf32>
    %c0_115 = arith.constant 0 : index
    %c0_116 = arith.constant 0 : index
    %c128 = arith.constant 128 : index
    %57 = vector.load %arg14[%c0_115, %c0_116, %c128] : memref<8x8x144xf32, #tpu.memory_space<vmem>>, vector<8x8x16xf32>
    tpu.vector_store %arg14[%c0_115, %c0_116, %c128], %56 {strides = array<i32>} : memref<8x8x144xf32, #tpu.memory_space<vmem>>, vector<8x8x16xf32>,
    %c0_117 = arith.constant 0 : index
    %c0_118 = arith.constant 0 : index
    %c0_119 = arith.constant 0 : index
    %58 = vector.load %arg14[%c0_117, %c0_118, %c0_119] : memref<8x8x144xf32, #tpu.memory_space<vmem>>, vector<8x8x144xf32>
    %59 = vector.shape_cast %58 : vector<8x8x144xf32> to vector<64x144xf32>
    %60 = arith.truncf %59 : vector<64x144xf32> to vector<64x144xbf16>
    %c0_120 = arith.constant 0 : index
    %c0_121 = arith.constant 0 : index
    %61 = vector.load %arg4[%c0_120, %c0_121] : memref<144x32xbf16, #tpu.memory_space<vmem>>, vector<144x32xbf16>
    %cst_122 = arith.constant dense<0.000000e+00> : vector<64x32xf32>
    %62 = tpu.matmul %60, %61, %cst_122 {dimension_numbers = #tpu.dot_dimension_numbers<[1], [0], [0], [1], [0, 0, 1, 1], [], []>} : vector<64x144xbf16>, vector<144x32xbf16>, vector<64x32xf32> -> vector<64x32xf32>
    %c0_123 = arith.constant 0 : index
    %c0_124 = arith.constant 0 : index
    %63 = vector.load %arg5[%c0_123, %c0_124] : memref<1x32xf32, #tpu.memory_space<vmem>>, vector<1x32xf32>
    %64 = vector.broadcast %63 : vector<1x32xf32> to vector<64x32xf32>
    %65 = arith.addf %62, %64 : vector<64x32xf32>
    %cst_125 = arith.constant 0.000000e+00 : f32
    %66 = vector.broadcast %cst_125 : f32 to vector<64x32xf32>
    %67 = arith.maximumf %65, %66 : vector<64x32xf32>
    %68 = vector.shape_cast %67 : vector<64x32xf32> to vector<32x2x32xf32>
    %cst_126 = arith.constant dense<0xFF800000> : vector<32x32xf32>
    %69 = vector.multi_reduction <maximumf>, %68, %cst_126 [1] : vector<32x2x32xf32> to vector<32x32xf32>
    %70 = vector.shape_cast %69 : vector<32x32xf32> to vector<4x2x4x32xf32>
    %cst_127 = arith.constant dense<0xFF800000> : vector<4x4x32xf32>
    %71 = vector.multi_reduction <maximumf>, %70, %cst_127 [1] : vector<4x2x4x32xf32> to vector<4x4x32xf32>
    %72 = vector.extract_strided_slice %71 {offsets = [0, 0, 0], sizes = [1, 1, 32], strides = [1, 1, 1]} : vector<4x4x32xf32> to vector<1x1x32xf32>
    %73 = vector.shape_cast %72 : vector<1x1x32xf32> to vector<1x32xf32>
    %c0_128 = arith.constant 0 : index
    %c0_129 = arith.constant 0 : index
    %74 = vector.load %arg15[%c0_128, %c0_129] : memref<1x512xf32, #tpu.memory_space<vmem>>, vector<1x32xf32>
    tpu.vector_store %arg15[%c0_128, %c0_129], %73 {strides = array<i32>} : memref<1x512xf32, #tpu.memory_space<vmem>>, vector<1x32xf32>,
    %75 = vector.extract_strided_slice %71 {offsets = [0, 1, 0], sizes = [1, 1, 32], strides = [1, 1, 1]} : vector<4x4x32xf32> to vector<1x1x32xf32>
    %76 = vector.shape_cast %75 : vector<1x1x32xf32> to vector<1x32xf32>
    %c0_130 = arith.constant 0 : index
    %c32_131 = arith.constant 32 : index
    %77 = vector.load %arg15[%c0_130, %c32_131] : memref<1x512xf32, #tpu.memory_space<vmem>>, vector<1x32xf32>
    tpu.vector_store %arg15[%c0_130, %c32_131], %76 {strides = array<i32>} : memref<1x512xf32, #tpu.memory_space<vmem>>, vector<1x32xf32>,
    %78 = vector.extract_strided_slice %71 {offsets = [0, 2, 0], sizes = [1, 1, 32], strides = [1, 1, 1]} : vector<4x4x32xf32> to vector<1x1x32xf32>
    %79 = vector.shape_cast %78 : vector<1x1x32xf32> to vector<1x32xf32>
    %c0_132 = arith.constant 0 : index
    %c64_133 = arith.constant 64 : index
    %80 = vector.load %arg15[%c0_132, %c64_133] : memref<1x512xf32, #tpu.memory_space<vmem>>, vector<1x32xf32>
    tpu.vector_store %arg15[%c0_132, %c64_133], %79 {strides = array<i32>} : memref<1x512xf32, #tpu.memory_space<vmem>>, vector<1x32xf32>,
    %81 = vector.extract_strided_slice %71 {offsets = [0, 3, 0], sizes = [1, 1, 32], strides = [1, 1, 1]} : vector<4x4x32xf32> to vector<1x1x32xf32>
    %82 = vector.shape_cast %81 : vector<1x1x32xf32> to vector<1x32xf32>
    %c0_134 = arith.constant 0 : index
    %c96_135 = arith.constant 96 : index
    %83 = vector.load %arg15[%c0_134, %c96_135] : memref<1x512xf32, #tpu.memory_space<vmem>>, vector<1x32xf32>
    tpu.vector_store %arg15[%c0_134, %c96_135], %82 {strides = array<i32>} : memref<1x512xf32, #tpu.memory_space<vmem>>, vector<1x32xf32>,
    %84 = vector.extract_strided_slice %71 {offsets = [1, 0, 0], sizes = [1, 1, 32], strides = [1, 1, 1]} : vector<4x4x32xf32> to vector<1x1x32xf32>
    %85 = vector.shape_cast %84 : vector<1x1x32xf32> to vector<1x32xf32>
    %c0_136 = arith.constant 0 : index
    %c128_137 = arith.constant 128 : index
    %86 = vector.load %arg15[%c0_136, %c128_137] : memref<1x512xf32, #tpu.memory_space<vmem>>, vector<1x32xf32>
    tpu.vector_store %arg15[%c0_136, %c128_137], %85 {strides = array<i32>} : memref<1x512xf32, #tpu.memory_space<vmem>>, vector<1x32xf32>,
    %87 = vector.extract_strided_slice %71 {offsets = [1, 1, 0], sizes = [1, 1, 32], strides = [1, 1, 1]} : vector<4x4x32xf32> to vector<1x1x32xf32>
    %88 = vector.shape_cast %87 : vector<1x1x32xf32> to vector<1x32xf32>
    %c0_138 = arith.constant 0 : index
    %c160 = arith.constant 160 : index
    %89 = vector.load %arg15[%c0_138, %c160] : memref<1x512xf32, #tpu.memory_space<vmem>>, vector<1x32xf32>
    tpu.vector_store %arg15[%c0_138, %c160], %88 {strides = array<i32>} : memref<1x512xf32, #tpu.memory_space<vmem>>, vector<1x32xf32>,
    %90 = vector.extract_strided_slice %71 {offsets = [1, 2, 0], sizes = [1, 1, 32], strides = [1, 1, 1]} : vector<4x4x32xf32> to vector<1x1x32xf32>
    %91 = vector.shape_cast %90 : vector<1x1x32xf32> to vector<1x32xf32>
    %c0_139 = arith.constant 0 : index
    %c192 = arith.constant 192 : index
    %92 = vector.load %arg15[%c0_139, %c192] : memref<1x512xf32, #tpu.memory_space<vmem>>, vector<1x32xf32>
    tpu.vector_store %arg15[%c0_139, %c192], %91 {strides = array<i32>} : memref<1x512xf32, #tpu.memory_space<vmem>>, vector<1x32xf32>,
    %93 = vector.extract_strided_slice %71 {offsets = [1, 3, 0], sizes = [1, 1, 32], strides = [1, 1, 1]} : vector<4x4x32xf32> to vector<1x1x32xf32>
    %94 = vector.shape_cast %93 : vector<1x1x32xf32> to vector<1x32xf32>
    %c0_140 = arith.constant 0 : index
    %c224 = arith.constant 224 : index
    %95 = vector.load %arg15[%c0_140, %c224] : memref<1x512xf32, #tpu.memory_space<vmem>>, vector<1x32xf32>
    tpu.vector_store %arg15[%c0_140, %c224], %94 {strides = array<i32>} : memref<1x512xf32, #tpu.memory_space<vmem>>, vector<1x32xf32>,
    %96 = vector.extract_strided_slice %71 {offsets = [2, 0, 0], sizes = [1, 1, 32], strides = [1, 1, 1]} : vector<4x4x32xf32> to vector<1x1x32xf32>
    %97 = vector.shape_cast %96 : vector<1x1x32xf32> to vector<1x32xf32>
    %c0_141 = arith.constant 0 : index
    %c256 = arith.constant 256 : index
    %98 = vector.load %arg15[%c0_141, %c256] : memref<1x512xf32, #tpu.memory_space<vmem>>, vector<1x32xf32>
    tpu.vector_store %arg15[%c0_141, %c256], %97 {strides = array<i32>} : memref<1x512xf32, #tpu.memory_space<vmem>>, vector<1x32xf32>,
    %99 = vector.extract_strided_slice %71 {offsets = [2, 1, 0], sizes = [1, 1, 32], strides = [1, 1, 1]} : vector<4x4x32xf32> to vector<1x1x32xf32>
    %100 = vector.shape_cast %99 : vector<1x1x32xf32> to vector<1x32xf32>
    %c0_142 = arith.constant 0 : index
    %c288 = arith.constant 288 : index
    %101 = vector.load %arg15[%c0_142, %c288] : memref<1x512xf32, #tpu.memory_space<vmem>>, vector<1x32xf32>
    tpu.vector_store %arg15[%c0_142, %c288], %100 {strides = array<i32>} : memref<1x512xf32, #tpu.memory_space<vmem>>, vector<1x32xf32>,
    %102 = vector.extract_strided_slice %71 {offsets = [2, 2, 0], sizes = [1, 1, 32], strides = [1, 1, 1]} : vector<4x4x32xf32> to vector<1x1x32xf32>
    %103 = vector.shape_cast %102 : vector<1x1x32xf32> to vector<1x32xf32>
    %c0_143 = arith.constant 0 : index
    %c320 = arith.constant 320 : index
    %104 = vector.load %arg15[%c0_143, %c320] : memref<1x512xf32, #tpu.memory_space<vmem>>, vector<1x32xf32>
    tpu.vector_store %arg15[%c0_143, %c320], %103 {strides = array<i32>} : memref<1x512xf32, #tpu.memory_space<vmem>>, vector<1x32xf32>,
    %105 = vector.extract_strided_slice %71 {offsets = [2, 3, 0], sizes = [1, 1, 32], strides = [1, 1, 1]} : vector<4x4x32xf32> to vector<1x1x32xf32>
    %106 = vector.shape_cast %105 : vector<1x1x32xf32> to vector<1x32xf32>
    %c0_144 = arith.constant 0 : index
    %c352 = arith.constant 352 : index
    %107 = vector.load %arg15[%c0_144, %c352] : memref<1x512xf32, #tpu.memory_space<vmem>>, vector<1x32xf32>
    tpu.vector_store %arg15[%c0_144, %c352], %106 {strides = array<i32>} : memref<1x512xf32, #tpu.memory_space<vmem>>, vector<1x32xf32>,
    %108 = vector.extract_strided_slice %71 {offsets = [3, 0, 0], sizes = [1, 1, 32], strides = [1, 1, 1]} : vector<4x4x32xf32> to vector<1x1x32xf32>
    %109 = vector.shape_cast %108 : vector<1x1x32xf32> to vector<1x32xf32>
    %c0_145 = arith.constant 0 : index
    %c384 = arith.constant 384 : index
    %110 = vector.load %arg15[%c0_145, %c384] : memref<1x512xf32, #tpu.memory_space<vmem>>, vector<1x32xf32>
    tpu.vector_store %arg15[%c0_145, %c384], %109 {strides = array<i32>} : memref<1x512xf32, #tpu.memory_space<vmem>>, vector<1x32xf32>,
    %111 = vector.extract_strided_slice %71 {offsets = [3, 1, 0], sizes = [1, 1, 32], strides = [1, 1, 1]} : vector<4x4x32xf32> to vector<1x1x32xf32>
    %112 = vector.shape_cast %111 : vector<1x1x32xf32> to vector<1x32xf32>
    %c0_146 = arith.constant 0 : index
    %c416 = arith.constant 416 : index
    %113 = vector.load %arg15[%c0_146, %c416] : memref<1x512xf32, #tpu.memory_space<vmem>>, vector<1x32xf32>
    tpu.vector_store %arg15[%c0_146, %c416], %112 {strides = array<i32>} : memref<1x512xf32, #tpu.memory_space<vmem>>, vector<1x32xf32>,
    %114 = vector.extract_strided_slice %71 {offsets = [3, 2, 0], sizes = [1, 1, 32], strides = [1, 1, 1]} : vector<4x4x32xf32> to vector<1x1x32xf32>
    %115 = vector.shape_cast %114 : vector<1x1x32xf32> to vector<1x32xf32>
    %c0_147 = arith.constant 0 : index
    %c448 = arith.constant 448 : index
    %116 = vector.load %arg15[%c0_147, %c448] : memref<1x512xf32, #tpu.memory_space<vmem>>, vector<1x32xf32>
    tpu.vector_store %arg15[%c0_147, %c448], %115 {strides = array<i32>} : memref<1x512xf32, #tpu.memory_space<vmem>>, vector<1x32xf32>,
    %117 = vector.extract_strided_slice %71 {offsets = [3, 3, 0], sizes = [1, 1, 32], strides = [1, 1, 1]} : vector<4x4x32xf32> to vector<1x1x32xf32>
    %118 = vector.shape_cast %117 : vector<1x1x32xf32> to vector<1x32xf32>
    %c0_148 = arith.constant 0 : index
    %c480 = arith.constant 480 : index
    %119 = vector.load %arg15[%c0_148, %c480] : memref<1x512xf32, #tpu.memory_space<vmem>>, vector<1x32xf32>
    tpu.vector_store %arg15[%c0_148, %c480], %118 {strides = array<i32>} : memref<1x512xf32, #tpu.memory_space<vmem>>, vector<1x32xf32>,
    %c0_149 = arith.constant 0 : index
    %c0_150 = arith.constant 0 : index
    %120 = vector.load %arg15[%c0_149, %c0_150] : memref<1x512xf32, #tpu.memory_space<vmem>>, vector<1x512xf32>
    %121 = arith.truncf %120 : vector<1x512xf32> to vector<1x512xbf16>
    %c0_151 = arith.constant 0 : index
    %c0_152 = arith.constant 0 : index
    %122 = vector.load %arg6[%c0_151, %c0_152] : memref<512x128xbf16, #tpu.memory_space<vmem>>, vector<512x128xbf16>
    %cst_153 = arith.constant dense<0.000000e+00> : vector<1x128xf32>
    %123 = tpu.matmul %121, %122, %cst_153 {dimension_numbers = #tpu.dot_dimension_numbers<[1], [0], [0], [1], [0, 0, 1, 1], [], []>} : vector<1x512xbf16>, vector<512x128xbf16>, vector<1x128xf32> -> vector<1x128xf32>
    %c0_154 = arith.constant 0 : index
    %c0_155 = arith.constant 0 : index
    %124 = vector.load %arg7[%c0_154, %c0_155] : memref<1x128xf32, #tpu.memory_space<vmem>>, vector<1x128xf32>
    %125 = arith.addf %123, %124 : vector<1x128xf32>
    %cst_156 = arith.constant 0.000000e+00 : f32
    %126 = vector.broadcast %cst_156 : f32 to vector<1x128xf32>
    %127 = arith.maximumf %125, %126 : vector<1x128xf32>
    %128 = arith.truncf %127 : vector<1x128xf32> to vector<1x128xbf16>
    %c0_157 = arith.constant 0 : index
    %c0_158 = arith.constant 0 : index
    %129 = vector.load %arg8[%c0_157, %c0_158] : memref<128x10xbf16, #tpu.memory_space<vmem>>, vector<128x10xbf16>
    %cst_159 = arith.constant dense<0.000000e+00> : vector<1x10xf32>
    %130 = tpu.matmul %128, %129, %cst_159 {dimension_numbers = #tpu.dot_dimension_numbers<[1], [0], [0], [1], [0, 0, 1, 1], [], []>} : vector<1x128xbf16>, vector<128x10xbf16>, vector<1x10xf32> -> vector<1x10xf32>
    %c0_160 = arith.constant 0 : index
    %c0_161 = arith.constant 0 : index
    %131 = vector.load %arg9[%c0_160, %c0_161] : memref<1x10xf32, #tpu.memory_space<vmem>>, vector<1x10xf32>
    %132 = arith.addf %130, %131 : vector<1x10xf32>
    %cst_162 = arith.constant dense<0xFF800000> : vector<1xf32>
    %133 = vector.multi_reduction <maximumf>, %132, %cst_162 [1] : vector<1x10xf32> to vector<1xf32>
    %134 = vector.shape_cast %133 : vector<1xf32> to vector<1x1xf32>
    %135 = vector.broadcast %134 : vector<1x1xf32> to vector<1x10xf32>
    %136 = arith.subf %132, %135 : vector<1x10xf32>
    %137 = math.exp %136 : vector<1x10xf32>
    %cst_163 = arith.constant dense<0.000000e+00> : vector<1xf32>
    %138 = vector.multi_reduction <add>, %137, %cst_163 [1] : vector<1x10xf32> to vector<1xf32>
    %139 = vector.shape_cast %138 : vector<1xf32> to vector<1x1xf32>
    %140 = tpu.reciprocal %139 {approx = true} : vector<1x1xf32> -> vector<1x1xf32>
    %141 = vector.broadcast %140 : vector<1x1xf32> to vector<1x10xf32>
    %142 = arith.mulf %137, %141 : vector<1x10xf32>
    %143 = arith.mulf %132, %142 : vector<1x10xf32>
    %c0_164 = arith.constant 0 : index
    %c0_165 = arith.constant 0 : index
    %c0_166 = arith.constant 0 : index
    %144 = vector.load %arg10[%c0_164, %c0_165, %c0_166] : memref<1x1x10xf32, #tpu.memory_space<vmem>>, vector<1x1x10xf32>
    %145 = vector.shape_cast %144 : vector<1x1x10xf32> to vector<1x10xf32>
    %146 = vector.shape_cast %143 : vector<1x10xf32> to vector<1x1x10xf32>
    tpu.vector_store %arg10[%c0_164, %c0_165, %c0_166], %146 {strides = array<i32>} : memref<1x1x10xf32, #tpu.memory_space<vmem>>, vector<1x1x10xf32>,
    return
  }
  func.func @transform_0(%arg0: i32) -> (i32, i32, i32, i32) {
    %c0_i32 = arith.constant 0 : i32
    %c0_i32_0 = arith.constant 0 : i32
    %c0_i32_1 = arith.constant 0 : i32
    %c0_i32_2 = arith.constant 0 : i32
    return %arg0, %c0_i32, %c0_i32_0, %c0_i32_1 : i32, i32, i32, i32
  }
  func.func @transform_1(%arg0: i32) -> (i32, i32) {
    %c0_i32 = arith.constant 0 : i32
    %c0_i32_0 = arith.constant 0 : i32
    %c0_i32_1 = arith.constant 0 : i32
    return %c0_i32, %c0_i32_0 : i32, i32
  }
  func.func @transform_2(%arg0: i32) -> (i32, i32) {
    %c0_i32 = arith.constant 0 : i32
    %c0_i32_0 = arith.constant 0 : i32
    %c0_i32_1 = arith.constant 0 : i32
    return %c0_i32, %c0_i32_0 : i32, i32
  }
  func.func @transform_3(%arg0: i32) -> (i32, i32) {
    %c0_i32 = arith.constant 0 : i32
    %c0_i32_0 = arith.constant 0 : i32
    %c0_i32_1 = arith.constant 0 : i32
    return %c0_i32, %c0_i32_0 : i32, i32
  }
  func.func @transform_4(%arg0: i32) -> (i32, i32) {
    %c0_i32 = arith.constant 0 : i32
    %c0_i32_0 = arith.constant 0 : i32
    %c0_i32_1 = arith.constant 0 : i32
    return %c0_i32, %c0_i32_0 : i32, i32
  }
  func.func @transform_5(%arg0: i32) -> (i32, i32) {
    %c0_i32 = arith.constant 0 : i32
    %c0_i32_0 = arith.constant 0 : i32
    %c0_i32_1 = arith.constant 0 : i32
    return %c0_i32, %c0_i32_0 : i32, i32
  }
  func.func @transform_6(%arg0: i32) -> (i32, i32) {
    %c0_i32 = arith.constant 0 : i32
    %c0_i32_0 = arith.constant 0 : i32
    %c0_i32_1 = arith.constant 0 : i32
    return %c0_i32, %c0_i32_0 : i32, i32
  }
  func.func @transform_7(%arg0: i32) -> (i32, i32) {
    %c0_i32 = arith.constant 0 : i32
    %c0_i32_0 = arith.constant 0 : i32
    %c0_i32_1 = arith.constant 0 : i32
    return %c0_i32, %c0_i32_0 : i32, i32
  }
  func.func @transform_8(%arg0: i32) -> (i32, i32) {
    %c0_i32 = arith.constant 0 : i32
    %c0_i32_0 = arith.constant 0 : i32
    %c0_i32_1 = arith.constant 0 : i32
    return %c0_i32, %c0_i32_0 : i32, i32
  }
  func.func @transform_9(%arg0: i32) -> (i32, i32, i32) {
    %c0_i32 = arith.constant 0 : i32
    %c0_i32_0 = arith.constant 0 : i32
    %c0_i32_1 = arith.constant 0 : i32
    return %arg0, %c0_i32, %c0_i32_0 : i32, i32, i32
  }
}

</mosaic_0001>

<bundles_post_ra>
// kernel: insect_classifier_forward.1
= control target key start
LH: loop header
LB: loop body
LE: loop exit
PB: predicated region body
PF: predicated region fallthrough
CT: control target
= control target key end

     0   :  { %14 = vsyncpa [#allocation8], 0  ;;  %s8963_s0 = inlined_call_operand.vmem [shape: f32[2,16,16,3], index: 0, kind: input, shape index: {}]   ;;  %s8964_s1 = inlined_call_operand.vmem [shape: bf16[27,16], index: 1, kind: input, shape index: {}]   ;;  %s8965_s2 = inlined_call_operand.vmem [shape: f32[1,16], index: 2, kind: input, shape index: {}]   ;;  %s8966_s3 = inlined_call_operand.vmem [shape: bf16[144,32], index: 3, kind: input, shape index: {}]   ;;  %s8967_s4 = inlined_call_operand.vmem [shape: f32[1,32], index: 4, kind: input, shape index: {}]   ;;  %s8968_s5 = inlined_call_operand.vmem [shape: bf16[512,128], index: 5, kind: input, shape index: {}]   ;;  %s8969_s6 = inlined_call_operand.vmem [shape: f32[1,128], index: 6, kind: input, shape index: {}]   ;;  %s8970_s7 = inlined_call_operand.vmem [shape: bf16[128,10], index: 7, kind: input, shape index: {}]   ;;  %s8971_s8 = inlined_call_operand.vmem [shape: f32[1,10], index: 8, kind: input, shape index: {}]   ;;  %s8972_s9 = inlined_call_operand.hbm [shape: f32[2,1,10], index: 9, kind: output, shape index: {}]  }
   0x1   :  { %16 = vsyncpa [#allocation8 + $0x1], 0  ;;  %s6613_s30 = smov 0   ;;  %s6615_s10 = smov 0  }
   0x2   :  { %s6617_s11 = smov 0   ;;  %s6619_s12 = smov 0  }
   0x3 LB: > { %s6634_s13 = sadd.s32 4294967295, %s6539_s12   ;;  %s6149_s14 = sadd.s32 4294967294, %s6539_s12   ;;  %s6539_s12 = sphi %s6619_s12, %s9020_s12   ;;  %s6535_s11 = sphi %s6617_s11, %s9019_s11   ;;  %s6531_s10 = sphi %s6615_s10, %s9018_s10   ;;  %s6527_s30 = sphi %s6613_s30, %s9017_s30  }
   0x4   : > { %s6638_s15 = sadd.s32 1, %s6539_s12   ;;  %s223_s16 = sadd.s32 1, %s6535_s11 }
   0x5   : > { %s220_s17 = ssub.s32 %s6539_s12, %s6638_s15  ;;  %p233_p0 = scmp.ne.s32.totalorder %s6535_s11, %s6531_s10 }
   0x6   : > { %p221_p1 = scmp.eq.s32.totalorder %s220_s17, 0  ;;  %p234_p2 = scmp.eq.s32.totalorder %s6634_s13, 1 }
   0x7   : > { %p239_p3 = scmp.ne.s32.totalorder %s6531_s10, %s6527_s30  ;;  %p240_p4 = scmp.eq.s32.totalorder %s6149_s14, 1 }
   0x8   : > { %s6649_s18 = scalar_select %p221_p1, %s6535_s11, %s223_s16  }
   0x9   : > { %p6651_p5 = por %p234_p2, %p233_p0  ;;  %p6655_p6 = por %p240_p4, %p239_p3 }
   0xa   : > { %p6152_p7 = scmp.ge.s32.totalorder %s6539_s12, 1  ;;  %p290_p8 = scmp.lt.s32.totalorder %s6539_s12, 3 }
   0xc   : > { %p291_p9 = pnand %p6152_p7, %p290_p8 }
   0xd   : > { %vm331_vm0 = vcmask (!%p291_p9), 23552   ;;  %vm334_vm1 = vcmask (!%p291_p9), 17408   ;;  %v6541_v0 = vmov (!%p291_p9), 0.0   ;;  %p325_p10 = scmp.lt.s32.totalorder (!%p291_p9), %s6634_s13, 1  ;;  %s6542_s26 = smov (!%p291_p9), 3   ;;  %v6419_v45 = vld [vmem:[%s8964_s1] sm:$0xff] (!%p291_p9)  }
   0xe   : > { %294 = sbr.rel (%p291_p9) target bundleno = 2245 (0x8c5), region = 56  ;;  %332 = vst.msk [vmem:[#allocation2] sm:$0xff] (!%p291_p9), %vm331_vm0, %v6541_v0  ;;  %333 = vst.msk [vmem:[#allocation2 + $0x8] sm:$0xff] (!%p291_p9), %vm331_vm0, %v6541_v0  ;;  %s6543_s27 = smov (!%p291_p9), 6   ;;  %vm2180_vm2 = vcmask (!%p291_p9), 1044480   ;;  %6303 = vmatprep.subr.bf16.mxu0 (!%p291_p9), %v6419_v45  ;;  %vm2181_vm3 = vcmask (!%p291_p9), 1045504  }
   0xf   : > { %336 = vst.msk [vmem:[#allocation2 + $0x18] sm:$0xff] (!%p291_p9), %vm331_vm0, %v6541_v0  ;;  %337 = vst.msk [vmem:[#allocation2 + $0x20] sm:$0xff] (!%p291_p9), %vm331_vm0, %v6541_v0  ;;  %s6544_s28 = smov (!%p291_p9), 9   ;;  %s6545_s29 = smov (!%p291_p9), 12   ;;  %v6420_v46 = vld [vmem:[%s8964_s1 + $0x8] sm:$0x3f] (!%p291_p9)   ;;  %6304 = vmatpush3.bf16.msra.mxu0 (!%p291_p9), %v6419_v45 }
  0x10   : > { %339 = vst.msk [vmem:[#allocation2 + $0x30] sm:$0xff] (!%p291_p9), %vm331_vm0, %v6541_v0  ;;  %340 = vst.msk [vmem:[#allocation2 + $0x38] sm:$0xff] (!%p291_p9), %vm331_vm0, %v6541_v0  ;;  %s6546_s14 = smov (!%p291_p9), 15   ;;  %s8973_s16 = smov (!%p291_p9), 18   ;;  %v6550_v47 = vmov (!%p291_p9), 65535   ;;  %vm8978_vm4 = vcmask (!%p291_p9), 48152  }
  0x11   : > { %342 = vst.msk [vmem:[#allocation2 + $0x48] sm:$0xff] (!%p291_p9), %vm331_vm0, %v6541_v0  ;;  %343 = vst.msk [vmem:[#allocation2 + $0x50] sm:$0xff] (!%p291_p9), %vm331_vm0, %v6541_v0  ;;  %s6548_s17 = smov (!%p291_p9), 21   ;;  %s6549_s23 = smov (!%p291_p9), 24   ;;  %v2182_v48 = vsel (!%p291_p9), %vm2180_vm2, 4294967295, %v6550_v47  ;;  %vm869_vm5 = vcmask (!%p291_p9), 72752  }
  0x12   : > { %345 = vst.msk [vmem:[#allocation2 + $0x60] sm:$0xff] (!%p291_p9), %vm331_vm0, %v6541_v0  ;;  %346 = vst.msk [vmem:[#allocation2 + $0x68] sm:$0xff] (!%p291_p9), %vm331_vm0, %v6541_v0  ;;  %v2183_v49 = vsel (!%p291_p9), %vm2181_vm3, %v2182_v48, 0  ;;  %vm1062_vm6 = vcmask (!%p291_p9), 97352   ;;  %vm1255_vm7 = vcmask (!%p291_p9), 121952   ;;  %vm1448_vm8 = vcmask (!%p291_p9), 146552  }
  0x13   : > { %348 = vst.msk [vmem:[#allocation2 + $0x78] sm:$0xff] (!%p291_p9), %vm331_vm0, %v6541_v0  ;;  %349 = vst.msk [vmem:[#allocation2 + $0x80] sm:$0xff] (!%p291_p9), %vm331_vm0, %v6541_v0  ;;  %v2185_v50 = vand.u32 (!%p291_p9), %v6420_v46, %v2183_v49  ;;  %vm1642_vm9 = vcmask (!%p291_p9), 171152   ;;  %vm1835_vm10 = vcmask (!%p291_p9), 195752   ;;  %vm2028_vm11 = vcmask (!%p291_p9), 220352   ;;  %s6558_s24 = smov (!%p291_p9), 112  }
  0x14   : > { %351 = vst.msk [vmem:[#allocation2 + $0x90] sm:$0xff] (!%p291_p9), %vm331_vm0, %v6541_v0  ;;  %352 = vst.msk [vmem:[#allocation2 + $0x98] sm:$0xff] (!%p291_p9), %vm331_vm0, %v6541_v0  ;;  %vm8976_vm12 = vcmask (!%p291_p9), 220160   ;;  %vm3084_vm13 = vcmask (!%p291_p9), 123904   ;;  %vm3981_vm14 = vcmask (!%p291_p9), 130048   ;;  %vm4258_vm15 = vcmask (!%p291_p9), 1041409  }
  0x15   : > { %354 = vst.msk [vmem:[#allocation2 + $0xa8] sm:$0xff] %vm331_vm0, %v6541_v0  ;;  %355 = vst.msk [vmem:[#allocation2 + $0xb0] sm:$0xff] %vm331_vm0, %v6541_v0  ;;  %s326_s21 = scalar_select %p325_p10, %s6634_s13, 1  ;;  %v516_v4 = vld [vmem:[#allocation2 + $0x1] sm:$0xff]  ;;  %6305 = vmatprep.subr.bf16.mxu0 %v2185_v50  ;;  %vm8975_vm2 = vcmask 1043459   ;;  %vm4264_vm3 = vcmask 1044484  }
  0x16   : > { %357 = vst.msk [vmem:[#allocation2 + $0xc0] sm:$0xff] %vm331_vm0, %v6541_v0  ;;  %358 = vst.msk [vmem:[#allocation2 + $0xc8] sm:$0xff] %vm331_vm0, %v6541_v0  ;;  %580 = vrot.lane.b32.xlu0 %v516_v4, %s6542_s26  ;;  %v452_v14 = vld [vmem:[#allocation2] sm:$0xff]  ;;  %v453_v16 = vld [vmem:[#allocation2 + $0x8] sm:$0xff]  ;;  %6306 = vmatpush3.bf16.msra.mxu0 %v2185_v50 }
  0x17   : > { %360 = vst.msk [vmem:[#allocation2 + $0xd8] sm:$0xff] %vm331_vm0, %v6541_v0  ;;  %361 = vst.msk [vmem:[#allocation2 + $0xe0] sm:$0xff] %vm331_vm0, %v6541_v0  ;;  %s6231_s22 = sshll.u32 %s326_s21, 8  ;;  %v709_v15 = vld [vmem:[#allocation2 + $0x2] sm:$0xff]  ;;  %s9016_s21 = smov 96  }
  0x18   : > { %363 = vst.msk [vmem:[#allocation2 + $0xf0] sm:$0xff] %vm331_vm0, %v6541_v0  ;;  %364 = vst.msk [vmem:[#allocation2 + $0xf8] sm:$0xff] %vm331_vm0, %v6541_v0  ;;  %s6774_s25 = scalar_lea.vmem %s8963_s0, %s6231_s22 }
  0x19   : > { %366 = vst.msk [vmem:[#allocation2 + $0x108] sm:$0xff] %vm331_vm0, %v6541_v0  ;;  %367 = vst.msk [vmem:[#allocation2 + $0x110] sm:$0xff] %vm331_vm0, %v6541_v0  ;;  %v387_v1 = vld [vmem:[%s6774_s25] sm:$0xff]  ;;  %v388_v2 = vld [vmem:[%s6774_s25 + $0x8] sm:$0xff] }
  0x1a   : > { %369 = vst.msk [vmem:[#allocation2 + $0x120] sm:$0xff] %vm331_vm0, %v6541_v0  ;;  %370 = vst.msk [vmem:[#allocation2 + $0x128] sm:$0xff] %vm331_vm0, %v6541_v0  ;;  %v389_v3 = vld [vmem:[%s6774_s25 + $0x10] sm:$0xff]  ;;  %v390_v7 = vld [vmem:[%s6774_s25 + $0x18] sm:$0xff] }
  0x1b   : > { %372 = vst.msk [vmem:[#allocation2 + $0x138] sm:$0xff] %vm331_vm0, %v6541_v0  ;;  %373 = vst.msk [vmem:[#allocation2 + $0x140] sm:$0xff] %vm331_vm0, %v6541_v0  ;;  %v391_v8 = vld [vmem:[%s6774_s25 + $0x20] sm:$0xff]  ;;  %v392_v9 = vld [vmem:[%s6774_s25 + $0x28] sm:$0xff] }
  0x1c   : > { %375 = vst.msk [vmem:[#allocation2 + $0x150] sm:$0xff] %vm331_vm0, %v6541_v0  ;;  %376 = vst.msk [vmem:[#allocation2 + $0x158] sm:$0xff] %vm331_vm0, %v6541_v0  ;;  %v393_v10 = vld [vmem:[%s6774_s25 + $0x30] sm:$0xff]  ;;  %v394_v11 = vld [vmem:[%s6774_s25 + $0x38] sm:$0xff] }
  0x1d   : > { %378 = vst.msk [vmem:[#allocation2 + $0x168] sm:$0xff] %vm331_vm0, %v6541_v0  ;;  %379 = vst.msk [vmem:[#allocation2 + $0x170] sm:$0xff] %vm331_vm0, %v6541_v0  ;;  %v395_v12 = vld [vmem:[%s6774_s25 + $0x40] sm:$0xff]  ;;  %v396_v13 = vld [vmem:[%s6774_s25 + $0x48] sm:$0xff] }
  0x1e   : > { %381 = vst.msk [vmem:[#allocation2 + $0x180] sm:$0xff] %vm331_vm0, %v6541_v0  ;;  %382 = vst.msk [vmem:[#allocation2 + $0x188] sm:$0xff] %vm331_vm0, %v6541_v0  ;;  %v397_v31 = vld [vmem:[%s6774_s25 + $0x50] sm:$0xff]  ;;  %v398_v32 = vld [vmem:[%s6774_s25 + $0x58] sm:$0xff] }
  0x1f   : > { %384 = vst.msk [vmem:[#allocation2 + $0x198] sm:$0xff] %vm331_vm0, %v6541_v0  ;;  %385 = vst.msk [vmem:[#allocation2 + $0x1a0] sm:$0xff] %vm331_vm0, %v6541_v0  ;;  %v399_v39 = vld [vmem:[%s6774_s25 + $0x60] sm:$0xff]  ;;  %v400_v40 = vld [vmem:[%s6774_s25 + $0x68] sm:$0xff] }
  0x20   : > { %335 = vst.msk [vmem:[#allocation2 + $0x10] sm:$0x3] %vm334_vm1, %v6541_v0  ;;  %338 = vst.msk [vmem:[#allocation2 + $0x28] sm:$0x3] %vm334_vm1, %v6541_v0  ;;  %v401_v53 = vld [vmem:[%s6774_s25 + $0x70] sm:$0xff]  ;;  %v402_v54 = vld [vmem:[%s6774_s25 + $0x78] sm:$0xff] }
  0x21   : > { %341 = vst.msk [vmem:[#allocation2 + $0x40] sm:$0x3] %vm334_vm1, %v6541_v0  ;;  %344 = vst.msk [vmem:[#allocation2 + $0x58] sm:$0x3] %vm334_vm1, %v6541_v0  ;;  %v403_v61 = vld [vmem:[%s6774_s25 + $0x80] sm:$0xff]  ;;  %v404_v62 = vld [vmem:[%s6774_s25 + $0x88] sm:$0xff] }
  0x22   : > { %347 = vst.msk [vmem:[#allocation2 + $0x70] sm:$0x3] %vm334_vm1, %v6541_v0  ;;  %350 = vst.msk [vmem:[#allocation2 + $0x88] sm:$0x3] %vm334_vm1, %v6541_v0 }
  0x23   : > { %353 = vst.msk [vmem:[#allocation2 + $0xa0] sm:$0x3] %vm334_vm1, %v6541_v0  ;;  %356 = vst.msk [vmem:[#allocation2 + $0xb8] sm:$0x3] %vm334_vm1, %v6541_v0 }
  0x24   : > { %359 = vst.msk [vmem:[#allocation2 + $0xd0] sm:$0x3] %vm334_vm1, %v6541_v0  ;;  %362 = vst.msk [vmem:[#allocation2 + $0xe8] sm:$0x3] %vm334_vm1, %v6541_v0 }
  0x25   : > { %365 = vst.msk [vmem:[#allocation2 + $0x100] sm:$0x3] %vm334_vm1, %v6541_v0  ;;  %368 = vst.msk [vmem:[#allocation2 + $0x118] sm:$0x3] %vm334_vm1, %v6541_v0 }
  0x26   : > { %371 = vst.msk [vmem:[#allocation2 + $0x130] sm:$0x3] %vm334_vm1, %v6541_v0  ;;  %374 = vst.msk [vmem:[#allocation2 + $0x148] sm:$0x3] %vm334_vm1, %v6541_v0 }
  0x27   : > { %377 = vst.msk [vmem:[#allocation2 + $0x160] sm:$0x3] %vm334_vm1, %v6541_v0  ;;  %380 = vst.msk [vmem:[#allocation2 + $0x178] sm:$0x3] %vm334_vm1, %v6541_v0  ;;  %v710_v5 = vld [vmem:[#allocation2 + $0xa] sm:$0xff] }
  0x28   : > { %383 = vst.msk [vmem:[#allocation2 + $0x190] sm:$0x3] %vm334_vm1, %v6541_v0  ;;  %386 = vst.msk [vmem:[#allocation2 + $0x1a8] sm:$0x3] %vm334_vm1, %v6541_v0  ;;  %775 = vrot.lane.b32.xlu1 %v710_v5, %s6543_s27  ;;  %v517_v6 = vld [vmem:[#allocation2 + $0x9] sm:$0xff]  ;;  %vm8977_vm1 = vcmask 1042434  }
  0x29   : > { %420 = vst.msk [vmem:[#allocation2 + $0x19] sm:$0xff] %vm331_vm0, %v387_v1  ;;  %421 = vst.msk [vmem:[#allocation2 + $0x21] sm:$0xff] %vm331_vm0, %v388_v2  ;;  %582 = vrot.lane.b32.xlu0 %v517_v6, %s6542_s26 }
  0x2a   : > { %422 = vst.msk [vmem:[#allocation2 + $0x31] sm:$0xff] %vm331_vm0, %v389_v3  ;;  %423 = vst.msk [vmem:[#allocation2 + $0x39] sm:$0xff] %vm331_vm0, %v390_v7 }
  0x2b   : > { %424 = vst.msk [vmem:[#allocation2 + $0x49] sm:$0xff] %vm331_vm0, %v391_v8  ;;  %425 = vst.msk [vmem:[#allocation2 + $0x51] sm:$0xff] %vm331_vm0, %v392_v9 }
  0x2c   : > { %426 = vst.msk [vmem:[#allocation2 + $0x61] sm:$0xff] %vm331_vm0, %v393_v10  ;;  %427 = vst.msk [vmem:[#allocation2 + $0x69] sm:$0xff] %vm331_vm0, %v394_v11 }
  0x2d   : > { %428 = vst.msk [vmem:[#allocation2 + $0x79] sm:$0xff] %vm331_vm0, %v395_v12  ;;  %429 = vst.msk [vmem:[#allocation2 + $0x81] sm:$0xff] %vm331_vm0, %v396_v13  ;;  %773 = vrot.lane.b32.xlu0 %v709_v15, %s6543_s27 }
  0x2e   : > { %484 = vst.msk [vmem:[#allocation3] sm:$0xff] %vm331_vm0, %v452_v14  ;;  %485 = vst.msk [vmem:[#allocation3 + $0x8] sm:$0xff] %vm331_vm0, %v453_v16 }
  0x2f   : > { %430 = vst.msk [vmem:[#allocation2 + $0x91] sm:$0xff] %vm331_vm0, %v397_v31  ;;  %431 = vst.msk [vmem:[#allocation2 + $0x99] sm:$0xff] %vm331_vm0, %v398_v32 }
  0x30   : > { %v518_v17 = vld [vmem:[#allocation2 + $0x19] sm:$0xff]  ;;  %v519_v20 = vld [vmem:[#allocation2 + $0x21] sm:$0xff]  ;;  %432 = vst.msk [vmem:[#allocation2 + $0xa9] sm:$0xff] %vm331_vm0, %v399_v39  ;;  %433 = vst.msk [vmem:[#allocation2 + $0xb1] sm:$0xff] %vm331_vm0, %v400_v40 }
  0x31   : > { %584 = vrot.lane.b32.xlu1 %v518_v17, %s6542_s26  ;;  %v902_v18 = vld [vmem:[#allocation2 + $0x18] sm:$0xff]  ;;  %v903_v19 = vld [vmem:[#allocation2 + $0x20] sm:$0xff]  ;;  %v904_v21 = vld [vmem:[#allocation2 + $0x30] sm:$0xff]  ;;  %434 = vst.msk [vmem:[#allocation2 + $0xc1] sm:$0xff] %vm331_vm0, %v401_v53 }
  0x32   : > { %v905_v22 = vld [vmem:[#allocation2 + $0x38] sm:$0xff]  ;;  %486 = vst.msk [vmem:[#allocation3 + $0x10] sm:$0xff] %vm331_vm0, %v902_v18  ;;  %487 = vst.msk [vmem:[#allocation3 + $0x18] sm:$0xff] %vm331_vm0, %v903_v19  ;;  %v6807_v24 = vld [vmem:[#allocation2 + $0x48] sm:$0xff] }
  0x33   : > { %v711_v23 = vld [vmem:[#allocation2 + $0x1a] sm:$0xff]  ;;  %488 = vst.msk [vmem:[#allocation3 + $0x20] sm:$0xff] %vm331_vm0, %v904_v21  ;;  %489 = vst.msk [vmem:[#allocation3 + $0x28] sm:$0xff] %vm331_vm0, %v905_v22  ;;  %v6809_v25 = vld [vmem:[#allocation2 + $0x50] sm:$0xff] }
  0x34   : > { %490 = vst.msk [vmem:[#allocation3 + $0x30] sm:$0xff] %vm331_vm0, %v6807_v24  ;;  %491 = vst.msk [vmem:[#allocation3 + $0x38] sm:$0xff] %vm331_vm0, %v6809_v25  ;;  %777 = vrot.lane.b32.xlu0 %v711_v23, %s6543_s27  ;;  %v712_v26 = vld [vmem:[#allocation2 + $0x22] sm:$0xff]  ;;  %v6825_v29 = vld [vmem:[#allocation2 + $0x78] sm:$0xff] }
  0x35   : > { %586 = vrot.lane.b32.xlu1 %v519_v20, %s6542_s26  ;;  %v6817_v27 = vld [vmem:[#allocation2 + $0x60] sm:$0xff]  ;;  %v6819_v28 = vld [vmem:[#allocation2 + $0x68] sm:$0xff]  ;;  %494 = vst.msk [vmem:[#allocation3 + $0x50] sm:$0xff] %vm331_vm0, %v6825_v29  ;;  %v1097_v33 = vld [vmem:[#allocation2 + $0x31] sm:$0xff] }
  0x36   : > { %492 = vst.msk [vmem:[#allocation3 + $0x40] sm:$0xff] %vm331_vm0, %v6817_v27  ;;  %493 = vst.msk [vmem:[#allocation3 + $0x48] sm:$0xff] %vm331_vm0, %v6819_v28  ;;  %v6827_v30 = vld [vmem:[#allocation2 + $0x80] sm:$0xff]  ;;  %v6843_v34 = vld [vmem:[#allocation2 + $0x90] sm:$0xff] }
  0x37   : > { %495 = vst.msk [vmem:[#allocation3 + $0x58] sm:$0xff] %vm331_vm0, %v6827_v30  ;;  %v6845_v35 = vld [vmem:[#allocation2 + $0x98] sm:$0xff]  ;;  %496 = vst.msk [vmem:[#allocation3 + $0x60] sm:$0xff] %vm331_vm0, %v6843_v34  ;;  %v6866_v41 = vld [vmem:[#allocation2 + $0xa8] sm:$0xff] }
  0x38   : > { %966 = vrot.lane.b32.xlu0 %v902_v18, %s6544_s28  ;;  %497 = vst.msk [vmem:[#allocation3 + $0x68] sm:$0xff] %vm331_vm0, %v6845_v35  ;;  %v1098_v36 = vld [vmem:[#allocation2 + $0x39] sm:$0xff]  ;;  %498 = vst.msk [vmem:[#allocation3 + $0x70] sm:$0xff] %vm331_vm0, %v6866_v41  ;;  %v6870_v42 = vld [vmem:[#allocation2 + $0xb0] sm:$0xff] }
  0x39   : > { %779 = vrot.lane.b32.xlu1 %v712_v26, %s6543_s27  ;;  %v1290_v37 = vld [vmem:[#allocation2 + $0x32] sm:$0xff]  ;;  %v1291_v38 = vld [vmem:[#allocation2 + $0x3a] sm:$0xff]  ;;  %499 = vst.msk [vmem:[#allocation3 + $0x78] sm:$0xff] %vm331_vm0, %v6870_v42  ;;  %v1677_v43 = vld [vmem:[#allocation2 + $0x49] sm:$0xff] }
  0x3a   : > { %v1678_v44 = vld [vmem:[#allocation2 + $0x51] sm:$0xff]  ;;  %435 = vst.msk [vmem:[#allocation2 + $0xc9] sm:$0xff] %vm331_vm0, %v402_v54  ;;  %v6908_v55 = vld [vmem:[#allocation2 + $0xc0] sm:$0xff]  ;;  %v1102_v58 = vld [vmem:[#allocation2 + $0x69] sm:$0xff] }
  0x3b   : > { %v1870_v51 = vld [vmem:[#allocation2 + $0x4a] sm:$0xff]  ;;  %v1871_v52 = vld [vmem:[#allocation2 + $0x52] sm:$0xff]  ;;  %500 = vst.msk [vmem:[#allocation3 + $0x80] sm:$0xff] %vm331_vm0, %v6908_v55  ;;  %v1101_v57 = vld [vmem:[#allocation2 + $0x61] sm:$0xff] }
  0x3c   : > { %970 = vrot.lane.b32.xlu0 %v904_v21, %s6544_s28  ;;  %v1294_v59 = vld [vmem:[#allocation2 + $0x62] sm:$0xff]  ;;  %v1295_v60 = vld [vmem:[#allocation2 + $0x6a] sm:$0xff]  ;;  %436 = vst.msk [vmem:[#allocation2 + $0xd9] sm:$0xff] %vm331_vm0, %v403_v61  ;;  %437 = vst.msk [vmem:[#allocation2 + $0xe1] sm:$0xff] %vm331_vm0, %v404_v62 }
  0x3d   : > { %968 = vrot.lane.b32.xlu1 %v903_v19, %s6544_s28  ;;  %v6947_v2 = vld [vmem:[#allocation2 + $0x79] sm:$0xff]  ;;  %v6953_v5 = vld [vmem:[#allocation2 + $0x81] sm:$0xff]  ;;  %v405_v19 = vld [vmem:[%s6774_s25 + $0x90] sm:$0xff]  ;;  %4175 = vst.msk [vmem:[#allocation4 + $0x8] sm:$0x3] %vm3084_vm13, %v6541_v0 }
  0x3e   : > { %v6964_v10 = vld [vmem:[#allocation2 + $0x7a] sm:$0xff]  ;;  %v6971_v12 = vld [vmem:[#allocation2 + $0x82] sm:$0xff]  ;;  %438 = vst.msk [vmem:[#allocation2 + $0xf1] sm:$0xff] %vm331_vm0, %v405_v19 }
  0x3f   : > { %v407_v39 = vld [vmem:[%s6774_s25 + $0xa0] sm:$0xff]  ;;  %v7059_v49 = vld [vmem:[#allocation2 + $0xa9] sm:$0xff]  ;;  %4177 = vst.msk [vmem:[#allocation4 + $0x18] sm:$0x3] %vm3084_vm13, %v6541_v0  ;;  %4179 = vst.msk [vmem:[#allocation4 + $0x28] sm:$0x3] %vm3084_vm13, %v6541_v0 }
  0x40   : > { %1159 = vrot.lane.b32.xlu0 %v518_v17, %s6545_s29  ;;  %440 = vst.msk [vmem:[#allocation2 + $0x109] sm:$0xff] %vm331_vm0, %v407_v39 }
  0x41   : > { %972 = vrot.lane.b32.xlu1 %v905_v22, %s6544_s28  ;;  %v6912_v56 = vld [vmem:[#allocation2 + $0xc8] sm:$0xff]  ;;  %4181 = vst.msk [vmem:[#allocation4 + $0x38] sm:$0x3] %vm3084_vm13, %v6541_v0  ;;  %4183 = vst.msk [vmem:[#allocation4 + $0x48] sm:$0x3] %vm3084_vm13, %v6541_v0 }
  0x42   : > { %501 = vst.msk [vmem:[#allocation3 + $0x88] sm:$0xff] %vm331_vm0, %v6912_v56 }
  0x43   : > { %v6936_v63 = vld [vmem:[#allocation2 + $0xd8] sm:$0xff]  ;;  %v6940_v1 = vld [vmem:[#allocation2 + $0xe0] sm:$0xff]  ;;  %4185 = vst.msk [vmem:[#allocation4 + $0x58] sm:$0x3] %vm3084_vm13, %v6541_v0  ;;  %4187 = vst.msk [vmem:[#allocation4 + $0x68] sm:$0x3] %vm3084_vm13, %v6541_v0 }
  0x44   : > { %1163 = vrot.lane.b32.xlu0 %v1097_v33, %s6545_s29  ;;  %502 = vst.msk [vmem:[#allocation3 + $0x90] sm:$0xff] %vm331_vm0, %v6936_v63  ;;  %503 = vst.msk [vmem:[#allocation3 + $0x98] sm:$0xff] %vm331_vm0, %v6940_v1 }
  0x45   : > { %1161 = vrot.lane.b32.xlu1 %v519_v20, %s6545_s29  ;;  %4189 = vst.msk [vmem:[#allocation4 + $0x78] sm:$0x3] %vm3084_vm13, %v6541_v0  ;;  %4191 = vst.msk [vmem:[#allocation4 + $0x88] sm:$0x3] %vm3084_vm13, %v6541_v0 }
  0x46   : > { %4193 = vst.msk [vmem:[#allocation4 + $0x98] sm:$0x3] %vm3084_vm13, %v6541_v0 }
  0x47   : > { %4174 = vst.msk [vmem:[#allocation4] sm:$0xff] %vm3981_vm14, %v6541_v0  ;;  %4176 = vst.msk [vmem:[#allocation4 + $0x10] sm:$0xff] %vm3981_vm14, %v6541_v0 }
  0x48   : > { %1352 = vrot.lane.b32.xlu0 %v711_v23, %s6546_s14  ;;  %4178 = vst.msk [vmem:[#allocation4 + $0x20] sm:$0xff] %vm3981_vm14, %v6541_v0  ;;  %4180 = vst.msk [vmem:[#allocation4 + $0x30] sm:$0xff] %vm3981_vm14, %v6541_v0 }
  0x49   : > { %1165 = vrot.lane.b32.xlu1 %v1098_v36, %s6545_s29  ;;  %4182 = vst.msk [vmem:[#allocation4 + $0x40] sm:$0xff] %vm3981_vm14, %v6541_v0  ;;  %4184 = vst.msk [vmem:[#allocation4 + $0x50] sm:$0xff] %vm3981_vm14, %v6541_v0 }
  0x4a   : > { %4186 = vst.msk [vmem:[#allocation4 + $0x60] sm:$0xff] %vm3981_vm14, %v6541_v0  ;;  %4188 = vst.msk [vmem:[#allocation4 + $0x70] sm:$0xff] %vm3981_vm14, %v6541_v0 }
  0x4b   : > { %4190 = vst.msk [vmem:[#allocation4 + $0x80] sm:$0xff] %vm3981_vm14, %v6541_v0  ;;  %4192 = vst.msk [vmem:[#allocation4 + $0x90] sm:$0xff] %vm3981_vm14, %v6541_v0 }
  0x4c   : > { %1356 = vrot.lane.b32.xlu0 %v1290_v37, %s6546_s14 }
  0x4d   : > { %1354 = vrot.lane.b32.xlu1 %v712_v26, %s6546_s14 }
  0x50   : > { %1546 = vrot.lane.b32.xlu0 %v904_v21, %s8973_s16 }
  0x51   : > { %1358 = vrot.lane.b32.xlu1 %v1291_v38, %s6546_s14 }
  0x54   : > { %1550 = vrot.lane.b32.xlu0 %v6807_v24, %s8973_s16 }
  0x55   : > { %1548 = vrot.lane.b32.xlu1 %v905_v22, %s8973_s16  ;;  %v406_v22 = vld [vmem:[%s6774_s25 + $0x98] sm:$0xff] }
  0x56   : > { %439 = vst.msk [vmem:[#allocation2 + $0xf9] sm:$0xff] %vm331_vm0, %v406_v22 }
  0x58   : > { %1739 = vrot.lane.b32.xlu0 %v1097_v33, %s6548_s17 }
  0x59   : > { %1552 = vrot.lane.b32.xlu1 %v6809_v25, %s8973_s16  ;;  %s8982_s16 = smov 18  }
  0x5c   : > { %1743 = vrot.lane.b32.xlu0 %v1677_v43, %s6548_s17 }
  0x5d   : > { %1741 = vrot.lane.b32.xlu1 %v1098_v36, %s6548_s17 }
  0x60   : > { %1932 = vrot.lane.b32.xlu0 %v1290_v37, %s6549_s23 }
  0x61   : > { %1745 = vrot.lane.b32.xlu1 %v1678_v44, %s6548_s17 }
  0x64   : > { %588 = vrot.lane.b32.xlu0 %v1097_v33, %s6542_s26 }
  0x65   : > { %1934 = vrot.lane.b32.xlu1 %v1291_v38, %s6549_s23 }
  0x68   : > { %1936 = vrot.lane.b32.xlu0 %v1870_v51, %s6549_s23 }
  0x69   : > { %590 = vrot.lane.b32.xlu1 %v1098_v36, %s6542_s26  ;;  %v7027_v36 = vld [vmem:[#allocation2 + $0x92] sm:$0xff] }
  0x6c   : > { %592 = vrot.lane.b32.xlu0 %v1677_v43, %s6542_s26 }
  0x6d   : > { %1938 = vrot.lane.b32.xlu1 %v1871_v52, %s6549_s23 }
  0x70   : > { %781 = vrot.lane.b32.xlu0 %v1290_v37, %s6543_s27 }
  0x71   : > { %594 = vrot.lane.b32.xlu1 %v1678_v44, %s6542_s26 }
  0x74   : > { %785 = vrot.lane.b32.xlu0 %v1870_v51, %s6543_s27 }
  0x75   : > { %783 = vrot.lane.b32.xlu1 %v1291_v38, %s6543_s27  ;;  %v7035_v38 = vld [vmem:[#allocation2 + $0x9a] sm:$0xff] }
  0x78   : > { %974 = vrot.lane.b32.xlu0 %v6807_v24, %s6544_s28 }
  0x79   : > { %787 = vrot.lane.b32.xlu1 %v1871_v52, %s6543_s27 }
  0x7c   : > { %978 = vrot.lane.b32.xlu0 %v6817_v27, %s6544_s28 }
  0x7d   : > { %976 = vrot.lane.b32.xlu1 %v6809_v25, %s6544_s28 }
  0x80   : > { %1167 = vrot.lane.b32.xlu0 %v1677_v43, %s6545_s29 }
  0x81   : > { %980 = vrot.lane.b32.xlu1 %v6819_v28, %s6544_s28 }
  0x84   : > { %1171 = vrot.lane.b32.xlu0 %v1101_v57, %s6545_s29 }
  0x85   : > { %1169 = vrot.lane.b32.xlu1 %v1678_v44, %s6545_s29  ;;  %v408_v44 = vld [vmem:[%s6774_s25 + $0xa8] sm:$0xff] }
  0x86   : > { %441 = vst.msk [vmem:[#allocation2 + $0x111] sm:$0xff] %vm331_vm0, %v408_v44 }
  0x88   : > { %1360 = vrot.lane.b32.xlu0 %v1870_v51, %s6546_s14  ;;  %v581_v3 = vpop.permute.xlu0 %580  ;;  %v7067_v51 = vld [vmem:[#allocation2 + $0xb1] sm:$0xff] }
  0x89   : > { %1173 = vrot.lane.b32.xlu1 %v1102_v58, %s6545_s29  ;;  %677 = vst.msk [vmem:[#allocation3] sm:$0xff] %vm8978_vm4, %v581_v3 }
  0x8c   : > { %1364 = vrot.lane.b32.xlu0 %v1294_v59, %s6546_s14 }
  0x8d   : > { %1362 = vrot.lane.b32.xlu1 %v1871_v52, %s6546_s14 }
  0x90   : > { %1554 = vrot.lane.b32.xlu0 %v6817_v27, %s8982_s16 }
  0x91   : > { %1366 = vrot.lane.b32.xlu1 %v1295_v60, %s6546_s14 }
  0x94   : > { %1558 = vrot.lane.b32.xlu0 %v6825_v29, %s8982_s16 }
  0x95   : > { %1556 = vrot.lane.b32.xlu1 %v6819_v28, %s8982_s16  ;;  %v7011_v28 = vld [vmem:[#allocation2 + $0x91] sm:$0xff] }
  0x98   : > { %1747 = vrot.lane.b32.xlu0 %v1101_v57, %s6548_s17 }
  0x99   : > { %1560 = vrot.lane.b32.xlu1 %v6827_v30, %s8982_s16 }
  0x9a   : > { %v776_v4 = vpop.permute.xlu1 %775 }
  0x9b   : > { %v583_v6 = vpop.permute.xlu0 %582 }
  0x9c   : > { %1751 = vrot.lane.b32.xlu0 %v6947_v2, %s6548_s17  ;;  %678 = vst.msk [vmem:[#allocation3 + $0x8] sm:$0xff] %vm8978_vm4, %v583_v6 }
  0x9d   : > { %1749 = vrot.lane.b32.xlu1 %v1102_v58, %s6548_s17  ;;  %871 = vst.msk [vmem:[#allocation3 + $0x8] sm:$0xff] %vm869_vm5, %v776_v4 }
  0x9f   : > { %v774_v8 = vpop.permute.xlu0 %773 }
  0xa0   : > { %1940 = vrot.lane.b32.xlu0 %v1294_v59, %s6549_s23  ;;  %870 = vst.msk [vmem:[#allocation3] sm:$0xff] %vm869_vm5, %v774_v8 }
  0xa1   : > { %1753 = vrot.lane.b32.xlu1 %v6953_v5, %s6548_s17 }
  0xa3   : > { %v585_v7 = vpop.permute.xlu1 %584 }
  0xa4   : > { %679 = vst.msk [vmem:[#allocation3 + $0x10] sm:$0xff] %vm8978_vm4, %v585_v7  ;;  %596 = vrot.lane.b32.xlu0 %v1101_v57, %s6542_s26 }
  0xa5   : > { %1942 = vrot.lane.b32.xlu1 %v1295_v60, %s6549_s23 }
  0xa6   : > { %v778_v11 = vpop.permute.xlu0 %777 }
  0xa7   : > { %v587_v9 = vpop.permute.xlu1 %586  ;;  %872 = vst.msk [vmem:[#allocation3 + $0x10] sm:$0xff] %vm869_vm5, %v778_v11 }
  0xa8   : > { %680 = vst.msk [vmem:[#allocation3 + $0x18] sm:$0xff] %vm8978_vm4, %v587_v9  ;;  %1944 = vrot.lane.b32.xlu0 %v6964_v10, %s6549_s23 }
  0xa9   : > { %598 = vrot.lane.b32.xlu1 %v1102_v58, %s6542_s26 }
  0xaa   : > { %v967_v14 = vpop.permute.xlu0 %966 }
  0xab   : > { %v780_v13 = vpop.permute.xlu1 %779  ;;  %1063 = vst.msk [vmem:[#allocation3] sm:$0xff] %vm1062_vm6, %v967_v14 }
  0xac   : > { %873 = vst.msk [vmem:[#allocation3 + $0x18] sm:$0xff] %vm869_vm5, %v780_v13  ;;  %600 = vrot.lane.b32.xlu0 %v6947_v2, %s6542_s26 }
  0xad   : > { %1946 = vrot.lane.b32.xlu1 %v6971_v12, %s6549_s23 }
  0xae   : > { %v971_v16 = vpop.permute.xlu0 %970 }
  0xaf   : > { %v969_v15 = vpop.permute.xlu1 %968  ;;  %1065 = vst.msk [vmem:[#allocation3 + $0x10] sm:$0xff] %vm1062_vm6, %v971_v16 }
  0xb0   : > { %1064 = vst.msk [vmem:[#allocation3 + $0x8] sm:$0xff] %vm1062_vm6, %v969_v15  ;;  %789 = vrot.lane.b32.xlu0 %v1294_v59, %s6543_s27  ;;  %v410_v15 = vld [vmem:[%s6774_s25 + $0xb8] sm:$0xff] }
  0xb1   : > { %602 = vrot.lane.b32.xlu1 %v6953_v5, %s6542_s26  ;;  %443 = vst.msk [vmem:[#allocation2 + $0x129] sm:$0xff] %vm331_vm0, %v410_v15  ;;  %v7283_v15 = vld [vmem:[#allocation2 + $0xf2] sm:$0xff] }
  0xb2   : > { %v1160_v18 = vpop.permute.xlu0 %1159 }
  0xb3   : > { %v973_v17 = vpop.permute.xlu1 %972  ;;  %1256 = vst.msk [vmem:[#allocation3] sm:$0xff] %vm1255_vm7, %v1160_v18 }
  0xb4   : > { %1066 = vst.msk [vmem:[#allocation3 + $0x18] sm:$0xff] %vm1062_vm6, %v973_v17  ;;  %793 = vrot.lane.b32.xlu0 %v6964_v10, %s6543_s27 }
  0xb5   : > { %791 = vrot.lane.b32.xlu1 %v1295_v60, %s6543_s27 }
  0xb6   : > { %v1164_v21 = vpop.permute.xlu0 %1163 }
  0xb7   : > { %v1162_v20 = vpop.permute.xlu1 %1161  ;;  %1258 = vst.msk [vmem:[#allocation3 + $0x10] sm:$0xff] %vm1255_vm7, %v1164_v21  ;;  %v7133_v21 = vld [vmem:[#allocation2 + $0xc9] sm:$0xff] }
  0xb8   : > { %1257 = vst.msk [vmem:[#allocation3 + $0x8] sm:$0xff] %vm1255_vm7, %v1162_v20  ;;  %982 = vrot.lane.b32.xlu0 %v6825_v29, %s6544_s28  ;;  %v7125_v20 = vld [vmem:[#allocation2 + $0xc1] sm:$0xff] }
  0xb9   : > { %795 = vrot.lane.b32.xlu1 %v6971_v12, %s6543_s27 }
  0xba   : > { %v1353_v24 = vpop.permute.xlu0 %1352 }
  0xbb   : > { %v1166_v23 = vpop.permute.xlu1 %1165  ;;  %1449 = vst.msk [vmem:[#allocation3] sm:$0xff] %vm1448_vm8, %v1353_v24 }
  0xbc   : > { %1259 = vst.msk [vmem:[#allocation3 + $0x18] sm:$0xff] %vm1255_vm7, %v1166_v23  ;;  %986 = vrot.lane.b32.xlu0 %v6843_v34, %s6544_s28 }
  0xbd   : > { %984 = vrot.lane.b32.xlu1 %v6827_v30, %s6544_s28  ;;  %v7019_v30 = vld [vmem:[#allocation2 + $0x99] sm:$0xff] }
  0xbe   : > { %v1357_v26 = vpop.permute.xlu0 %1356 }
  0xbf   : > { %v1355_v25 = vpop.permute.xlu1 %1354  ;;  %1451 = vst.msk [vmem:[#allocation3 + $0x10] sm:$0xff] %vm1448_vm8, %v1357_v26 }
  0xc0   : > { %1450 = vst.msk [vmem:[#allocation3 + $0x8] sm:$0xff] %vm1448_vm8, %v1355_v25  ;;  %1175 = vrot.lane.b32.xlu0 %v6947_v2, %s6545_s29  ;;  %v1878_v2 = vld [vmem:[#allocation2 + $0xaa] sm:$0xff]  ;;  %v7140_v25 = vld [vmem:[#allocation2 + $0xc2] sm:$0xff] }
  0xc1   : > { %988 = vrot.lane.b32.xlu1 %v6845_v35, %s6544_s28 }
  0xc2   : > { %v1547_v29 = vpop.permute.xlu0 %1546 }
  0xc3   : > { %v1359_v27 = vpop.permute.xlu1 %1358  ;;  %1643 = vst.msk [vmem:[#allocation3] sm:$0xff] %vm1642_vm9, %v1547_v29 }
  0xc4   : > { %1452 = vst.msk [vmem:[#allocation3 + $0x18] sm:$0xff] %vm1448_vm8, %v1359_v27  ;;  %1179 = vrot.lane.b32.xlu0 %v7011_v28, %s6545_s29  ;;  %v7147_v27 = vld [vmem:[#allocation2 + $0xca] sm:$0xff] }
  0xc5   : > { %1177 = vrot.lane.b32.xlu1 %v6953_v5, %s6545_s29  ;;  %v1879_v5 = vld [vmem:[#allocation2 + $0xb2] sm:$0xff] }
  0xc6   : > { %v1551_v32 = vpop.permute.xlu0 %1550 }
  0xc7   : > { %v1549_v31 = vpop.permute.xlu1 %1548  ;;  %1645 = vst.msk [vmem:[#allocation3 + $0x10] sm:$0xff] %vm1642_vm9, %v1551_v32 }
  0xc8   : > { %1644 = vst.msk [vmem:[#allocation3 + $0x8] sm:$0xff] %vm1642_vm9, %v1549_v31  ;;  %1368 = vrot.lane.b32.xlu0 %v6964_v10, %s6546_s14  ;;  %v412_v31 = vld [vmem:[%s6774_s25 + $0xc8] sm:$0xff] }
  0xc9   : > { %1181 = vrot.lane.b32.xlu1 %v7019_v30, %s6545_s29  ;;  %445 = vst.msk [vmem:[#allocation2 + $0x141] sm:$0xff] %vm331_vm0, %v412_v31 }
  0xca   : > { %v1740_v37 = vpop.permute.xlu0 %1739 }
  0xcb   : > { %v1553_v33 = vpop.permute.xlu1 %1552  ;;  %1836 = vst.msk [vmem:[#allocation3] sm:$0xff] %vm1835_vm10, %v1740_v37 }
  0xcc   : > { %1646 = vst.msk [vmem:[#allocation3 + $0x18] sm:$0xff] %vm1642_vm9, %v1553_v33  ;;  %1372 = vrot.lane.b32.xlu0 %v7027_v36, %s6546_s14 }
  0xcd   : > { %1370 = vrot.lane.b32.xlu1 %v6971_v12, %s6546_s14  ;;  %v409_v12 = vld [vmem:[%s6774_s25 + $0xb0] sm:$0xff] }
  0xce   : > { %v1744_v43 = vpop.permute.xlu0 %1743  ;;  %442 = vst.msk [vmem:[#allocation2 + $0x121] sm:$0xff] %vm331_vm0, %v409_v12 }
  0xcf   : > { %v1742_v40 = vpop.permute.xlu1 %1741  ;;  %1838 = vst.msk [vmem:[#allocation3 + $0x10] sm:$0xff] %vm1835_vm10, %v1744_v43 }
  0xd0   : > { %1837 = vst.msk [vmem:[#allocation3 + $0x8] sm:$0xff] %vm1835_vm10, %v1742_v40  ;;  %1562 = vrot.lane.b32.xlu0 %v6843_v34, %s8982_s16  ;;  %v7179_v40 = vld [vmem:[#allocation2 + $0xe1] sm:$0xff] }
  0xd1   : > { %1374 = vrot.lane.b32.xlu1 %v7035_v38, %s6546_s14 }
  0xd2   : > { %v1933_v46 = vpop.permute.xlu0 %1932 }
  0xd3   : > { %v1746_v45 = vpop.permute.xlu1 %1745  ;;  %2029 = vst.msk [vmem:[#allocation3] sm:$0xff] %vm2028_vm11, %v1933_v46 }
  0xd4   : > { %1839 = vst.msk [vmem:[#allocation3 + $0x18] sm:$0xff] %vm1835_vm10, %v1746_v45  ;;  %1566 = vrot.lane.b32.xlu0 %v6866_v41, %s8982_s16 }
  0xd5   : > { %1564 = vrot.lane.b32.xlu1 %v6845_v35, %s8982_s16 }
  0xd6   : > { %v589_v48 = vpop.permute.xlu0 %588 }
  0xd7   : > { %v1935_v47 = vpop.permute.xlu1 %1934  ;;  %681 = vst.msk [vmem:[#allocation3 + $0x20] sm:$0xff] %vm8978_vm4, %v589_v48 }
  0xd8   : > { %2030 = vst.msk [vmem:[#allocation3 + $0x8] sm:$0xff] %vm2028_vm11, %v1935_v47  ;;  %1755 = vrot.lane.b32.xlu0 %v7011_v28, %s6548_s17 }
  0xd9   : > { %1568 = vrot.lane.b32.xlu1 %v6870_v42, %s8982_s16 }
  0xda   : > { %v1937_v35 = vpop.permute.xlu0 %1936  ;;  %v2061_v50 = vld [vmem:[#allocation3] sm:$0xff] }
  0xdb   : > { %v591_v34 = vpop.permute.xlu1 %590  ;;  %2031 = vst.msk [vmem:[#allocation3 + $0x10] sm:$0xff] %vm2028_vm11, %v1937_v35 }
  0xdc   : > { %682 = vst.msk [vmem:[#allocation3 + $0x28] sm:$0xff] %vm8978_vm4, %v591_v34  ;;  %1759 = vrot.lane.b32.xlu0 %v7059_v49, %s6548_s17 }
  0xdd   : > { %1757 = vrot.lane.b32.xlu1 %v7019_v30, %s6548_s17 }
  0xde   : > { %v593_v54 = vpop.permute.xlu0 %592 }
  0xdf   : > { %v1939_v52 = vpop.permute.xlu1 %1938  ;;  %v2062_v53 = vld [vmem:[#allocation3 + $0x8] sm:$0xff]  ;;  %683 = vst.msk [vmem:[#allocation3 + $0x30] sm:$0xff] %vm8978_vm4, %v593_v54 }
  0xe0   : > { %2032 = vst.msk [vmem:[#allocation3 + $0x18] sm:$0xff] %vm2028_vm11, %v1939_v52  ;;  %v2093_v57 = vpack.c.bf16 %v2062_v53, %v2061_v50  ;;  %1948 = vrot.lane.b32.xlu0 %v7027_v36, %s6549_s23  ;;  %v7194_v50 = vld [vmem:[#allocation2 + $0xda] sm:$0xff]  ;;  %v7203_v53 = vld [vmem:[#allocation2 + $0xe2] sm:$0xff] }
  0xe1   : > { %1761 = vrot.lane.b32.xlu1 %v7067_v51, %s6548_s17 }
  0xe2   : > { %6307 = vmatprep.mubr.msk.bf16.mxu0 %vm8976_vm12, %v2093_v57  ;;  %v782_v59 = vpop.permute.xlu0 %781  ;;  %v2063_v60 = vld [vmem:[#allocation3 + $0x10] sm:$0xff] }
  0xe3   : > { %v595_v58 = vpop.permute.xlu1 %594  ;;  %874 = vst.msk [vmem:[#allocation3 + $0x20] sm:$0xff] %vm869_vm5, %v782_v59 }
  0xe4   : > { %684 = vst.msk [vmem:[#allocation3 + $0x38] sm:$0xff] %vm8978_vm4, %v595_v58  ;;  %604 = vrot.lane.b32.xlu0 %v7011_v28, %s6542_s26  ;;  %v411_v28 = vld [vmem:[%s6774_s25 + $0xc0] sm:$0xff] }
  0xe5   : > { %1950 = vrot.lane.b32.xlu1 %v7035_v38, %s6549_s23  ;;  %444 = vst.msk [vmem:[#allocation2 + $0x139] sm:$0xff] %vm331_vm0, %v411_v28 }
  0xe6   : > { %v786_v3 = vpop.permute.xlu0 %785 }
  0xe7   : > { %v784_v61 = vpop.permute.xlu1 %783  ;;  %v2064_v62 = vld [vmem:[#allocation3 + $0x18] sm:$0xff]  ;;  %876 = vst.msk [vmem:[#allocation3 + $0x30] sm:$0xff] %vm869_vm5, %v786_v3  ;;  %v413_v3 = vld [vmem:[%s6774_s25 + $0xd0] sm:$0xff] }
  0xe8   : > { %875 = vst.msk [vmem:[#allocation3 + $0x28] sm:$0xff] %vm869_vm5, %v784_v61  ;;  %v2094_v4 = vpack.c.bf16 %v2064_v62, %v2063_v60  ;;  %1952 = vrot.lane.b32.xlu0 %v1878_v2, %s6549_s23 }
  0xe9   : > { %606 = vrot.lane.b32.xlu1 %v7019_v30, %s6542_s26  ;;  %446 = vst.msk [vmem:[#allocation2 + $0x151] sm:$0xff] %vm331_vm0, %v413_v3 }
  0xea   : > { %6308 = vmatmul.mubr.msk.bf16.vlgmr.msra.gmra.mrb[0].mxu0 %vm8976_vm12, %v2094_v4  ;;  %v975_v7 = vpop.permute.xlu0 %974 }
  0xeb   : > { %v788_v6 = vpop.permute.xlu1 %787  ;;  %1067 = vst.msk [vmem:[#allocation3 + $0x20] sm:$0xff] %vm1062_vm6, %v975_v7  ;;  %v7239_v7 = vld [vmem:[#allocation2 + $0xf8] sm:$0xff] }
  0xec   : > { %877 = vst.msk [vmem:[#allocation3 + $0x38] sm:$0xff] %vm869_vm5, %v788_v6  ;;  %608 = vrot.lane.b32.xlu0 %v7059_v49, %s6542_s26 }
  0xed   : > { %1954 = vrot.lane.b32.xlu1 %v1879_v5, %s6549_s23 }
  0xee   : > { %v979_v9 = vpop.permute.xlu0 %978 }
  0xef   : > { %v977_v8 = vpop.permute.xlu1 %976  ;;  %1069 = vst.msk [vmem:[#allocation3 + $0x30] sm:$0xff] %vm1062_vm6, %v979_v9 }
  0xf0   : > { %1068 = vst.msk [vmem:[#allocation3 + $0x28] sm:$0xff] %vm1062_vm6, %v977_v8  ;;  %797 = vrot.lane.b32.xlu0 %v7027_v36, %s6543_s27 }
  0xf1   : > { %610 = vrot.lane.b32.xlu1 %v7067_v51, %s6542_s26 }
  0xf2   : > { %v1168_v11 = vpop.permute.xlu0 %1167 }
  0xf3   : > { %v981_v10 = vpop.permute.xlu1 %980  ;;  %1260 = vst.msk [vmem:[#allocation3 + $0x20] sm:$0xff] %vm1255_vm7, %v1168_v11  ;;  %v7275_v11 = vld [vmem:[#allocation2 + $0xf9] sm:$0xff] }
  0xf4   : > { %1070 = vst.msk [vmem:[#allocation3 + $0x38] sm:$0xff] %vm1062_vm6, %v981_v10  ;;  %801 = vrot.lane.b32.xlu0 %v1878_v2, %s6543_s27  ;;  %v7247_v10 = vld [vmem:[#allocation2 + $0xf1] sm:$0xff] }
  0xf5   : > { %799 = vrot.lane.b32.xlu1 %v7035_v38, %s6543_s27  ;;  %v7171_v38 = vld [vmem:[#allocation2 + $0xd9] sm:$0xff] }
  0xf6   : > { %v1172_v14 = vpop.permute.xlu0 %1171 }
  0xf7   : > { %v1170_v13 = vpop.permute.xlu1 %1169  ;;  %1262 = vst.msk [vmem:[#allocation3 + $0x30] sm:$0xff] %vm1255_vm7, %v1172_v14 }
  0xf8   : > { %1261 = vst.msk [vmem:[#allocation3 + $0x28] sm:$0xff] %vm1255_vm7, %v1170_v13  ;;  %990 = vrot.lane.b32.xlu0 %v6866_v41, %s6544_s28 }
  0xf9   : > { %803 = vrot.lane.b32.xlu1 %v1879_v5, %s6543_s27 }
  0xfa   : > { %v1361_v17 = vpop.permute.xlu0 %1360 }
  0xfb   : > { %v1174_v16 = vpop.permute.xlu1 %1173  ;;  %1453 = vst.msk [vmem:[#allocation3 + $0x20] sm:$0xff] %vm1448_vm8, %v1361_v17  ;;  %v7291_v17 = vld [vmem:[#allocation2 + $0xfa] sm:$0xff] }
  0xfc   : > { %1263 = vst.msk [vmem:[#allocation3 + $0x38] sm:$0xff] %vm1255_vm7, %v1174_v16  ;;  %994 = vrot.lane.b32.xlu0 %v6908_v55, %s6544_s28 }
  0xfd   : > { %992 = vrot.lane.b32.xlu1 %v6870_v42, %s6544_s28 }
  0xfe   : > { %v1365_v19 = vpop.permute.xlu0 %1364 }
  0xff   : > { %v1363_v18 = vpop.permute.xlu1 %1362  ;;  %1455 = vst.msk [vmem:[#allocation3 + $0x30] sm:$0xff] %vm1448_vm8, %v1365_v19 }
 0x100   : > { %1454 = vst.msk [vmem:[#allocation3 + $0x28] sm:$0xff] %vm1448_vm8, %v1363_v18  ;;  %1183 = vrot.lane.b32.xlu0 %v7059_v49, %s6545_s29  ;;  %v414_v18 = vld [vmem:[%s6774_s25 + $0xd8] sm:$0xff] }
 0x101   : > { %996 = vrot.lane.b32.xlu1 %v6912_v56, %s6544_s28  ;;  %447 = vst.msk [vmem:[#allocation2 + $0x159] sm:$0xff] %vm331_vm0, %v414_v18 }
 0x102   : > { %v1555_v42 = vpop.permute.xlu0 %1554 }
 0x103   : > { %v1367_v41 = vpop.permute.xlu1 %1366  ;;  %1647 = vst.msk [vmem:[#allocation3 + $0x20] sm:$0xff] %vm1642_vm9, %v1555_v42  ;;  %v7321_v42 = vld [vmem:[#allocation2 + $0x108] sm:$0xff] }
 0x104   : > { %1456 = vst.msk [vmem:[#allocation3 + $0x38] sm:$0xff] %vm1448_vm8, %v1367_v41  ;;  %1187 = vrot.lane.b32.xlu0 %v7125_v20, %s6545_s29 }
 0x105   : > { %1185 = vrot.lane.b32.xlu1 %v7067_v51, %s6545_s29 }
 0x106   : > { %v1559_v23 = vpop.permute.xlu0 %1558 }
 0x107   : > { %v1557_v22 = vpop.permute.xlu1 %1556  ;;  %1649 = vst.msk [vmem:[#allocation3 + $0x30] sm:$0xff] %vm1642_vm9, %v1559_v23 }
 0x108   : > { %1648 = vst.msk [vmem:[#allocation3 + $0x28] sm:$0xff] %vm1642_vm9, %v1557_v22  ;;  %1376 = vrot.lane.b32.xlu0 %v1878_v2, %s6546_s14  ;;  %v7329_v22 = vld [vmem:[#allocation2 + $0x110] sm:$0xff] }
 0x109   : > { %1189 = vrot.lane.b32.xlu1 %v7133_v21, %s6545_s29 }
 0x10a   : > { %v1748_v26 = vpop.permute.xlu0 %1747 }
 0x10b   : > { %v1561_v24 = vpop.permute.xlu1 %1560  ;;  %1840 = vst.msk [vmem:[#allocation3 + $0x20] sm:$0xff] %vm1835_vm10, %v1748_v26  ;;  %v7337_v26 = vld [vmem:[#allocation2 + $0x109] sm:$0xff] }
 0x10c   : > { %1650 = vst.msk [vmem:[#allocation3 + $0x38] sm:$0xff] %vm1642_vm9, %v1561_v24  ;;  %1380 = vrot.lane.b32.xlu0 %v7140_v25, %s6546_s14 }
 0x10d   : > { %1378 = vrot.lane.b32.xlu1 %v1879_v5, %s6546_s14  ;;  %v7231_v5 = vld [vmem:[#allocation2 + $0xf0] sm:$0xff] }
 0x10e   : > { %v1752_v30 = vpop.permute.xlu0 %1751 }
 0x10f   : > { %v1750_v29 = vpop.permute.xlu1 %1749  ;;  %1842 = vst.msk [vmem:[#allocation3 + $0x30] sm:$0xff] %vm1835_vm10, %v1752_v30 }
 0x110   : > { %1841 = vst.msk [vmem:[#allocation3 + $0x28] sm:$0xff] %vm1835_vm10, %v1750_v29  ;;  %1570 = vrot.lane.b32.xlu0 %v6908_v55, %s8982_s16  ;;  %v7345_v29 = vld [vmem:[#allocation2 + $0x111] sm:$0xff] }
 0x111   : > { %1382 = vrot.lane.b32.xlu1 %v7147_v27, %s6546_s14 }
 0x112   : > { %v1941_v33 = vpop.permute.xlu0 %1940 }
 0x113   : > { %v1754_v32 = vpop.permute.xlu1 %1753  ;;  %2033 = vst.msk [vmem:[#allocation3 + $0x20] sm:$0xff] %vm2028_vm11, %v1941_v33 }
 0x114   : > { %1843 = vst.msk [vmem:[#allocation3 + $0x38] sm:$0xff] %vm1835_vm10, %v1754_v32  ;;  %1574 = vrot.lane.b32.xlu0 %v6936_v63, %s8982_s16 }
 0x115   : > { %1572 = vrot.lane.b32.xlu1 %v6912_v56, %s8982_s16 }
 0x116   : > { %v597_v37 = vpop.permute.xlu0 %596 }
 0x117   : > { %v1943_v36 = vpop.permute.xlu1 %1942  ;;  %685 = vst.msk [vmem:[#allocation3 + $0x40] sm:$0xff] %vm8978_vm4, %v597_v37 }
 0x118   : > { %2034 = vst.msk [vmem:[#allocation3 + $0x28] sm:$0xff] %vm2028_vm11, %v1943_v36  ;;  %1763 = vrot.lane.b32.xlu0 %v7125_v20, %s6548_s17 }
 0x119   : > { %1576 = vrot.lane.b32.xlu1 %v6940_v1, %s8982_s16 }
 0x11a   : > { %v1945_v56 = vpop.permute.xlu0 %1944  ;;  %v2065_v39 = vld [vmem:[#allocation3 + $0x20] sm:$0xff] }
 0x11b   : > { %v599_v55 = vpop.permute.xlu1 %598  ;;  %2035 = vst.msk [vmem:[#allocation3 + $0x30] sm:$0xff] %vm2028_vm11, %v1945_v56  ;;  %v416_v56 = vld [vmem:[%s6774_s25 + $0xe8] sm:$0xff] }
 0x11c   : > { %686 = vst.msk [vmem:[#allocation3 + $0x48] sm:$0xff] %vm8978_vm4, %v599_v55  ;;  %1767 = vrot.lane.b32.xlu0 %v7171_v38, %s6548_s17  ;;  %v415_v55 = vld [vmem:[%s6774_s25 + $0xe0] sm:$0xff] }
 0x11d   : > { %1765 = vrot.lane.b32.xlu1 %v7133_v21, %s6548_s17  ;;  %448 = vst.msk [vmem:[#allocation2 + $0x169] sm:$0xff] %vm331_vm0, %v415_v55  ;;  %449 = vst.msk [vmem:[#allocation2 + $0x171] sm:$0xff] %vm331_vm0, %v416_v56 }
 0x11e   : > { %v601_v45 = vpop.permute.xlu0 %600 }
 0x11f   : > { %v1947_v43 = vpop.permute.xlu1 %1946  ;;  %v2066_v44 = vld [vmem:[#allocation3 + $0x28] sm:$0xff]  ;;  %687 = vst.msk [vmem:[#allocation3 + $0x50] sm:$0xff] %vm8978_vm4, %v601_v45 }
 0x120   : > { %2036 = vst.msk [vmem:[#allocation3 + $0x38] sm:$0xff] %vm2028_vm11, %v1947_v43  ;;  %v2095_v46 = vpack.c.bf16 %v2066_v44, %v2065_v39  ;;  %1956 = vrot.lane.b32.xlu0 %v7140_v25, %s6549_s23  ;;  %v7363_v43 = vld [vmem:[#allocation2 + $0x10a] sm:$0xff] }
 0x121   : > { %1769 = vrot.lane.b32.xlu1 %v7179_v40, %s6548_s17 }
 0x122   : > { %6311 = vmatprep.mubr.msk.bf16.mxu0 %vm8976_vm12, %v2095_v46  ;;  %v790_v48 = vpop.permute.xlu0 %789  ;;  %v2067_v34 = vld [vmem:[#allocation3 + $0x30] sm:$0xff]  ;;  %v7373_v46 = vld [vmem:[#allocation2 + $0x112] sm:$0xff] }
 0x123   : > { %v603_v47 = vpop.permute.xlu1 %602  ;;  %878 = vst.msk [vmem:[#allocation3 + $0x40] sm:$0xff] %vm869_vm5, %v790_v48 }
 0x124   : > { %688 = vst.msk [vmem:[#allocation3 + $0x58] sm:$0xff] %vm8978_vm4, %v603_v47  ;;  %612 = vrot.lane.b32.xlu0 %v7125_v20, %s6542_s26 }
 0x125   : > { %1958 = vrot.lane.b32.xlu1 %v7147_v27, %s6549_s23 }
 0x126   : > { %v794_v51 = vpop.permute.xlu0 %793 }
 0x127   : > { %v792_v49 = vpop.permute.xlu1 %791  ;;  %v2068_v35 = vld [vmem:[#allocation3 + $0x38] sm:$0xff]  ;;  %880 = vst.msk [vmem:[#allocation3 + $0x50] sm:$0xff] %vm869_vm5, %v794_v51 }
 0x128   : > { %879 = vst.msk [vmem:[#allocation3 + $0x48] sm:$0xff] %vm869_vm5, %v792_v49  ;;  %v2096_v52 = vpack.c.bf16 %v2068_v35, %v2067_v34  ;;  %1960 = vrot.lane.b32.xlu0 %v7194_v50, %s6549_s23  ;;  %v472_v35 = vld [vmem:[#allocation2 + $0xf0] sm:$0xff]  ;;  %v474_v51 = vld [vmem:[#allocation2 + $0x108] sm:$0xff] }
 0x129   : > { %614 = vrot.lane.b32.xlu1 %v7133_v21, %s6542_s26  ;;  %504 = vst.msk [vmem:[#allocation3 + $0xa0] sm:$0xff] %vm331_vm0, %v472_v35  ;;  %506 = vst.msk [vmem:[#allocation3 + $0xb0] sm:$0xff] %vm331_vm0, %v474_v51 }
 0x12a   : > { %6312 = vmatmul.mubr.msk.bf16.gmra.mrb[4].mxu0 %vm8976_vm12, %v2096_v52  ;;  %v983_v57 = vpop.permute.xlu0 %982 }
 0x12b   : > { %v796_v54 = vpop.permute.xlu1 %795  ;;  %1071 = vst.msk [vmem:[#allocation3 + $0x40] sm:$0xff] %vm1062_vm6, %v983_v57 }
 0x12c   : > { %881 = vst.msk [vmem:[#allocation3 + $0x58] sm:$0xff] %vm869_vm5, %v796_v54  ;;  %616 = vrot.lane.b32.xlu0 %v7171_v38, %s6542_s26 }
 0x12d   : > { %1962 = vrot.lane.b32.xlu1 %v7203_v53, %s6549_s23 }
 0x12e   : > { %v987_v59 = vpop.permute.xlu0 %986 }
 0x12f   : > { %v985_v58 = vpop.permute.xlu1 %984  ;;  %1073 = vst.msk [vmem:[#allocation3 + $0x50] sm:$0xff] %vm1062_vm6, %v987_v59 }
 0x130   : > { %1072 = vst.msk [vmem:[#allocation3 + $0x48] sm:$0xff] %vm1062_vm6, %v985_v58  ;;  %805 = vrot.lane.b32.xlu0 %v7140_v25, %s6543_s27 }
 0x131   : > { %618 = vrot.lane.b32.xlu1 %v7179_v40, %s6542_s26 }
 0x132   : > { %v1176_v61 = vpop.permute.xlu0 %1175 }
 0x133   : > { %v989_v60 = vpop.permute.xlu1 %988  ;;  %1264 = vst.msk [vmem:[#allocation3 + $0x40] sm:$0xff] %vm1255_vm7, %v1176_v61 }
 0x134   : > { %1074 = vst.msk [vmem:[#allocation3 + $0x58] sm:$0xff] %vm1062_vm6, %v989_v60  ;;  %809 = vrot.lane.b32.xlu0 %v7194_v50, %s6543_s27  ;;  %v924_v60 = vld [vmem:[#allocation2 + $0x120] sm:$0xff] }
 0x135   : > { %807 = vrot.lane.b32.xlu1 %v7147_v27, %s6543_s27 }
 0x136   : > { %v1180_v2 = vpop.permute.xlu0 %1179 }
 0x137   : > { %v1178_v62 = vpop.permute.xlu1 %1177  ;;  %1266 = vst.msk [vmem:[#allocation3 + $0x50] sm:$0xff] %vm1255_vm7, %v1180_v2 }
 0x138   : > { %1265 = vst.msk [vmem:[#allocation3 + $0x48] sm:$0xff] %vm1255_vm7, %v1178_v62  ;;  %998 = vrot.lane.b32.xlu0 %v6936_v63, %s6544_s28  ;;  %v925_v62 = vld [vmem:[#allocation2 + $0x128] sm:$0xff] }
 0x139   : > { %811 = vrot.lane.b32.xlu1 %v7203_v53, %s6543_s27 }
 0x13a   : > { %v1369_v6 = vpop.permute.xlu0 %1368 }
 0x13b   : > { %v1182_v4 = vpop.permute.xlu1 %1181  ;;  %1457 = vst.msk [vmem:[#allocation3 + $0x40] sm:$0xff] %vm1448_vm8, %v1369_v6 }
 0x13c   : > { %1267 = vst.msk [vmem:[#allocation3 + $0x58] sm:$0xff] %vm1255_vm7, %v1182_v4  ;;  %1002 = vrot.lane.b32.xlu0 %v7231_v5, %s6544_s28 }
 0x13d   : > { %1000 = vrot.lane.b32.xlu1 %v6940_v1, %s6544_s28 }
 0x13e   : > { %v1373_v63 = vpop.permute.xlu0 %1372 }
 0x13f   : > { %v1371_v8 = vpop.permute.xlu1 %1370  ;;  %1459 = vst.msk [vmem:[#allocation3 + $0x50] sm:$0xff] %vm1448_vm8, %v1373_v63 }
 0x140   : > { %1458 = vst.msk [vmem:[#allocation3 + $0x48] sm:$0xff] %vm1448_vm8, %v1371_v8  ;;  %1191 = vrot.lane.b32.xlu0 %v7171_v38, %s6545_s29 }
 0x141   : > { %1004 = vrot.lane.b32.xlu1 %v7239_v7, %s6544_s28 }
 0x142   : > { %v1563_v1 = vpop.permute.xlu0 %1562 }
 0x143   : > { %v1375_v9 = vpop.permute.xlu1 %1374  ;;  %1651 = vst.msk [vmem:[#allocation3 + $0x40] sm:$0xff] %vm1642_vm9, %v1563_v1 }
 0x144   : > { %1460 = vst.msk [vmem:[#allocation3 + $0x58] sm:$0xff] %vm1448_vm8, %v1375_v9  ;;  %1195 = vrot.lane.b32.xlu0 %v7247_v10, %s6545_s29 }
 0x145   : > { %1193 = vrot.lane.b32.xlu1 %v7179_v40, %s6545_s29 }
 0x146   : > { %v1567_v13 = vpop.permute.xlu0 %1566 }
 0x147   : > { %v1565_v12 = vpop.permute.xlu1 %1564  ;;  %1653 = vst.msk [vmem:[#allocation3 + $0x50] sm:$0xff] %vm1642_vm9, %v1567_v13  ;;  %v418_v13 = vld [vmem:[%s6774_s25 + $0xf8] sm:$0xff] }
 0x148   : > { %1652 = vst.msk [vmem:[#allocation3 + $0x48] sm:$0xff] %vm1642_vm9, %v1565_v12  ;;  %1384 = vrot.lane.b32.xlu0 %v7194_v50, %s6546_s14  ;;  %v473_v50 = vld [vmem:[#allocation2 + $0xf8] sm:$0xff]  ;;  %v7439_v12 = vld [vmem:[#allocation2 + $0x12a] sm:$0xff] }
 0x149   : > { %1197 = vrot.lane.b32.xlu1 %v7275_v11, %s6545_s29  ;;  %505 = vst.msk [vmem:[#allocation3 + $0xa8] sm:$0xff] %vm331_vm0, %v473_v50  ;;  %451 = vst.msk [vmem:[#allocation2 + $0x189] sm:$0xff] %vm331_vm0, %v418_v13  ;;  %v2416_v50 = vlaneseq }
 0x14a   : > { %v1756_v16 = vpop.permute.xlu0 %1755 }
 0x14b   : > { %v1569_v14 = vpop.permute.xlu1 %1568  ;;  %1844 = vst.msk [vmem:[#allocation3 + $0x40] sm:$0xff] %vm1835_vm10, %v1756_v16 }
 0x14c   : > { %1654 = vst.msk [vmem:[#allocation3 + $0x58] sm:$0xff] %vm1642_vm9, %v1569_v14  ;;  %1388 = vrot.lane.b32.xlu0 %v7283_v15, %s6546_s14 }
 0x14d   : > { %1386 = vrot.lane.b32.xlu1 %v7203_v53, %s6546_s14  ;;  %v475_v53 = vld [vmem:[#allocation2 + $0x110] sm:$0xff] }
 0x14e   : > { %v1760_v41 = vpop.permute.xlu0 %1759  ;;  %507 = vst.msk [vmem:[#allocation3 + $0xb8] sm:$0xff] %vm331_vm0, %v475_v53 }
 0x14f   : > { %v1758_v19 = vpop.permute.xlu1 %1757  ;;  %1846 = vst.msk [vmem:[#allocation3 + $0x50] sm:$0xff] %vm1835_vm10, %v1760_v41 }
 0x150   : > { %1845 = vst.msk [vmem:[#allocation3 + $0x48] sm:$0xff] %vm1835_vm10, %v1758_v19  ;;  %1578 = vrot.lane.b32.xlu0 %v7231_v5, %s8982_s16  ;;  %v7413_v5 = vld [vmem:[#allocation2 + $0x121] sm:$0xff] }
 0x151   : > { %1390 = vrot.lane.b32.xlu1 %v7291_v17, %s6546_s14  ;;  %v7455_v19 = vld [vmem:[#allocation2 + $0x140] sm:$0xff] }
 0x152   : > { %v1949_v21 = vpop.permute.xlu0 %1948 }
 0x153   : > { %v1762_v20 = vpop.permute.xlu1 %1761  ;;  %2037 = vst.msk [vmem:[#allocation3 + $0x40] sm:$0xff] %vm2028_vm11, %v1949_v21  ;;  %v7463_v21 = vld [vmem:[#allocation2 + $0x139] sm:$0xff] }
 0x154   : > { %1847 = vst.msk [vmem:[#allocation3 + $0x58] sm:$0xff] %vm1835_vm10, %v1762_v20  ;;  %1582 = vrot.lane.b32.xlu0 %v7321_v42, %s8982_s16 }
 0x155   : > { %1580 = vrot.lane.b32.xlu1 %v7239_v7, %s8982_s16  ;;  %v7421_v7 = vld [vmem:[#allocation2 + $0x129] sm:$0xff] }
 0x156   : > { %v605_v24 = vpop.permute.xlu0 %604 }
 0x157   : > { %v1951_v23 = vpop.permute.xlu1 %1950  ;;  %689 = vst.msk [vmem:[#allocation3 + $0x60] sm:$0xff] %vm8978_vm4, %v605_v24  ;;  %v7471_v24 = vld [vmem:[#allocation2 + $0x141] sm:$0xff] }
 0x158   : > { %2038 = vst.msk [vmem:[#allocation3 + $0x48] sm:$0xff] %vm2028_vm11, %v1951_v23  ;;  %1771 = vrot.lane.b32.xlu0 %v7247_v10, %s6548_s17 }
 0x159   : > { %1584 = vrot.lane.b32.xlu1 %v7329_v22, %s8982_s16 }
 0x15a   : > { %v1953_v27 = vpop.permute.xlu0 %1952  ;;  %v2069_v28 = vld [vmem:[#allocation3 + $0x40] sm:$0xff] }
 0x15b   : > { %v607_v25 = vpop.permute.xlu1 %606  ;;  %2039 = vst.msk [vmem:[#allocation3 + $0x50] sm:$0xff] %vm2028_vm11, %v1953_v27 }
 0x15c   : > { %690 = vst.msk [vmem:[#allocation3 + $0x68] sm:$0xff] %vm8978_vm4, %v607_v25  ;;  %1775 = vrot.lane.b32.xlu0 %v7337_v26, %s6548_s17 }
 0x15d   : > { %1773 = vrot.lane.b32.xlu1 %v7275_v11, %s6548_s17 }
 0x15e   : > { %v609_v32 = vpop.permute.xlu0 %608 }
 0x15f   : > { %v1955_v30 = vpop.permute.xlu1 %1954  ;;  %v2070_v31 = vld [vmem:[#allocation3 + $0x48] sm:$0xff]  ;;  %691 = vst.msk [vmem:[#allocation3 + $0x70] sm:$0xff] %vm8978_vm4, %v609_v32 }
 0x160   : > { %2040 = vst.msk [vmem:[#allocation3 + $0x58] sm:$0xff] %vm2028_vm11, %v1955_v30  ;;  %v2097_v33 = vpack.c.bf16 %v2070_v31, %v2069_v28  ;;  %1964 = vrot.lane.b32.xlu0 %v7283_v15, %s6549_s23 }
 0x161   : > { %1777 = vrot.lane.b32.xlu1 %v7345_v29, %s6548_s17 }
 0x162   : > { %6315 = vmatprep.mubr.msk.bf16.mxu0 %vm8976_vm12, %v2097_v33  ;;  %v798_v37 = vpop.permute.xlu0 %797  ;;  %v2071_v38 = vld [vmem:[#allocation3 + $0x50] sm:$0xff] }
 0x163   : > { %v611_v36 = vpop.permute.xlu1 %610  ;;  %882 = vst.msk [vmem:[#allocation3 + $0x60] sm:$0xff] %vm869_vm5, %v798_v37 }
 0x164   : > { %692 = vst.msk [vmem:[#allocation3 + $0x78] sm:$0xff] %vm8978_vm4, %v611_v36  ;;  %620 = vrot.lane.b32.xlu0 %v7247_v10, %s6542_s26  ;;  %v7429_v10 = vld [vmem:[#allocation2 + $0x122] sm:$0xff]  ;;  %v7486_v36 = vld [vmem:[#allocation2 + $0x13a] sm:$0xff] }
 0x165   : > { %1966 = vrot.lane.b32.xlu1 %v7291_v17, %s6549_s23 }
 0x166   : > { %v802_v44 = vpop.permute.xlu0 %801 }
 0x167   : > { %v800_v39 = vpop.permute.xlu1 %799  ;;  %v2072_v40 = vld [vmem:[#allocation3 + $0x58] sm:$0xff]  ;;  %884 = vst.msk [vmem:[#allocation3 + $0x70] sm:$0xff] %vm869_vm5, %v802_v44  ;;  %v476_v44 = vld [vmem:[#allocation2 + $0x120] sm:$0xff] }
 0x168   : > { %883 = vst.msk [vmem:[#allocation3 + $0x68] sm:$0xff] %vm869_vm5, %v800_v39  ;;  %v2098_v45 = vpack.c.bf16 %v2072_v40, %v2071_v38  ;;  %1968 = vrot.lane.b32.xlu0 %v7363_v43, %s6549_s23  ;;  %v7495_v38 = vld [vmem:[#allocation2 + $0x142] sm:$0xff] }
 0x169   : > { %622 = vrot.lane.b32.xlu1 %v7275_v11, %s6542_s26  ;;  %v417_v11 = vld [vmem:[%s6774_s25 + $0xf0] sm:$0xff]  ;;  %508 = vst.msk [vmem:[#allocation3 + $0xc0] sm:$0xff] %vm331_vm0, %v476_v44  ;;  %s323_s25 = sand.u32 1, %s6531_s10  }
 0x16a   : > { %6316 = vmatmul.mubr.msk.bf16.gmra.mrb[8].mxu0 %vm8976_vm12, %v2098_v45  ;;  %v991_v48 = vpop.permute.xlu0 %990  ;;  %450 = vst.msk [vmem:[#allocation2 + $0x181] sm:$0xff] %vm331_vm0, %v417_v11  ;;  %v477_v45 = vld [vmem:[#allocation2 + $0x128] sm:$0xff] }
 0x16b   : > { %v804_v47 = vpop.permute.xlu1 %803  ;;  %1075 = vst.msk [vmem:[#allocation3 + $0x60] sm:$0xff] %vm1062_vm6, %v991_v48  ;;  %v479_v48 = vld [vmem:[#allocation2 + $0x140] sm:$0xff] }
 0x16c   : > { %885 = vst.msk [vmem:[#allocation3 + $0x78] sm:$0xff] %vm869_vm5, %v804_v47  ;;  %624 = vrot.lane.b32.xlu0 %v7337_v26, %s6542_s26 }
 0x16d   : > { %1970 = vrot.lane.b32.xlu1 %v7373_v46, %s6549_s23  ;;  %509 = vst.msk [vmem:[#allocation3 + $0xc8] sm:$0xff] %vm331_vm0, %v477_v45  ;;  %511 = vst.msk [vmem:[#allocation3 + $0xd8] sm:$0xff] %vm331_vm0, %v479_v48 }
 0x16e   : > { %v995_v49 = vpop.permute.xlu0 %994 }
 0x16f   : > { %v993_v34 = vpop.permute.xlu1 %992  ;;  %1077 = vst.msk [vmem:[#allocation3 + $0x70] sm:$0xff] %vm1062_vm6, %v995_v49  ;;  %v6551_v49 = vmov 1983009808  }
 0x170   : > { %1076 = vst.msk [vmem:[#allocation3 + $0x68] sm:$0xff] %vm1062_vm6, %v993_v34  ;;  %813 = vrot.lane.b32.xlu0 %v7283_v15, %s6543_s27  ;;  %v2414_v35 = vunpack.c.l.s4 %v6551_v49 }
 0x171   : > { %626 = vrot.lane.b32.xlu1 %v7345_v29, %s6542_s26 }
 0x172   : > { %v1184_v54 = vpop.permute.xlu0 %1183  ;;  %v2415_v53 = vunpack.c.0.s8 %v2414_v35 }
 0x173   : > { %v997_v52 = vpop.permute.xlu1 %996  ;;  %1268 = vst.msk [vmem:[#allocation3 + $0x60] sm:$0xff] %vm1255_vm7, %v1184_v54  ;;  %v7526_v54 = vshrl.u32 %v2416_v50, 7 }
 0x174   : > { %1078 = vst.msk [vmem:[#allocation3 + $0x78] sm:$0xff] %vm1062_vm6, %v997_v52  ;;  %817 = vrot.lane.b32.xlu0 %v7363_v43, %s6543_s27 }
 0x175   : > { %815 = vrot.lane.b32.xlu1 %v7291_v17, %s6543_s27  ;;  %v7448_v17 = vld [vmem:[#allocation2 + $0x138] sm:$0xff] }
 0x176   : > { %v1188_v58 = vpop.permute.xlu0 %1187 }
 0x177   : > { %v1186_v57 = vpop.permute.xlu1 %1185  ;;  %1270 = vst.msk [vmem:[#allocation3 + $0x70] sm:$0xff] %vm1255_vm7, %v1188_v58  ;;  %v7531_v58 = vld [vmem:[%s8965_s2] ss:$0 sm:$0xff] }
 0x178   : > { %1269 = vst.msk [vmem:[#allocation3 + $0x68] sm:$0xff] %vm1255_vm7, %v1186_v57  ;;  %1006 = vrot.lane.b32.xlu0 %v7321_v42, %s6544_s28 }
 0x179   : > { %819 = vrot.lane.b32.xlu1 %v7373_v46, %s6543_s27 }
 0x17a   : > { %v1377_v61 = vpop.permute.xlu0 %1376 }
 0x17b   : > { %v1190_v59 = vpop.permute.xlu1 %1189  ;;  %1461 = vst.msk [vmem:[#allocation3 + $0x60] sm:$0xff] %vm1448_vm8, %v1377_v61 }
 0x17c   : > { %1271 = vst.msk [vmem:[#allocation3 + $0x78] sm:$0xff] %vm1255_vm7, %v1190_v59  ;;  %1010 = vrot.lane.b32.xlu0 %v924_v60, %s6544_s28  ;;  %v7533_v59 = vld [vmem:[#allocation2 + $0x150] sm:$0xff] }
 0x17d   : > { %1008 = vrot.lane.b32.xlu1 %v7329_v22, %s6544_s28 }
 0x17e   : > { %v1381_v3 = vpop.permute.xlu0 %1380 }
 0x17f   : > { %v1379_v2 = vpop.permute.xlu1 %1378  ;;  %1463 = vst.msk [vmem:[#allocation3 + $0x70] sm:$0xff] %vm1448_vm8, %v1381_v3 }
 0x180   : > { %1462 = vst.msk [vmem:[#allocation3 + $0x68] sm:$0xff] %vm1448_vm8, %v1379_v2  ;;  %1199 = vrot.lane.b32.xlu0 %v7337_v26, %s6545_s29  ;;  %v7541_v2 = vsub.s32 %v2415_v53, %v7526_v54 }
 0x181   : > { %1012 = vrot.lane.b32.xlu1 %v925_v62, %s6544_s28 }
 0x182   : > { %v1571_v6 = vpop.permute.xlu0 %1570 }
 0x183   : > { %v1383_v4 = vpop.permute.xlu1 %1382  ;;  %1655 = vst.msk [vmem:[#allocation3 + $0x60] sm:$0xff] %vm1642_vm9, %v1571_v6 }
 0x184   : > { %1464 = vst.msk [vmem:[#allocation3 + $0x78] sm:$0xff] %vm1448_vm8, %v1383_v4  ;;  %1203 = vrot.lane.b32.xlu0 %v7413_v5, %s6545_s29  ;;  %v7545_v4 = vld [vmem:[#allocation2 + $0x158] sm:$0xff] }
 0x185   : > { %1201 = vrot.lane.b32.xlu1 %v7345_v29, %s6545_s29 }
 0x186   : > { %v1575_v63 = vpop.permute.xlu0 %1574 }
 0x187   : > { %v1573_v8 = vpop.permute.xlu1 %1572  ;;  %1657 = vst.msk [vmem:[#allocation3 + $0x70] sm:$0xff] %vm1642_vm9, %v1575_v63 }
 0x188   : > { %1656 = vst.msk [vmem:[#allocation3 + $0x68] sm:$0xff] %vm1642_vm9, %v1573_v8  ;;  %1392 = vrot.lane.b32.xlu0 %v7363_v43, %s6546_s14 }
 0x189   : > { %1205 = vrot.lane.b32.xlu1 %v7421_v7, %s6545_s29 }
 0x18a   : > { %v1764_v1 = vpop.permute.xlu0 %1763 }
 0x18b   : > { %v1577_v9 = vpop.permute.xlu1 %1576  ;;  %1848 = vst.msk [vmem:[#allocation3 + $0x60] sm:$0xff] %vm1835_vm10, %v1764_v1 }
 0x18c   : > { %1658 = vst.msk [vmem:[#allocation3 + $0x78] sm:$0xff] %vm1642_vm9, %v1577_v9  ;;  %1396 = vrot.lane.b32.xlu0 %v7429_v10, %s6546_s14 }
 0x18d   : > { %1394 = vrot.lane.b32.xlu1 %v7373_v46, %s6546_s14  ;;  %v478_v46 = vld [vmem:[#allocation2 + $0x138] sm:$0xff] }
 0x18e   : > { %v1768_v15 = vpop.permute.xlu0 %1767  ;;  %510 = vst.msk [vmem:[#allocation3 + $0xd0] sm:$0xff] %vm331_vm0, %v478_v46 }
 0x18f   : > { %v1766_v14 = vpop.permute.xlu1 %1765  ;;  %1850 = vst.msk [vmem:[#allocation3 + $0x70] sm:$0xff] %vm1835_vm10, %v1768_v15 }
 0x190   : > { %1849 = vst.msk [vmem:[#allocation3 + $0x68] sm:$0xff] %vm1835_vm10, %v1766_v14  ;;  %1586 = vrot.lane.b32.xlu0 %v924_v60, %s8982_s16 }
 0x191   : > { %1398 = vrot.lane.b32.xlu1 %v7439_v12, %s6546_s14 }
 0x192   : > { %v1957_v18 = vpop.permute.xlu0 %1956 }
 0x193   : > { %v1770_v16 = vpop.permute.xlu1 %1769  ;;  %2041 = vst.msk [vmem:[#allocation3 + $0x60] sm:$0xff] %vm2028_vm11, %v1957_v18 }
 0x194   : > { %1851 = vst.msk [vmem:[#allocation3 + $0x78] sm:$0xff] %vm1835_vm10, %v1770_v16  ;;  %1590 = vrot.lane.b32.xlu0 %v7448_v17, %s8982_s16 }
 0x195   : > { %1588 = vrot.lane.b32.xlu1 %v925_v62, %s8982_s16 }
 0x196   : > { %v613_v20 = vpop.permute.xlu0 %612 }
 0x197   : > { %v1959_v41 = vpop.permute.xlu1 %1958  ;;  %693 = vst.msk [vmem:[#allocation3 + $0x80] sm:$0xff] %vm8978_vm4, %v613_v20 }
 0x198   : > { %2042 = vst.msk [vmem:[#allocation3 + $0x68] sm:$0xff] %vm2028_vm11, %v1959_v41  ;;  %1779 = vrot.lane.b32.xlu0 %v7413_v5, %s6548_s17 }
 0x199   : > { %1592 = vrot.lane.b32.xlu1 %v7455_v19, %s8982_s16 }
 0x19a   : > { %v1961_v22 = vpop.permute.xlu0 %1960  ;;  %v2073_v23 = vld [vmem:[#allocation3 + $0x60] sm:$0xff] }
 0x19b   : > { %v615_v42 = vpop.permute.xlu1 %614  ;;  %2043 = vst.msk [vmem:[#allocation3 + $0x70] sm:$0xff] %vm2028_vm11, %v1961_v22 }
 0x19c   : > { %694 = vst.msk [vmem:[#allocation3 + $0x88] sm:$0xff] %vm8978_vm4, %v615_v42  ;;  %1783 = vrot.lane.b32.xlu0 %v7463_v21, %s6548_s17 }
 0x19d   : > { %1781 = vrot.lane.b32.xlu1 %v7421_v7, %s6548_s17 }
 0x19e   : > { %v617_v27 = vpop.permute.xlu0 %616 }
 0x19f   : > { %v1963_v25 = vpop.permute.xlu1 %1962  ;;  %v2074_v26 = vld [vmem:[#allocation3 + $0x68] sm:$0xff]  ;;  %695 = vst.msk [vmem:[#allocation3 + $0x90] sm:$0xff] %vm8978_vm4, %v617_v27 }
 0x1a0   : > { %2044 = vst.msk [vmem:[#allocation3 + $0x78] sm:$0xff] %vm2028_vm11, %v1963_v25  ;;  %v2099_v28 = vpack.c.bf16 %v2074_v26, %v2073_v23  ;;  %1972 = vrot.lane.b32.xlu0 %v7429_v10, %s6549_s23 }
 0x1a1   : > { %1785 = vrot.lane.b32.xlu1 %v7471_v24, %s6548_s17 }
 0x1a2   : > { %6319 = vmatprep.mubr.msk.bf16.mxu0 %vm8976_vm12, %v2099_v28  ;;  %v806_v30 = vpop.permute.xlu0 %805  ;;  %v2075_v31 = vld [vmem:[#allocation3 + $0x70] sm:$0xff] }
 0x1a3   : > { %v619_v29 = vpop.permute.xlu1 %618  ;;  %886 = vst.msk [vmem:[#allocation3 + $0x80] sm:$0xff] %vm869_vm5, %v806_v30 }
 0x1a4   : > { %696 = vst.msk [vmem:[#allocation3 + $0x98] sm:$0xff] %vm8978_vm4, %v619_v29  ;;  %628 = vrot.lane.b32.xlu0 %v7413_v5, %s6542_s26 }
 0x1a5   : > { %1974 = vrot.lane.b32.xlu1 %v7439_v12, %s6549_s23 }
 0x1a6   : > { %v810_v37 = vpop.permute.xlu0 %809 }
 0x1a7   : > { %v808_v32 = vpop.permute.xlu1 %807  ;;  %v2076_v33 = vld [vmem:[#allocation3 + $0x78] sm:$0xff]  ;;  %888 = vst.msk [vmem:[#allocation3 + $0x90] sm:$0xff] %vm869_vm5, %v810_v37 }
 0x1a8   : > { %887 = vst.msk [vmem:[#allocation3 + $0x88] sm:$0xff] %vm869_vm5, %v808_v32  ;;  %v2100_v55 = vpack.c.bf16 %v2076_v33, %v2075_v31  ;;  %1976 = vrot.lane.b32.xlu0 %v7486_v36, %s6549_s23  ;;  %v7578_v32 = vld [vmem:[#allocation2 + $0x159] sm:$0xff] }
 0x1a9   : > { %630 = vrot.lane.b32.xlu1 %v7421_v7, %s6542_s26 }
 0x1aa   : > { %6320 = vmatmul.mubr.msk.bf16.gmra.mrb[12].mxu0 %vm8976_vm12, %v2100_v55  ;;  %v999_v39 = vpop.permute.xlu0 %998 }
 0x1ab   : > { %v812_v56 = vpop.permute.xlu1 %811  ;;  %1079 = vst.msk [vmem:[#allocation3 + $0x80] sm:$0xff] %vm1062_vm6, %v999_v39 }
 0x1ac   : > { %889 = vst.msk [vmem:[#allocation3 + $0x98] sm:$0xff] %vm869_vm5, %v812_v56  ;;  %632 = vrot.lane.b32.xlu0 %v7463_v21, %s6542_s26 }
 0x1ad   : > { %1978 = vrot.lane.b32.xlu1 %v7495_v38, %s6549_s23 }
 0x1ae   : > { %v1003_v43 = vpop.permute.xlu0 %1002 }
 0x1af   : > { %v1001_v40 = vpop.permute.xlu1 %1000  ;;  %1081 = vst.msk [vmem:[#allocation3 + $0x90] sm:$0xff] %vm1062_vm6, %v1003_v43 }
 0x1b0   : > { %1080 = vst.msk [vmem:[#allocation3 + $0x88] sm:$0xff] %vm1062_vm6, %v1001_v40  ;;  %821 = vrot.lane.b32.xlu0 %v7429_v10, %s6543_s27 }
 0x1b1   : > { %634 = vrot.lane.b32.xlu1 %v7471_v24, %s6542_s26 }
 0x1b2   : > { %v1192_v34 = vpop.permute.xlu0 %1191 }
 0x1b3   : > { %v1005_v47 = vpop.permute.xlu1 %1004  ;;  %1272 = vst.msk [vmem:[#allocation3 + $0x80] sm:$0xff] %vm1255_vm7, %v1192_v34 }
 0x1b4   : > { %1082 = vst.msk [vmem:[#allocation3 + $0x98] sm:$0xff] %vm1062_vm6, %v1005_v47  ;;  %825 = vrot.lane.b32.xlu0 %v7486_v36, %s6543_s27 }
 0x1b5   : > { %823 = vrot.lane.b32.xlu1 %v7439_v12, %s6543_s27 }
 0x1b6   : > { %v1196_v52 = vpop.permute.xlu0 %1195 }
 0x1b7   : > { %v1194_v51 = vpop.permute.xlu1 %1193  ;;  %1274 = vst.msk [vmem:[#allocation3 + $0x90] sm:$0xff] %vm1255_vm7, %v1196_v52 }
 0x1b8   : > { %1273 = vst.msk [vmem:[#allocation3 + $0x88] sm:$0xff] %vm1255_vm7, %v1194_v51  ;;  %1014 = vrot.lane.b32.xlu0 %v7448_v17, %s6544_s28 }
 0x1b9   : > { %827 = vrot.lane.b32.xlu1 %v7495_v38, %s6543_s27 }
 0x1ba   : > { %v1385_v60 = vpop.permute.xlu0 %1384 }
 0x1bb   : > { %v1198_v57 = vpop.permute.xlu1 %1197  ;;  %1465 = vst.msk [vmem:[#allocation3 + $0x80] sm:$0xff] %vm1448_vm8, %v1385_v60 }
 0x1bc   : > { %1275 = vst.msk [vmem:[#allocation3 + $0x98] sm:$0xff] %vm1255_vm7, %v1198_v57  ;;  %1018 = vrot.lane.b32.xlu0 %v7533_v59, %s6544_s28 }
 0x1bd   : > { %1016 = vrot.lane.b32.xlu1 %v7455_v19, %s6544_s28  ;;  %v6309_v61 = vpop.f32.mrb[0].mxu0  ;;  %v7562_v19 = vld [vmem:[#allocation2 + $0x151] sm:$0xff] }
 0x1be   : > { %v2230_v62 = vadd.f32 %v6309_v61, %v7531_v58  ;;  %v2221_v3 = vpop.f32.mrb[1].mxu0  ;;  %v1389_v10 = vpop.permute.xlu0 %1388 }
 0x1bf   : > { %v2222_v5 = vadd.f32 %v7531_v58, %v2221_v3  ;;  %v1387_v6 = vpop.permute.xlu1 %1386  ;;  %v6310_v7 = vpop.f32.mrb[2].mxu0  ;;  %1467 = vst.msk [vmem:[#allocation3 + $0x90] sm:$0xff] %vm1448_vm8, %v1389_v10  ;;  %v7590_v3 = vld [vmem:[#allocation2 + $0x152] sm:$0xff] }
 0x1c0   : > { %v2350_v8 = vmax.f32 %v2230_v62, 0.0  ;;  %1466 = vst.msk [vmem:[#allocation3 + $0x88] sm:$0xff] %vm1448_vm8, %v1387_v6  ;;  %v2233_v63 = vadd.f32 %v6310_v7, %v7531_v58  ;;  %v2224_v9 = vpop.f32.mrb[3].mxu0  ;;  %1207 = vrot.lane.b32.xlu0 %v7463_v21, %s6545_s29 }
 0x1c1   : > { %v2348_v1 = vmax.f32 %v2222_v5, 0.0  ;;  %v2225_v11 = vadd.f32 %v7531_v58, %v2224_v9  ;;  %1020 = vrot.lane.b32.xlu1 %v7545_v4, %s6544_s28 }
 0x1c2   : > { %v2446_v12 = vcombine.high %v2350_v8, %v2350_v8  ;;  %v2453_v13 = vrot.slane %v2350_v8, %v7541_v2  ;;  %v7555_v14 = vmax.f32 %v2233_v63, 0.0  ;;  %v1579_v23 = vpop.permute.xlu0 %1578 }
 0x1c3   : > { %v2412_v15 = vcombine.high %v2348_v1, %v2348_v1  ;;  %v2419_v16 = vrot.slane %v2348_v1, %v7541_v2  ;;  %v7560_v17 = vmax.f32 %v2225_v11, 0.0  ;;  %v1391_v18 = vpop.permute.xlu1 %1390  ;;  %1659 = vst.msk [vmem:[#allocation3 + $0x80] sm:$0xff] %vm1642_vm9, %v1579_v23 }
 0x1c4   : > { %v2460_v41 = vrot.slane %v2446_v12, %v7541_v2  ;;  %v2461_v20 = vcombine.high %v2453_v13, %v2453_v13  ;;  %v3141_v42 = vsel %vm3084_vm13, %v2453_v13, -inf  ;;  %v2463_v22 = vcombine.high %v7555_v14, %v7555_v14  ;;  %1468 = vst.msk [vmem:[#allocation3 + $0x98] sm:$0xff] %vm1448_vm8, %v1391_v18  ;;  %1211 = vrot.lane.b32.xlu0 %v7562_v19, %s6545_s29 }
 0x1c5   : > { %v3142_v21 = vrot.slane %v3141_v42, 4  ;;  %v2426_v25 = vrot.slane %v2412_v15, %v7541_v2  ;;  %v2427_v26 = vcombine.high %v2419_v16, %v2419_v16  ;;  %v3085_v27 = vsel %vm3084_vm13, %v2419_v16, -inf  ;;  %1209 = vrot.lane.b32.xlu1 %v7471_v24, %s6545_s29  ;;  %v7598_v16 = vld [vmem:[#allocation2 + $0x15a] sm:$0xff] }
 0x1c6   : > { %v2462_v28 = vcombine.high %v2460_v41, %v2460_v41  ;;  %v3148_v29 = vsel %vm3084_vm13, %v2461_v20, -inf  ;;  %v3155_v30 = vsel %vm3084_vm13, %v2460_v41, -inf  ;;  %v3086_v31 = vrot.slane %v3085_v27, 4  ;;  %v1583_v45 = vpop.permute.xlu0 %1582 }
 0x1c7   : > { %v3143_v33 = vmax.f32 %v3141_v42, %v3142_v21  ;;  %v3149_v37 = vrot.slane %v3148_v29, 4  ;;  %v3156_v55 = vrot.slane %v3155_v30, 4  ;;  %v2428_v56 = vcombine.high %v2426_v25, %v2426_v25  ;;  %v1581_v39 = vpop.permute.xlu1 %1580  ;;  %1661 = vst.msk [vmem:[#allocation3 + $0x90] sm:$0xff] %vm1642_vm9, %v1583_v45  ;;  %v7610_v45 = vld [vmem:[#allocation2 + $0x168] sm:$0xff] }
 0x1c8   : > { %v3162_v40 = vsel %vm3084_vm13, %v2462_v28, -inf  ;;  %v3087_v43 = vmax.f32 %v3085_v27, %v3086_v31  ;;  %v3092_v24 = vsel %vm3084_vm13, %v2427_v26, -inf  ;;  %v3099_v44 = vsel %vm3084_vm13, %v2426_v25, -inf  ;;  %1660 = vst.msk [vmem:[#allocation3 + $0x88] sm:$0xff] %vm1642_vm9, %v1581_v39  ;;  %1400 = vrot.lane.b32.xlu0 %v7486_v36, %s6546_s14 }
 0x1c9   : > { %v3144_v46 = vrot.slane %v3143_v33, 2  ;;  %v3150_v47 = vmax.f32 %v3148_v29, %v3149_v37  ;;  %v3157_v48 = vmax.f32 %v3155_v30, %v3156_v55  ;;  %v3163_v34 = vrot.slane %v3162_v40, 4  ;;  %1213 = vrot.lane.b32.xlu1 %v7578_v32, %s6545_s29 }
 0x1ca   : > { %v3088_v49 = vrot.slane %v3087_v43, 2  ;;  %v3093_v35 = vrot.slane %v3092_v24, 4  ;;  %v3100_v51 = vrot.slane %v3099_v44, 4  ;;  %v3106_v52 = vsel %vm3084_vm13, %v2428_v56, -inf  ;;  %v1772_v63 = vpop.permute.xlu0 %1771 }
 0x1cb   : > { %v3145_v53 = vmax.f32 %v3143_v33, %v3144_v46  ;;  %v3151_v57 = vrot.slane %v3150_v47, 2  ;;  %v3158_v60 = vrot.slane %v3157_v48, 2  ;;  %v3164_v61 = vmax.f32 %v3162_v40, %v3163_v34  ;;  %v1585_v62 = vpop.permute.xlu1 %1584  ;;  %1852 = vst.msk [vmem:[#allocation3 + $0x80] sm:$0xff] %vm1835_vm10, %v1772_v63 }
 0x1cc   : > { %v3089_v5 = vmax.f32 %v3087_v43, %v3088_v49  ;;  %v3094_v6 = vmax.f32 %v3092_v24, %v3093_v35  ;;  %v3101_v7 = vmax.f32 %v3099_v44, %v3100_v51  ;;  %v3107_v8 = vrot.slane %v3106_v52, 4  ;;  %1662 = vst.msk [vmem:[#allocation3 + $0x98] sm:$0xff] %vm1642_vm9, %v1585_v62  ;;  %1404 = vrot.lane.b32.xlu0 %v7590_v3, %s6546_s14 }
 0x1cd   : > { %v3146_v9 = vrot.slane %v3145_v53, 1  ;;  %v3152_v10 = vmax.f32 %v3150_v47, %v3151_v57  ;;  %v3159_v1 = vmax.f32 %v3157_v48, %v3158_v60  ;;  %v3165_v11 = vrot.slane %v3164_v61, 2  ;;  %1402 = vrot.lane.b32.xlu1 %v7495_v38, %s6546_s14 }
 0x1ce   : > { %v3090_v36 = vrot.slane %v3089_v5, 1  ;;  %v3095_v12 = vrot.slane %v3094_v6, 2  ;;  %v3102_v13 = vrot.slane %v3101_v7, 2  ;;  %v3108_v15 = vmax.f32 %v3106_v52, %v3107_v8  ;;  %v1776_v27 = vpop.permute.xlu0 %1775 }
 0x1cf   : > { %v3147_v18 = vmax.f32 %v3145_v53, %v3146_v9  ;;  %v3153_v41 = vrot.slane %v3152_v10, 1  ;;  %v3160_v20 = vrot.slane %v3159_v1, 1  ;;  %v3166_v42 = vmax.f32 %v3164_v61, %v3165_v11  ;;  %v1774_v23 = vpop.permute.xlu1 %1773  ;;  %1854 = vst.msk [vmem:[#allocation3 + $0x90] sm:$0xff] %vm1835_vm10, %v1776_v27 }
 0x1d0   : > { %v3091_v21 = vmax.f32 %v3089_v5, %v3090_v36  ;;  %v3096_v25 = vmax.f32 %v3094_v6, %v3095_v12  ;;  %v3103_v26 = vmax.f32 %v3101_v7, %v3102_v13  ;;  %v3109_v38 = vrot.slane %v3108_v15, 2  ;;  %1853 = vst.msk [vmem:[#allocation3 + $0x88] sm:$0xff] %vm1835_vm10, %v1774_v23  ;;  %1594 = vrot.lane.b32.xlu0 %v7533_v59, %s8982_s16 }
 0x1d1   : > { %v3154_v28 = vmax.f32 %v3152_v10, %v3153_v41  ;;  %v3161_v29 = vmax.f32 %v3159_v1, %v3160_v20  ;;  %v3167_v30 = vrot.slane %v3166_v42, 1  ;;  %v3983_v31 = vsel %vm3981_vm14, %v3147_v18, -inf  ;;  %1406 = vrot.lane.b32.xlu1 %v7598_v16, %s6546_s14 }
 0x1d2   : > { %v3097_v33 = vrot.slane %v3096_v25, 1  ;;  %v3104_v37 = vrot.slane %v3103_v26, 1  ;;  %v3110_v55 = vmax.f32 %v3108_v15, %v3109_v38  ;;  %v3982_v56 = vsel %vm3981_vm14, %v3091_v21, -inf  ;;  %v1965_v49 = vpop.permute.xlu0 %1964 }
 0x1d3   : > { %v3168_v39 = vmax.f32 %v3166_v42, %v3167_v30  ;;  %v3986_v40 = vsel %vm3981_vm14, %v3154_v28, -inf  ;;  %v3989_v43 = vsel %vm3981_vm14, %v3161_v29, -inf  ;;  %v3984_v24 = vmax.f32 %v3982_v56, %v3983_v31  ;;  %v1778_v44 = vpop.permute.xlu1 %1777  ;;  %2045 = vst.msk [vmem:[#allocation3 + $0x80] sm:$0xff] %vm2028_vm11, %v1965_v49 }
 0x1d4   : > { %v3098_v46 = vmax.f32 %v3096_v25, %v3097_v33  ;;  %v3105_v47 = vmax.f32 %v3103_v26, %v3104_v37  ;;  %v3111_v48 = vrot.slane %v3110_v55, 1  ;;  %v2470_v34 = vrot.slane %v7555_v14, %v7541_v2  ;;  %1855 = vst.msk [vmem:[#allocation3 + $0x98] sm:$0xff] %vm1835_vm10, %v1778_v44  ;;  %1598 = vrot.lane.b32.xlu0 %v7610_v45, %s8982_s16  ;;  %v7633_v14 = vld [vmem:[#allocation2 + $0x170] sm:$0xff] }
 0x1d5   : > { %v7616_v59 = vsel %vm3981_vm14, %v3168_v39, -inf  ;;  %v2477_v35 = vrot.slane %v2463_v22, %v7541_v2  ;;  %v2429_v51 = vcombine.high %v7560_v17, %v7560_v17  ;;  %v2436_v52 = vrot.slane %v7560_v17, %v7541_v2  ;;  %1596 = vrot.lane.b32.xlu1 %v7545_v4, %s8982_s16  ;;  %v7655_v25 = vld [vmem:[#allocation2 + $0x169] sm:$0xff] }
 0x1d6   : > { %v3112_v53 = vmax.f32 %v3110_v55, %v3111_v48  ;;  %v3985_v57 = vsel %vm3981_vm14, %v3098_v46, -inf  ;;  %v3988_v60 = vsel %vm3981_vm14, %v3105_v47, -inf  ;;  %v2478_v61 = vcombine.high %v2470_v34, %v2470_v34  ;;  %v621_v9 = vpop.permute.xlu0 %620 }
 0x1d7   : > { %v3987_v22 = vmax.f32 %v3985_v57, %v3986_v40  ;;  %v3990_v62 = vmax.f32 %v3988_v60, %v3989_v43  ;;  %v2479_v5 = vcombine.high %v2477_v35, %v2477_v35  ;;  %v3169_v17 = vsel %vm3084_vm13, %v2470_v34, -inf  ;;  %v1967_v6 = vpop.permute.xlu1 %1966  ;;  %697 = vst.msk [vmem:[#allocation3 + $0xa0] sm:$0xff] %vm8978_vm4, %v621_v9  ;;  %v7667_v43 = vld [vmem:[#allocation2 + $0x171] sm:$0xff] }
 0x1d8   : > { %v7637_v7 = vsel %vm3981_vm14, %v3112_v53, -inf  ;;  %v3170_v4 = vrot.slane %v3169_v17, 4  ;;  %v3176_v8 = vsel %vm3084_vm13, %v2478_v61, -inf  ;;  %v3183_v63 = vsel %vm3084_vm13, %v2477_v35, -inf  ;;  %2046 = vst.msk [vmem:[#allocation3 + $0x88] sm:$0xff] %vm2028_vm11, %v1967_v6  ;;  %1787 = vrot.lane.b32.xlu0 %v7562_v19, %s6548_s17 }
 0x1d9   : > { %v3993_v10 = vmax.f32 %v7637_v7, %v7616_v59  ;;  %v4259_v1 = vsel %vm4258_vm15, %v3987_v22, %v3984_v24  ;;  %v3177_v11 = vrot.slane %v3176_v8, 4  ;;  %v3184_v36 = vrot.slane %v3183_v63, 4  ;;  %1600 = vrot.lane.b32.xlu1 %v7633_v14, %s8982_s16 }
 0x1da   : > { %v7649_v12 = vsel %vm8977_vm1, %v3990_v62, %v4259_v1  ;;  %v3171_v13 = vmax.f32 %v3169_v17, %v3170_v4  ;;  %v3190_v15 = vsel %vm3084_vm13, %v2479_v5, -inf  ;;  %v2443_v18 = vrot.slane %v2429_v51, %v7541_v2  ;;  %v1969_v29 = vpop.permute.xlu0 %1968 }
 0x1db   : > { %v3178_v41 = vmax.f32 %v3176_v8, %v3177_v11  ;;  %v3185_v20 = vmax.f32 %v3183_v63, %v3184_v36  ;;  %v3191_v42 = vrot.slane %v3190_v15, 4  ;;  %v2444_v23 = vcombine.high %v2436_v52, %v2436_v52  ;;  %v623_v21 = vpop.permute.xlu1 %622  ;;  %2047 = vst.msk [vmem:[#allocation3 + $0x90] sm:$0xff] %vm2028_vm11, %v1969_v29  ;;  %v2077_v36 = vld [vmem:[#allocation3 + $0x80] sm:$0xff] }
 0x1dc   : > { %v3172_v26 = vrot.slane %v3171_v13, 2  ;;  %v2445_v38 = vcombine.high %v2443_v18, %v2443_v18  ;;  %v3113_v27 = vsel %vm3084_vm13, %v2436_v52, -inf  ;;  %v3127_v28 = vsel %vm3084_vm13, %v2443_v18, -inf  ;;  %698 = vst.msk [vmem:[#allocation3 + $0xa8] sm:$0xff] %vm8978_vm4, %v623_v21  ;;  %1791 = vrot.lane.b32.xlu0 %v7655_v25, %s6548_s17 }
 0x1dd   : > { %v3179_v30 = vrot.slane %v3178_v41, 2  ;;  %v3186_v31 = vrot.slane %v3185_v20, 2  ;;  %v3192_v33 = vmax.f32 %v3190_v15, %v3191_v42  ;;  %v3114_v37 = vrot.slane %v3113_v27, 4  ;;  %1789 = vrot.lane.b32.xlu1 %v7578_v32, %s6548_s17 }
 0x1de   : > { %v3173_v55 = vmax.f32 %v3171_v13, %v3172_v26  ;;  %v3120_v56 = vsel %vm3084_vm13, %v2444_v23, -inf  ;;  %v3128_v39 = vrot.slane %v3127_v28, 4  ;;  %v3134_v40 = vsel %vm3084_vm13, %v2445_v38, -inf  ;;  %v625_v52 = vpop.permute.xlu0 %624 }
 0x1df   : > { %v3180_v24 = vmax.f32 %v3178_v41, %v3179_v30  ;;  %v3187_v44 = vmax.f32 %v3185_v20, %v3186_v31  ;;  %v3193_v46 = vrot.slane %v3192_v33, 2  ;;  %v3115_v47 = vmax.f32 %v3113_v27, %v3114_v37  ;;  %v1971_v48 = vpop.permute.xlu1 %1970  ;;  %699 = vst.msk [vmem:[#allocation3 + $0xb0] sm:$0xff] %vm8978_vm4, %v625_v52  ;;  %v2078_v13 = vld [vmem:[#allocation3 + $0x88] sm:$0xff]  ;;  %v7688_v37 = vld [vmem:[#allocation2 + $0x16a] sm:$0xff] }
 0x1e0   : > { %v3174_v34 = vrot.slane %v3173_v55, 1  ;;  %v3121_v49 = vrot.slane %v3120_v56, 4  ;;  %v3129_v35 = vmax.f32 %v3127_v28, %v3128_v39  ;;  %v3135_v51 = vrot.slane %v3134_v40, 4  ;;  %2048 = vst.msk [vmem:[#allocation3 + $0x98] sm:$0xff] %vm2028_vm11, %v1971_v48  ;;  %1980 = vrot.lane.b32.xlu0 %v7590_v3, %s6549_s23 }
 0x1e1   : > { %v3181_v53 = vrot.slane %v3180_v24, 1  ;;  %v3188_v57 = vrot.slane %v3187_v44, 1  ;;  %v3194_v60 = vmax.f32 %v3192_v33, %v3193_v46  ;;  %v3116_v61 = vrot.slane %v3115_v47, 2  ;;  %1793 = vrot.lane.b32.xlu1 %v7667_v43, %s6548_s17 }
 0x1e2   : > { %v3122_v22 = vmax.f32 %v3120_v56, %v3121_v49  ;;  %v3130_v62 = vrot.slane %v3129_v35, 2  ;;  %v3136_v5 = vmax.f32 %v3134_v40, %v3135_v51  ;;  %v3175_v17 = vmax.f32 %v3173_v55, %v3174_v34  ;;  %v814_v15 = vpop.permute.xlu0 %813  ;;  %v2079_v42 = vld [vmem:[#allocation3 + $0x90] sm:$0xff] }
 0x1e3   : > { %v3189_v6 = vmax.f32 %v3187_v44, %v3188_v57  ;;  %v3195_v4 = vrot.slane %v3194_v60, 1  ;;  %v3117_v8 = vmax.f32 %v3115_v47, %v3116_v61  ;;  %v627_v63 = vpop.permute.xlu1 %626  ;;  %v3182_v18 = vmax.f32 %v3180_v24, %v3181_v53  ;;  %890 = vst.msk [vmem:[#allocation3 + $0xa0] sm:$0xff] %vm869_vm5, %v814_v15  ;;  %v7702_v47 = vld [vmem:[#allocation2 + $0x172] sm:$0xff] }
 0x1e4   : > { %v3123_v9 = vrot.slane %v3122_v22, 2  ;;  %v3131_v1 = vmax.f32 %v3129_v35, %v3130_v62  ;;  %v3137_v11 = vrot.slane %v3136_v5, 2  ;;  %700 = vst.msk [vmem:[#allocation3 + $0xb8] sm:$0xff] %vm8978_vm4, %v627_v63  ;;  %v4263_v38 = vsel %vm8975_vm2, %v3993_v10, %v7649_v12  ;;  %636 = vrot.lane.b32.xlu0 %v7562_v19, %s6542_s26  ;;  %v480_v62 = vld [vmem:[#allocation2 + $0x150] sm:$0xff] }
 0x1e5   : > { %v3196_v41 = vmax.f32 %v3194_v60, %v3195_v4  ;;  %v3118_v20 = vrot.slane %v3117_v8, 1  ;;  %1982 = vrot.lane.b32.xlu1 %v7598_v16, %s6549_s23  ;;  %v3995_v27 = vsel %vm3981_vm14, %v3175_v17, -inf  ;;  %v4001_v28 = vsel %vm3981_vm14, %v3189_v6, -inf  ;;  %512 = vst.msk [vmem:[#allocation3 + $0xe0] sm:$0xff] %vm331_vm0, %v480_v62  ;;  %v482_v6 = vld [vmem:[#allocation2 + $0x168] sm:$0xff]  ;;  %v483_v4 = vld [vmem:[#allocation2 + $0x170] sm:$0xff] }
 0x1e6   : > { %v3124_v23 = vmax.f32 %v3122_v22, %v3123_v9  ;;  %v3132_v21 = vrot.slane %v3131_v1, 1  ;;  %v3138_v26 = vmax.f32 %v3136_v5, %v3137_v11  ;;  %v2101_v30 = vpack.c.bf16 %v2078_v13, %v2077_v36  ;;  %v818_v59 = vpop.permute.xlu0 %817  ;;  %v481_v5 = vld [vmem:[#allocation2 + $0x158] sm:$0xff]  ;;  %514 = vst.msk [vmem:[#allocation3 + $0xf0] sm:$0xff] %vm331_vm0, %v482_v6  ;;  %515 = vst.msk [vmem:[#allocation3 + $0xf8] sm:$0xff] %vm331_vm0, %v483_v4  ;;  %v7739_v36 = vld [vmem:[#allocation2 + $0x180] sm:$0xff] }
 0x1e7   : > { %v3119_v29 = vmax.f32 %v3117_v8, %v3118_v20  ;;  %v816_v31 = vpop.permute.xlu1 %815  ;;  %v2080_v33 = vld [vmem:[#allocation3 + $0x98] sm:$0xff]  ;;  %v3998_v10 = vsel %vm3981_vm14, %v3182_v18, -inf  ;;  %v4004_v19 = vsel %vm3981_vm14, %v3196_v41, -inf  ;;  %892 = vst.msk [vmem:[#allocation3 + $0xb0] sm:$0xff] %vm869_vm5, %v818_v59  ;;  %vm4266_vm2 = vcmask 1045509  }
 0x1e8   : > { %v3125_v55 = vrot.slane %v3124_v23, 1  ;;  %v3133_v56 = vmax.f32 %v3131_v1, %v3132_v21  ;;  %v3139_v39 = vrot.slane %v3138_v26, 1  ;;  %891 = vst.msk [vmem:[#allocation3 + $0xa8] sm:$0xff] %vm869_vm5, %v816_v31  ;;  %v2102_v7 = vpack.c.bf16 %v2080_v33, %v2079_v42  ;;  %6323 = vmatprep.mubr.msk.bf16.mxu0 %vm8976_vm12, %v2101_v30  ;;  %1984 = vrot.lane.b32.xlu0 %v7688_v37, %s6549_s23 }
 0x1e9   : > { %v3994_v12 = vsel %vm3981_vm14, %v3119_v29, -inf  ;;  %638 = vrot.lane.b32.xlu1 %v7578_v32, %s6542_s26  ;;  %vm4270_vm1 = vcmask 1047559   ;;  %513 = vst.msk [vmem:[#allocation3 + $0xe8] sm:$0xff] %vm331_vm0, %v481_v5  ;;  %vm8983_vm0 = vcmask 1042434  }
 0x1ea   : > { %v3126_v40 = vmax.f32 %v3124_v23, %v3125_v55  ;;  %v3140_v24 = vmax.f32 %v3138_v26, %v3139_v39  ;;  %v3996_v44 = vmax.f32 %v3994_v12, %v3995_v27  ;;  %v4000_v46 = vsel %vm3981_vm14, %v3133_v56, -inf  ;;  %6324 = vmatmul.mubr.msk.bf16.gmra.mrb[16].mxu0 %vm8976_vm12, %v2102_v7  ;;  %v1007_v51 = vpop.permute.xlu0 %1006 }
 0x1eb   : > { %v4002_v48 = vmax.f32 %v4000_v46, %v4001_v28  ;;  %v820_v34 = vpop.permute.xlu1 %819  ;;  %vm4268_vm12 = vcmask 1046534   ;;  %1083 = vst.msk [vmem:[#allocation3 + $0xa0] sm:$0xff] %vm1062_vm6, %v1007_v51 }
 0x1ec   : > { %v3997_v49 = vsel %vm3981_vm14, %v3126_v40, -inf  ;;  %v4003_v35 = vsel %vm3981_vm14, %v3140_v24, -inf  ;;  %v4265_v32 = vsel %vm4264_vm3, %v3996_v44, %v4263_v38  ;;  %893 = vst.msk [vmem:[#allocation3 + $0xb8] sm:$0xff] %vm869_vm5, %v820_v34  ;;  %640 = vrot.lane.b32.xlu0 %v7655_v25, %s6542_s26 }
 0x1ed   : > { %v3999_v52 = vmax.f32 %v3997_v49, %v3998_v10  ;;  %v4005_v53 = vmax.f32 %v4003_v35, %v4004_v19  ;;  %1986 = vrot.lane.b32.xlu1 %v7702_v47, %s6549_s23  ;;  %v7782_v49 = vld [vmem:[#allocation2 + $0x189] sm:$0xff] }
 0x1ee   : > { %v1011_v22 = vpop.permute.xlu0 %1010 }
 0x1ef   : > { %v4267_v57 = vsel %vm4266_vm2, %v3999_v52, %v4265_v32  ;;  %v1009_v60 = vpop.permute.xlu1 %1008  ;;  %1085 = vst.msk [vmem:[#allocation3 + $0xb0] sm:$0xff] %vm1062_vm6, %v1011_v22 }
 0x1f0   : > { %v4269_v61 = vsel %vm4268_vm12, %v4002_v48, %v4267_v57  ;;  %1084 = vst.msk [vmem:[#allocation3 + $0xa8] sm:$0xff] %vm1062_vm6, %v1009_v60  ;;  %829 = vrot.lane.b32.xlu0 %v7590_v3, %s6543_s27 }
 0x1f1   : > { %v4271_v17 = vsel %vm4270_vm1, %v4005_v53, %v4269_v61  ;;  %642 = vrot.lane.b32.xlu1 %v7667_v43, %s6542_s26  ;;  %s6552_s26 = smov 16  }
 0x1f2   : > { %4330 = vst.msk [vmem:[#allocation4 + $0x11] sm:$0xff] %vm3981_vm14, %v4271_v17  ;;  %v1200_v63 = vpop.permute.xlu0 %1199 }
 0x1f3   : > { %v1013_v8 = vpop.permute.xlu1 %1012  ;;  %1276 = vst.msk [vmem:[#allocation3 + $0xa0] sm:$0xff] %vm1255_vm7, %v1200_v63 }
 0x1f4   : > { %1086 = vst.msk [vmem:[#allocation3 + $0xb8] sm:$0xff] %vm1062_vm6, %v1013_v8  ;;  %833 = vrot.lane.b32.xlu0 %v7688_v37, %s6543_s27 }
 0x1f5   : > { %831 = vrot.lane.b32.xlu1 %v7598_v16, %s6543_s27 }
 0x1f6   : > { %v1204_v3 = vpop.permute.xlu0 %1203 }
 0x1f7   : > { %v1202_v9 = vpop.permute.xlu1 %1201  ;;  %1278 = vst.msk [vmem:[#allocation3 + $0xb0] sm:$0xff] %vm1255_vm7, %v1204_v3 }
 0x1f8   : > { %1277 = vst.msk [vmem:[#allocation3 + $0xa8] sm:$0xff] %vm1255_vm7, %v1202_v9  ;;  %1022 = vrot.lane.b32.xlu0 %v7610_v45, %s6544_s28  ;;  %v7749_v45 = vld [vmem:[#allocation2 + $0x188] sm:$0xff] }
 0x1f9   : > { %835 = vrot.lane.b32.xlu1 %v7702_v47, %s6543_s27  ;;  %v4339_v1 = vld [vmem:[#allocation4 + $0x10] sm:$0xff]  ;;  %s6553_s27 = smov 32  }
 0x1fa   : > { %4347 = vst.msk [vmem:[#allocation5 + $0x10] sm:$0xff] %vm3981_vm14, %v4339_v1  ;;  %v1393_v16 = vpop.permute.xlu0 %1392 }
 0x1fb   : > { %v1206_v11 = vpop.permute.xlu1 %1205  ;;  %1469 = vst.msk [vmem:[#allocation3 + $0xa0] sm:$0xff] %vm1448_vm8, %v1393_v16 }
 0x1fc   : > { %1279 = vst.msk [vmem:[#allocation3 + $0xb8] sm:$0xff] %vm1255_vm7, %v1206_v11  ;;  %1026 = vrot.lane.b32.xlu0 %v7739_v36, %s6544_s28 }
 0x1fd   : > { %1024 = vrot.lane.b32.xlu1 %v7633_v14, %s6544_s28  ;;  %v6313_v13 = vpop.f32.mrb[4].mxu0 }
 0x1fe   : > { %v2246_v15 = vadd.f32 %v6313_v13, %v7531_v58  ;;  %v2237_v18 = vpop.f32.mrb[5].mxu0  ;;  %v1397_v14 = vpop.permute.xlu0 %1396 }
 0x1ff   : > { %v2238_v41 = vadd.f32 %v7531_v58, %v2237_v18  ;;  %v1395_v20 = vpop.permute.xlu1 %1394  ;;  %v6314_v42 = vpop.f32.mrb[6].mxu0  ;;  %1471 = vst.msk [vmem:[#allocation3 + $0xb0] sm:$0xff] %vm1448_vm8, %v1397_v14 }
 0x200   : > { %v2354_v23 = vmax.f32 %v2246_v15, 0.0  ;;  %1470 = vst.msk [vmem:[#allocation3 + $0xa8] sm:$0xff] %vm1448_vm8, %v1395_v20  ;;  %v2249_v21 = vadd.f32 %v6314_v42, %v7531_v58  ;;  %v2240_v26 = vpop.f32.mrb[7].mxu0  ;;  %1215 = vrot.lane.b32.xlu0 %v7655_v25, %s6545_s29  ;;  %v7794_v15 = vld [vmem:[#allocation2 + $0x182] sm:$0xff] }
 0x201   : > { %v2352_v38 = vmax.f32 %v2238_v41, 0.0  ;;  %v2241_v27 = vadd.f32 %v7531_v58, %v2240_v26  ;;  %1028 = vrot.lane.b32.xlu1 %v7749_v45, %s6544_s28  ;;  %v7766_v58 = vld [vmem:[#allocation2 + $0x181] sm:$0xff]  ;;  %s6554_s28 = smov 48  }
 0x202   : > { %v2514_v28 = vcombine.high %v2354_v23, %v2354_v23  ;;  %v2521_v29 = vrot.slane %v2354_v23, %v7541_v2  ;;  %v7759_v30 = vmax.f32 %v2249_v21, 0.0  ;;  %v1587_v19 = vpop.permute.xlu0 %1586 }
 0x203   : > { %v2480_v31 = vcombine.high %v2352_v38, %v2352_v38  ;;  %v2487_v33 = vrot.slane %v2352_v38, %v7541_v2  ;;  %v7764_v55 = vmax.f32 %v2241_v27, 0.0  ;;  %v1399_v56 = vpop.permute.xlu1 %1398  ;;  %1663 = vst.msk [vmem:[#allocation3 + $0xa0] sm:$0xff] %vm1642_vm9, %v1587_v19 }
 0x204   : > { %v2528_v39 = vrot.slane %v2514_v28, %v7541_v2  ;;  %v2529_v59 = vcombine.high %v2521_v29, %v2521_v29  ;;  %v3253_v7 = vsel %vm3084_vm13, %v2521_v29, -inf  ;;  %v2531_v10 = vcombine.high %v7759_v30, %v7759_v30  ;;  %1472 = vst.msk [vmem:[#allocation3 + $0xb8] sm:$0xff] %vm1448_vm8, %v1399_v56  ;;  %1219 = vrot.lane.b32.xlu0 %v7766_v58, %s6545_s29 }
 0x205   : > { %v3254_v25 = vrot.slane %v3253_v7, 4  ;;  %v2494_v12 = vrot.slane %v2480_v31, %v7541_v2  ;;  %v2495_v40 = vcombine.high %v2487_v33, %v2487_v33  ;;  %v3197_v24 = vsel %vm3084_vm13, %v2487_v33, -inf  ;;  %1217 = vrot.lane.b32.xlu1 %v7667_v43, %s6545_s29  ;;  %v7802_v31 = vld [vmem:[#allocation2 + $0x18a] sm:$0xff] }
 0x206   : > { %v2530_v44 = vcombine.high %v2528_v39, %v2528_v39  ;;  %v3260_v46 = vsel %vm3084_vm13, %v2529_v59, -inf  ;;  %v3267_v48 = vsel %vm3084_vm13, %v2528_v39, -inf  ;;  %v3198_v34 = vrot.slane %v3197_v24, 4  ;;  %v1591_v22 = vpop.permute.xlu0 %1590 }
 0x207   : > { %v3255_v35 = vmax.f32 %v3253_v7, %v3254_v25  ;;  %v3261_v32 = vrot.slane %v3260_v46, 4  ;;  %v3268_v51 = vrot.slane %v3267_v48, 4  ;;  %v2496_v52 = vcombine.high %v2494_v12, %v2494_v12  ;;  %v1589_v53 = vpop.permute.xlu1 %1588  ;;  %1665 = vst.msk [vmem:[#allocation3 + $0xb0] sm:$0xff] %vm1642_vm9, %v1591_v22 }
 0x208   : > { %v3274_v57 = vsel %vm3084_vm13, %v2530_v44, -inf  ;;  %v3199_v60 = vmax.f32 %v3197_v24, %v3198_v34  ;;  %v3204_v43 = vsel %vm3084_vm13, %v2495_v40, -inf  ;;  %v3211_v61 = vsel %vm3084_vm13, %v2494_v12, -inf  ;;  %1664 = vst.msk [vmem:[#allocation3 + $0xa8] sm:$0xff] %vm1642_vm9, %v1589_v53  ;;  %1408 = vrot.lane.b32.xlu0 %v7688_v37, %s6546_s14 }
 0x209   : > { %v3256_v62 = vrot.slane %v3255_v35, 2  ;;  %v3262_v5 = vmax.f32 %v3260_v46, %v3261_v32  ;;  %v3269_v17 = vmax.f32 %v3267_v48, %v3268_v51  ;;  %v3275_v6 = vrot.slane %v3274_v57, 4  ;;  %1221 = vrot.lane.b32.xlu1 %v7782_v49, %s6545_s29  ;;  %s6555_s29 = smov 64  }
 0x20a   : > { %v3200_v4 = vrot.slane %v3199_v60, 2  ;;  %v3205_v8 = vrot.slane %v3204_v43, 4  ;;  %v3212_v63 = vrot.slane %v3211_v61, 4  ;;  %v3218_v9 = vsel %vm3084_vm13, %v2496_v52, -inf  ;;  %v1780_v23 = vpop.permute.xlu0 %1779 }
 0x20b   : > { %v3257_v3 = vmax.f32 %v3255_v35, %v3256_v62  ;;  %v3263_v1 = vrot.slane %v3262_v5, 2  ;;  %v3270_v11 = vrot.slane %v3269_v17, 2  ;;  %v3276_v16 = vmax.f32 %v3274_v57, %v3275_v6  ;;  %v1593_v13 = vpop.permute.xlu1 %1592  ;;  %1856 = vst.msk [vmem:[#allocation3 + $0xa0] sm:$0xff] %vm1835_vm10, %v1780_v23 }
 0x20c   : > { %v3201_v18 = vmax.f32 %v3199_v60, %v3200_v4  ;;  %v3206_v41 = vmax.f32 %v3204_v43, %v3205_v8  ;;  %v3213_v20 = vmax.f32 %v3211_v61, %v3212_v63  ;;  %v3219_v42 = vrot.slane %v3218_v9, 4  ;;  %1666 = vst.msk [vmem:[#allocation3 + $0xb8] sm:$0xff] %vm1642_vm9, %v1593_v13  ;;  %1412 = vrot.lane.b32.xlu0 %v7794_v15, %s6546_s14  ;;  %v1512_v61 = vld [vmem:[#allocation2 + $0x198] sm:$0xff] }
 0x20d   : > { %v3258_v21 = vrot.slane %v3257_v3, 1  ;;  %v3264_v26 = vmax.f32 %v3262_v5, %v3263_v1  ;;  %v3271_v14 = vmax.f32 %v3269_v17, %v3270_v11  ;;  %v3277_v38 = vrot.slane %v3276_v16, 2  ;;  %1410 = vrot.lane.b32.xlu1 %v7702_v47, %s6546_s14 }
 0x20e   : > { %v3202_v37 = vrot.slane %v3201_v18, 1  ;;  %v3207_v27 = vrot.slane %v3206_v41, 2  ;;  %v3214_v28 = vrot.slane %v3213_v20, 2  ;;  %v3220_v29 = vmax.f32 %v3218_v9, %v3219_v42  ;;  %v1784_v47 = vpop.permute.xlu0 %1783 }
 0x20f   : > { %v3259_v33 = vmax.f32 %v3257_v3, %v3258_v21  ;;  %v3265_v56 = vrot.slane %v3264_v26, 1  ;;  %v3272_v39 = vrot.slane %v3271_v14, 1  ;;  %v3278_v59 = vmax.f32 %v3276_v16, %v3277_v38  ;;  %v1782_v7 = vpop.permute.xlu1 %1781  ;;  %1858 = vst.msk [vmem:[#allocation3 + $0xb0] sm:$0xff] %vm1835_vm10, %v1784_v47 }
 0x210   : > { %v3203_v19 = vmax.f32 %v3201_v18, %v3202_v37  ;;  %v3208_v25 = vmax.f32 %v3206_v41, %v3207_v27  ;;  %v3215_v12 = vmax.f32 %v3213_v20, %v3214_v28  ;;  %v3221_v40 = vrot.slane %v3220_v29, 2  ;;  %1857 = vst.msk [vmem:[#allocation3 + $0xa8] sm:$0xff] %vm1835_vm10, %v1782_v7  ;;  %1602 = vrot.lane.b32.xlu0 %v7739_v36, %s8982_s16 }
 0x211   : > { %v3266_v24 = vmax.f32 %v3264_v26, %v3265_v56  ;;  %v3273_v44 = vmax.f32 %v3271_v14, %v3272_v39  ;;  %v3279_v46 = vrot.slane %v3278_v59, 1  ;;  %v4007_v48 = vsel %vm3981_vm14, %v3259_v33, -inf  ;;  %1414 = vrot.lane.b32.xlu1 %v7802_v31, %s6546_s14  ;;  %s6556_s14 = smov 80  }
 0x212   : > { %v3209_v34 = vrot.slane %v3208_v25, 1  ;;  %v3216_v35 = vrot.slane %v3215_v12, 1  ;;  %v3222_v32 = vmax.f32 %v3220_v29, %v3221_v40  ;;  %v4006_v51 = vsel %vm3981_vm14, %v3203_v19, -inf  ;;  %v1973_v6 = vpop.permute.xlu0 %1972  ;;  %v1705_v19 = vld [vmem:[#allocation2 + $0x199] sm:$0xff] }
 0x213   : > { %v3280_v52 = vmax.f32 %v3278_v59, %v3279_v46  ;;  %v4010_v53 = vsel %vm3981_vm14, %v3266_v24, -inf  ;;  %v4013_v57 = vsel %vm3981_vm14, %v3273_v44, -inf  ;;  %v4008_v60 = vmax.f32 %v4006_v51, %v4007_v48  ;;  %v1786_v43 = vpop.permute.xlu1 %1785  ;;  %2049 = vst.msk [vmem:[#allocation3 + $0xa0] sm:$0xff] %vm2028_vm11, %v1973_v6 }
 0x214   : > { %v3210_v22 = vmax.f32 %v3208_v25, %v3209_v34  ;;  %v3217_v62 = vmax.f32 %v3215_v12, %v3216_v35  ;;  %v3223_v5 = vrot.slane %v3222_v32, 1  ;;  %v2538_v17 = vrot.slane %v7759_v30, %v7541_v2  ;;  %1859 = vst.msk [vmem:[#allocation3 + $0xb8] sm:$0xff] %vm1835_vm10, %v1786_v43  ;;  %1606 = vrot.lane.b32.xlu0 %v1512_v61, %s8982_s16  ;;  %v1513_v30 = vld [vmem:[#allocation2 + $0x1a0] sm:$0xff] }
 0x215   : > { %v7818_v4 = vsel %vm3981_vm14, %v3280_v52, -inf  ;;  %v2545_v36 = vrot.slane %v2531_v10, %v7541_v2  ;;  %v2497_v8 = vcombine.high %v7764_v55, %v7764_v55  ;;  %v2504_v63 = vrot.slane %v7764_v55, %v7541_v2  ;;  %1604 = vrot.lane.b32.xlu1 %v7749_v45, %s8982_s16  ;;  %v1706_v52 = vld [vmem:[#allocation2 + $0x1a1] sm:$0xff] }
 0x216   : > { %v3224_v9 = vmax.f32 %v3222_v32, %v3223_v5  ;;  %v4009_v3 = vsel %vm3981_vm14, %v3210_v22, -inf  ;;  %v4012_v1 = vsel %vm3981_vm14, %v3217_v62, -inf  ;;  %v2546_v11 = vcombine.high %v2538_v17, %v2538_v17  ;;  %v629_v23 = vpop.permute.xlu0 %628 }
 0x217   : > { %v4011_v10 = vmax.f32 %v4009_v3, %v4010_v53  ;;  %v4014_v16 = vmax.f32 %v4012_v1, %v4013_v57  ;;  %v2547_v13 = vcombine.high %v2545_v36, %v2545_v36  ;;  %v3281_v18 = vsel %vm3084_vm13, %v2538_v17, -inf  ;;  %v1975_v55 = vpop.permute.xlu1 %1974  ;;  %701 = vst.msk [vmem:[#allocation3 + $0xc0] sm:$0xff] %vm8978_vm4, %v629_v23 }
 0x218   : > { %v7836_v41 = vsel %vm3981_vm14, %v3224_v9, -inf  ;;  %v3282_v20 = vrot.slane %v3281_v18, 4  ;;  %v3288_v45 = vsel %vm3084_vm13, %v2546_v11, -inf  ;;  %v3295_v42 = vsel %vm3084_vm13, %v2545_v36, -inf  ;;  %2050 = vst.msk [vmem:[#allocation3 + $0xa8] sm:$0xff] %vm2028_vm11, %v1975_v55  ;;  %1795 = vrot.lane.b32.xlu0 %v7766_v58, %s6548_s17 }
 0x219   : > { %v4017_v21 = vmax.f32 %v7836_v41, %v7818_v4  ;;  %v4272_v26 = vsel %vm4258_vm15, %v4011_v10, %v4008_v60  ;;  %v3289_v14 = vrot.slane %v3288_v45, 4  ;;  %v3296_v38 = vrot.slane %v3295_v42, 4  ;;  %1608 = vrot.lane.b32.xlu1 %v1513_v30, %s8982_s16 }
 0x21a   : > { %v7847_v37 = vsel %vm8983_vm0, %v4014_v16, %v4272_v26  ;;  %v3283_v27 = vmax.f32 %v3281_v18, %v3282_v20  ;;  %v3302_v28 = vsel %vm3084_vm13, %v2547_v13, -inf  ;;  %v2511_v29 = vrot.slane %v2497_v8, %v7541_v2  ;;  %v1977_v24 = vpop.permute.xlu0 %1976  ;;  %v1898_v18 = vld [vmem:[#allocation2 + $0x19a] sm:$0xff] }
 0x21b   : > { %v3290_v33 = vmax.f32 %v3288_v45, %v3289_v14  ;;  %v3297_v56 = vmax.f32 %v3295_v42, %v3296_v38  ;;  %v3303_v39 = vrot.slane %v3302_v28, 4  ;;  %v2512_v59 = vcombine.high %v2504_v63, %v2504_v63  ;;  %v631_v7 = vpop.permute.xlu1 %630  ;;  %2051 = vst.msk [vmem:[#allocation3 + $0xb0] sm:$0xff] %vm2028_vm11, %v1977_v24  ;;  %v2081_v42 = vld [vmem:[#allocation3 + $0xa0] sm:$0xff] }
 0x21c   : > { %v3284_v25 = vrot.slane %v3283_v27, 2  ;;  %v2513_v12 = vcombine.high %v2511_v29, %v2511_v29  ;;  %v3225_v40 = vsel %vm3084_vm13, %v2504_v63, -inf  ;;  %v3239_v47 = vsel %vm3084_vm13, %v2511_v29, -inf  ;;  %702 = vst.msk [vmem:[#allocation3 + $0xc8] sm:$0xff] %vm8978_vm4, %v631_v7  ;;  %1799 = vrot.lane.b32.xlu0 %v1705_v19, %s6548_s17 }
 0x21d   : > { %v3291_v44 = vrot.slane %v3290_v33, 2  ;;  %v3298_v46 = vrot.slane %v3297_v56, 2  ;;  %v3304_v48 = vmax.f32 %v3302_v28, %v3303_v39  ;;  %v3226_v34 = vrot.slane %v3225_v40, 4  ;;  %1797 = vrot.lane.b32.xlu1 %v7782_v49, %s6548_s17  ;;  %v1899_v39 = vld [vmem:[#allocation2 + $0x1a2] sm:$0xff] }
 0x21e   : > { %v3285_v58 = vmax.f32 %v3283_v27, %v3284_v25  ;;  %v3232_v35 = vsel %vm3084_vm13, %v2512_v59, -inf  ;;  %v3240_v32 = vrot.slane %v3239_v47, 4  ;;  %v3246_v51 = vsel %vm3084_vm13, %v2513_v12, -inf  ;;  %v633_v49 = vpop.permute.xlu0 %632 }
 0x21f   : > { %v3292_v53 = vmax.f32 %v3290_v33, %v3291_v44  ;;  %v3299_v57 = vmax.f32 %v3297_v56, %v3298_v46  ;;  %v3305_v60 = vrot.slane %v3304_v48, 2  ;;  %v3227_v43 = vmax.f32 %v3225_v40, %v3226_v34  ;;  %v1979_v61 = vpop.permute.xlu1 %1978  ;;  %703 = vst.msk [vmem:[#allocation3 + $0xd0] sm:$0xff] %vm8978_vm4, %v633_v49  ;;  %v2082_v23 = vld [vmem:[#allocation3 + $0xa8] sm:$0xff] }
 0x220   : > { %v3286_v22 = vrot.slane %v3285_v58, 1  ;;  %v3233_v62 = vrot.slane %v3232_v35, 4  ;;  %v3241_v5 = vmax.f32 %v3239_v47, %v3240_v32  ;;  %v3247_v17 = vrot.slane %v3246_v51, 4  ;;  %2052 = vst.msk [vmem:[#allocation3 + $0xb8] sm:$0xff] %vm2028_vm11, %v1979_v61  ;;  %1988 = vrot.lane.b32.xlu0 %v7794_v15, %s6549_s23  ;;  %v4354_v40 = vld [vmem:[#allocation4 + $0x1] sm:$0xff]  ;;  %v4355_v61 = vld [vmem:[#allocation4 + $0x11] sm:$0xff] }
 0x221   : > { %v3293_v6 = vrot.slane %v3292_v53, 1  ;;  %v3300_v36 = vrot.slane %v3299_v57, 1  ;;  %v3306_v8 = vmax.f32 %v3304_v48, %v3305_v60  ;;  %v3228_v63 = vrot.slane %v3227_v43, 2  ;;  %1801 = vrot.lane.b32.xlu1 %v1706_v52, %s6548_s17  ;;  %v4403_v52 = vld [vmem:[#allocation4 + $0x2] sm:$0xff] }
 0x222   : > { %v3234_v9 = vmax.f32 %v3232_v35, %v3233_v62  ;;  %v3242_v3 = vrot.slane %v3241_v5, 2  ;;  %v3248_v1 = vmax.f32 %v3246_v51, %v3247_v17  ;;  %v3287_v11 = vmax.f32 %v3285_v58, %v3286_v22  ;;  %v822_v26 = vpop.permute.xlu0 %821  ;;  %v2083_v15 = vld [vmem:[#allocation3 + $0xb0] sm:$0xff] }
 0x223   : > { %v3301_v30 = vmax.f32 %v3299_v57, %v3300_v36  ;;  %v3307_v10 = vrot.slane %v3306_v8, 1  ;;  %v3229_v16 = vmax.f32 %v3227_v43, %v3228_v63  ;;  %v635_v13 = vpop.permute.xlu1 %634  ;;  %v3294_v14 = vmax.f32 %v3292_v53, %v3293_v6  ;;  %894 = vst.msk [vmem:[#allocation3 + $0xc0] sm:$0xff] %vm869_vm5, %v822_v26  ;;  %v4404_v36 = vld [vmem:[#allocation4 + $0x12] sm:$0xff] }
 0x224   : > { %v3235_v55 = vrot.slane %v3234_v9, 2  ;;  %v3243_v20 = vmax.f32 %v3241_v5, %v3242_v3  ;;  %v3249_v45 = vrot.slane %v3248_v1, 2  ;;  %704 = vst.msk [vmem:[#allocation3 + $0xd8] sm:$0xff] %vm8978_vm4, %v635_v13  ;;  %vm8984_vm0 = vcmask 1043459   ;;  %1992 = vrot.lane.b32.xlu0 %v1898_v18, %s6549_s23  ;;  %v4452_v63 = vld [vmem:[#allocation4 + $0x10] sm:$0xff] }
 0x225   : > { %v3308_v38 = vmax.f32 %v3306_v8, %v3307_v10  ;;  %v3230_v27 = vrot.slane %v3229_v16, 1  ;;  %1990 = vrot.lane.b32.xlu1 %v7802_v31, %s6549_s23  ;;  %v4274_v56 = vsel %vm8984_vm0, %v4017_v21, %v7847_v37  ;;  %v4019_v59 = vsel %vm3981_vm14, %v3287_v11, -inf }
 0x226   : > { %v3236_v28 = vmax.f32 %v3234_v9, %v3235_v55  ;;  %v3244_v29 = vrot.slane %v3243_v20, 1  ;;  %v3250_v33 = vmax.f32 %v3248_v1, %v3249_v45  ;;  %v4025_v7 = vsel %vm3981_vm14, %v3301_v30, -inf  ;;  %v826_v4 = vpop.permute.xlu0 %825  ;;  %v4338_v9 = vld [vmem:[#allocation4] sm:$0xff] }
 0x227   : > { %v3231_v19 = vmax.f32 %v3229_v16, %v3230_v27  ;;  %v2103_v25 = vpack.c.bf16 %v2082_v23, %v2081_v42  ;;  %v824_v31 = vpop.permute.xlu1 %823  ;;  %v2084_v12 = vld [vmem:[#allocation3 + $0xb8] sm:$0xff]  ;;  %v4022_v21 = vsel %vm3981_vm14, %v3294_v14, -inf  ;;  %v4028_v37 = vsel %vm3981_vm14, %v3308_v38, -inf  ;;  %896 = vst.msk [vmem:[#allocation3 + $0xd0] sm:$0xff] %vm869_vm5, %v826_v4  ;;  %v7923_v42 = vld [vmem:[%s8965_s2] ss:$0 sm:$0xff] }
 0x228   : > { %v3237_v47 = vrot.slane %v3236_v28, 1  ;;  %v3245_v24 = vmax.f32 %v3243_v20, %v3244_v29  ;;  %v3251_v44 = vrot.slane %v3250_v33, 1  ;;  %895 = vst.msk [vmem:[#allocation3 + $0xc8] sm:$0xff] %vm869_vm5, %v824_v31  ;;  %v2104_v41 = vpack.c.bf16 %v2084_v12, %v2083_v15  ;;  %4370 = vrot.lane.b32.xlu0 %v4354_v40, %s6552_s26 }
 0x229   : > { %v4018_v46 = vsel %vm3981_vm14, %v3231_v19, -inf  ;;  %vm8985_vm0 = vcmask 220160   ;;  %1994 = vrot.lane.b32.xlu1 %v1899_v39, %s6549_s23  ;;  %4346 = vst.msk [vmem:[#allocation5] sm:$0xff] %vm3981_vm14, %v4338_v9  ;;  %s8979_s23 = smov 96  }
 0x22a   : > { %6327 = vmatprep.mubr.msk.bf16.mxu0 %vm8985_vm0, %v2103_v25  ;;  %v3238_v48 = vmax.f32 %v3236_v28, %v3237_v47  ;;  %v3252_v34 = vmax.f32 %v3250_v33, %v3251_v44  ;;  %v4020_v58 = vmax.f32 %v4018_v46, %v4019_v59  ;;  %v4024_v35 = vsel %vm3981_vm14, %v3245_v24, -inf  ;;  %vm8986_vm4 = vmmov %vm8985_vm0  ;;  %v1015_v43 = vpop.permute.xlu0 %1014 }
 0x22b   : > { %6328 = vmatmul.mubr.msk.bf16.gmra.mrb[20].mxu0 %vm8986_vm4, %v2104_v41  ;;  %v4026_v32 = vmax.f32 %v4024_v35, %v4025_v7  ;;  %v828_v51 = vpop.permute.xlu1 %827  ;;  %1087 = vst.msk [vmem:[#allocation3 + $0xc0] sm:$0xff] %vm1062_vm6, %v1015_v43  ;;  %vm8987_vm4 = vcmask 48152   ;;  %vm8988_vm0 = vcmask 1042434  }
 0x22c   : > { %v4021_v53 = vsel %vm3981_vm14, %v3238_v48, -inf  ;;  %v4027_v57 = vsel %vm3981_vm14, %v3252_v34, -inf  ;;  %v4275_v60 = vsel %vm4264_vm3, %v4020_v58, %v4274_v56  ;;  %897 = vst.msk [vmem:[#allocation3 + $0xd8] sm:$0xff] %vm869_vm5, %v828_v51  ;;  %4419 = vrot.lane.b32.xlu0 %v4403_v52, %s6553_s27 }
 0x22d   : > { %v4023_v22 = vmax.f32 %v4021_v53, %v4022_v21  ;;  %v4029_v62 = vmax.f32 %v4027_v57, %v4028_v37  ;;  %4372 = vrot.lane.b32.xlu1 %v4355_v61, %s6552_s26 }
 0x22e   : > { %v1019_v6 = vpop.permute.xlu0 %1018 }
 0x22f   : > { %v4276_v5 = vsel %vm4266_vm2, %v4023_v22, %v4275_v60  ;;  %v1017_v17 = vpop.permute.xlu1 %1016  ;;  %1089 = vst.msk [vmem:[#allocation3 + $0xd0] sm:$0xff] %vm1062_vm6, %v1019_v6 }
 0x230   : > { %v4277_v49 = vsel %vm4268_vm12, %v4026_v32, %v4276_v5  ;;  %1088 = vst.msk [vmem:[#allocation3 + $0xc8] sm:$0xff] %vm1062_vm6, %v1017_v17  ;;  %4468 = vrot.lane.b32.xlu0 %v4452_v63, %s6554_s28 }
 0x231   : > { %v4278_v8 = vsel %vm4270_vm1, %v4029_v62, %v4277_v49  ;;  %4421 = vrot.lane.b32.xlu1 %v4404_v36, %s6553_s27 }
 0x232   : > { %4331 = vst.msk [vmem:[#allocation4 + $0x21] sm:$0xff] %vm3981_vm14, %v4278_v8  ;;  %v1208_v1 = vpop.permute.xlu0 %1207 }
 0x233   : > { %v1021_v3 = vpop.permute.xlu1 %1020  ;;  %1280 = vst.msk [vmem:[#allocation3 + $0xc0] sm:$0xff] %vm1255_vm7, %v1208_v1 }
 0x234   : > { %1090 = vst.msk [vmem:[#allocation3 + $0xd8] sm:$0xff] %vm1062_vm6, %v1021_v3  ;;  %4517 = vrot.lane.b32.xlu0 %v4355_v61, %s6555_s29 }
 0x236   : > { %v1212_v30 = vpop.permute.xlu0 %1211 }
 0x237   : > { %v1210_v11 = vpop.permute.xlu1 %1209  ;;  %1282 = vst.msk [vmem:[#allocation3 + $0xd0] sm:$0xff] %vm1255_vm7, %v1212_v30 }
 0x238   : > { %1281 = vst.msk [vmem:[#allocation3 + $0xc8] sm:$0xff] %vm1255_vm7, %v1210_v11  ;;  %4566 = vrot.lane.b32.xlu0 %v4404_v36, %s6556_s14 }
 0x239   : > { %v4453_v10 = vld [vmem:[#allocation4 + $0x20] sm:$0xff] }
 0x23a   : > { %v7910_v16 = vld [vmem:[#allocation4 + $0x22] sm:$0xff]  ;;  %4470 = vrot.lane.b32.xlu1 %v4453_v10, %s6554_s28  ;;  %v1401_v55 = vpop.permute.xlu0 %1400 }
 0x23b   : > { %4706 = vst.msk [vmem:[#allocation5 + $0x8] sm:$0xff] %vm3981_vm14, %v7910_v16  ;;  %v4340_v13 = vld [vmem:[#allocation4 + $0x20] sm:$0xff]  ;;  %v1214_v18 = vpop.permute.xlu1 %1213 }
 0x23c   : > { %4348 = vst.msk [vmem:[#allocation5 + $0x20] sm:$0xff] %vm3981_vm14, %v4340_v13  ;;  %v4502_v20 = vld [vmem:[#allocation4 + $0x21] sm:$0xff]  ;;  %4616 = vrot.lane.b32.xlu0 %v4453_v10, %s8979_s23 }
 0x23d   : > { %1283 = vst.msk [vmem:[#allocation3 + $0xd8] sm:$0xff] %vm1255_vm7, %v1214_v18  ;;  %v6317_v45 = vpop.f32.mrb[8].mxu0 }
 0x23e   : > { %1473 = vst.msk [vmem:[#allocation3 + $0xc0] sm:$0xff] %vm1448_vm8, %v1401_v55  ;;  %4519 = vrot.lane.b32.xlu1 %v4502_v20, %s6555_s29  ;;  %v2262_v23 = vadd.f32 %v7923_v42, %v6317_v45  ;;  %v2253_v26 = vpop.f32.mrb[9].mxu0  ;;  %v1405_v33 = vpop.permute.xlu0 %1404 }
 0x23f   : > { %v2254_v14 = vadd.f32 %v7923_v42, %v2253_v26  ;;  %v1403_v38 = vpop.permute.xlu1 %1402  ;;  %v6318_v27 = vpop.f32.mrb[10].mxu0  ;;  %1475 = vst.msk [vmem:[#allocation3 + $0xd0] sm:$0xff] %vm1448_vm8, %v1405_v33 }
 0x240   : > { %v2358_v15 = vmax.f32 %v2262_v23, 0.0  ;;  %1474 = vst.msk [vmem:[#allocation3 + $0xc8] sm:$0xff] %vm1448_vm8, %v1403_v38  ;;  %v2265_v28 = vadd.f32 %v7923_v42, %v6318_v27  ;;  %v2256_v29 = vpop.f32.mrb[11].mxu0  ;;  %4665 = vrot.lane.b32.xlu0 %v4502_v20, %s6558_s24 }
 0x241   : > { %v2356_v56 = vmax.f32 %v2254_v14, 0.0  ;;  %v2257_v39 = vadd.f32 %v7923_v42, %v2256_v29 }
 0x242   : > { %v2582_v59 = vcombine.high %v2358_v15, %v2358_v15  ;;  %v2589_v7 = vrot.slane %v2358_v15, %v7541_v2  ;;  %4568 = vrot.lane.b32.xlu1 %v7910_v16, %s6556_s14  ;;  %v7935_v19 = vmax.f32 %v2265_v28, 0.0  ;;  %v1595_v41 = vpop.permute.xlu0 %1594 }
 0x243   : > { %v2548_v25 = vcombine.high %v2356_v56, %v2356_v56  ;;  %v2555_v31 = vrot.slane %v2356_v56, %v7541_v2  ;;  %v7939_v12 = vmax.f32 %v2257_v39, 0.0  ;;  %v1407_v40 = vpop.permute.xlu1 %1406  ;;  %1667 = vst.msk [vmem:[#allocation3 + $0xc0] sm:$0xff] %vm1642_vm9, %v1595_v41 }
 0x244   : > { %v2596_v47 = vrot.slane %v2582_v59, %v7541_v2  ;;  %v2597_v24 = vcombine.high %v2589_v7, %v2589_v7  ;;  %v3365_v44 = vsel %vm3084_vm13, %v2589_v7, -inf  ;;  %v2599_v4 = vcombine.high %v7935_v19, %v7935_v19  ;;  %1476 = vst.msk [vmem:[#allocation3 + $0xd8] sm:$0xff] %vm1448_vm8, %v1407_v40  ;;  %4374 = vrot.lane.b32.xlu0 %v4502_v20, %s6552_s26 }
 0x245   : > { %v3366_v21 = vrot.slane %v3365_v44, 4  ;;  %v2562_v37 = vrot.slane %v2548_v25, %v7541_v2  ;;  %v2563_v46 = vcombine.high %v2555_v31, %v2555_v31  ;;  %v3309_v48 = vsel %vm3084_vm13, %v2555_v31, -inf }
 0x246   : > { %v2598_v34 = vcombine.high %v2596_v47, %v2596_v47  ;;  %v3372_v58 = vsel %vm3084_vm13, %v2597_v24, -inf  ;;  %v3379_v35 = vsel %vm3084_vm13, %v2596_v47, -inf  ;;  %v3310_v32 = vrot.slane %v3309_v48, 4  ;;  %v1599_v5 = vpop.permute.xlu0 %1598 }
 0x247   : > { %v3367_v51 = vmax.f32 %v3365_v44, %v3366_v21  ;;  %v3373_v52 = vrot.slane %v3372_v58, 4  ;;  %v3380_v53 = vrot.slane %v3379_v35, 4  ;;  %v2564_v57 = vcombine.high %v2562_v37, %v2562_v37  ;;  %v1597_v60 = vpop.permute.xlu1 %1596  ;;  %1669 = vst.msk [vmem:[#allocation3 + $0xd0] sm:$0xff] %vm1642_vm9, %v1599_v5 }
 0x248   : > { %v3386_v43 = vsel %vm3084_vm13, %v2598_v34, -inf  ;;  %v3311_v61 = vmax.f32 %v3309_v48, %v3310_v32  ;;  %v3316_v22 = vsel %vm3084_vm13, %v2563_v46, -inf  ;;  %v3323_v62 = vsel %vm3084_vm13, %v2562_v37, -inf  ;;  %1668 = vst.msk [vmem:[#allocation3 + $0xc8] sm:$0xff] %vm1642_vm9, %v1597_v60  ;;  %4423 = vrot.lane.b32.xlu0 %v7910_v16, %s6553_s27 }
 0x249   : > { %v3368_v17 = vrot.slane %v3367_v51, 2  ;;  %v3374_v49 = vmax.f32 %v3372_v58, %v3373_v52  ;;  %v3381_v6 = vmax.f32 %v3379_v35, %v3380_v53  ;;  %v3387_v36 = vrot.slane %v3386_v43, 4 }
 0x24a   : > { %v3312_v8 = vrot.slane %v3311_v61, 2  ;;  %v3317_v63 = vrot.slane %v3316_v22, 4  ;;  %v3324_v9 = vrot.slane %v3323_v62, 4  ;;  %v3330_v3 = vsel %vm3084_vm13, %v2564_v57, -inf  ;;  %v1788_v23 = vpop.permute.xlu0 %1787 }
 0x24b   : > { %v3369_v1 = vmax.f32 %v3367_v51, %v3368_v17  ;;  %v3375_v11 = vrot.slane %v3374_v49, 2  ;;  %v3382_v30 = vrot.slane %v3381_v6, 2  ;;  %v3388_v10 = vmax.f32 %v3386_v43, %v3387_v36  ;;  %v1601_v13 = vpop.permute.xlu1 %1600  ;;  %1860 = vst.msk [vmem:[#allocation3 + $0xc0] sm:$0xff] %vm1835_vm10, %v1788_v23 }
 0x24c   : > { %v3313_v18 = vmax.f32 %v3311_v61, %v3312_v8  ;;  %v3318_v55 = vmax.f32 %v3316_v22, %v3317_v63  ;;  %v3325_v20 = vmax.f32 %v3323_v62, %v3324_v9  ;;  %v3331_v45 = vrot.slane %v3330_v3, 4  ;;  %1670 = vst.msk [vmem:[#allocation3 + $0xd8] sm:$0xff] %vm1642_vm9, %v1601_v13 }
 0x24d   : > { %v3370_v26 = vrot.slane %v3369_v1, 1  ;;  %v3376_v14 = vmax.f32 %v3374_v49, %v3375_v11  ;;  %v3383_v38 = vmax.f32 %v3381_v6, %v3382_v30  ;;  %v3389_v27 = vrot.slane %v3388_v10, 2 }
 0x24e   : > { %v3314_v15 = vrot.slane %v3313_v18, 1  ;;  %v3319_v16 = vrot.slane %v3318_v55, 2  ;;  %v3326_v28 = vrot.slane %v3325_v20, 2  ;;  %v3332_v29 = vmax.f32 %v3330_v3, %v3331_v45  ;;  %v1792_v24 = vpop.permute.xlu0 %1791 }
 0x24f   : > { %v3371_v33 = vmax.f32 %v3369_v1, %v3370_v26  ;;  %v3377_v56 = vrot.slane %v3376_v14, 1  ;;  %v3384_v39 = vrot.slane %v3383_v38, 1  ;;  %v3390_v59 = vmax.f32 %v3388_v10, %v3389_v27  ;;  %v1790_v7 = vpop.permute.xlu1 %1789  ;;  %1862 = vst.msk [vmem:[#allocation3 + $0xd0] sm:$0xff] %vm1835_vm10, %v1792_v24 }
 0x250   : > { %v3315_v25 = vmax.f32 %v3313_v18, %v3314_v15  ;;  %v3320_v31 = vmax.f32 %v3318_v55, %v3319_v16  ;;  %v3327_v40 = vmax.f32 %v3325_v20, %v3326_v28  ;;  %v3333_v47 = vrot.slane %v3332_v29, 2  ;;  %1861 = vst.msk [vmem:[#allocation3 + $0xc8] sm:$0xff] %vm1835_vm10, %v1790_v7 }
 0x251   : > { %v3378_v44 = vmax.f32 %v3376_v14, %v3377_v56  ;;  %v3385_v41 = vmax.f32 %v3383_v38, %v3384_v39  ;;  %v3391_v21 = vrot.slane %v3390_v59, 1  ;;  %v4031_v37 = vsel %vm3981_vm14, %v3371_v33, -inf }
 0x252   : > { %v3321_v46 = vrot.slane %v3320_v31, 1  ;;  %v3328_v48 = vrot.slane %v3327_v40, 1  ;;  %v3334_v34 = vmax.f32 %v3332_v29, %v3333_v47  ;;  %v4030_v58 = vsel %vm3981_vm14, %v3315_v25, -inf  ;;  %v1981_v22 = vpop.permute.xlu0 %1980 }
 0x253   : > { %v3392_v35 = vmax.f32 %v3390_v59, %v3391_v21  ;;  %v4034_v32 = vsel %vm3981_vm14, %v3378_v44, -inf  ;;  %v4037_v51 = vsel %vm3981_vm14, %v3385_v41, -inf  ;;  %v4032_v52 = vmax.f32 %v4030_v58, %v4031_v37  ;;  %v1794_v53 = vpop.permute.xlu1 %1793  ;;  %2053 = vst.msk [vmem:[#allocation3 + $0xc0] sm:$0xff] %vm2028_vm11, %v1981_v22 }
 0x254   : > { %v3322_v57 = vmax.f32 %v3320_v31, %v3321_v46  ;;  %v3329_v60 = vmax.f32 %v3327_v40, %v3328_v48  ;;  %v3335_v43 = vrot.slane %v3334_v34, 1  ;;  %v2606_v61 = vrot.slane %v7935_v19, %v7541_v2  ;;  %1863 = vst.msk [vmem:[#allocation3 + $0xd8] sm:$0xff] %vm1835_vm10, %v1794_v53 }
 0x255   : > { %v7972_v62 = vsel %vm3981_vm14, %v3392_v35, -inf  ;;  %v2613_v5 = vrot.slane %v2599_v4, %v7541_v2  ;;  %v2565_v17 = vcombine.high %v7939_v12, %v7939_v12  ;;  %v2572_v49 = vrot.slane %v7939_v12, %v7541_v2 }
 0x256   : > { %v3336_v6 = vmax.f32 %v3334_v34, %v3335_v43  ;;  %v4033_v36 = vsel %vm3981_vm14, %v3322_v57, -inf  ;;  %v4036_v8 = vsel %vm3981_vm14, %v3329_v60, -inf  ;;  %v2614_v63 = vcombine.high %v2606_v61, %v2606_v61  ;;  %v637_v13 = vpop.permute.xlu0 %636 }
 0x257   : > { %v4035_v9 = vmax.f32 %v4033_v36, %v4034_v32  ;;  %v4038_v3 = vmax.f32 %v4036_v8, %v4037_v51  ;;  %v2615_v1 = vcombine.high %v2613_v5, %v2613_v5  ;;  %v3393_v19 = vsel %vm3084_vm13, %v2606_v61, -inf  ;;  %v1983_v4 = vpop.permute.xlu1 %1982  ;;  %705 = vst.msk [vmem:[#allocation3 + $0xe0] sm:$0xff] %vm8987_vm4, %v637_v13 }
 0x258   : > { %v7987_v11 = vsel %vm3981_vm14, %v3336_v6, -inf  ;;  %v3394_v30 = vrot.slane %v3393_v19, 4  ;;  %v3400_v12 = vsel %vm3084_vm13, %v2614_v63, -inf  ;;  %v3407_v10 = vsel %vm3084_vm13, %v2613_v5, -inf  ;;  %2054 = vst.msk [vmem:[#allocation3 + $0xc8] sm:$0xff] %vm2028_vm11, %v1983_v4 }
 0x259   : > { %v4041_v18 = vmax.f32 %v7987_v11, %v7972_v62  ;;  %v4279_v55 = vsel %vm4258_vm15, %v4035_v9, %v4032_v52  ;;  %v3401_v20 = vrot.slane %v3400_v12, 4  ;;  %v3408_v45 = vrot.slane %v3407_v10, 4 }
 0x25a   : > { %v7997_v23 = vsel %vm8988_vm0, %v4038_v3, %v4279_v55  ;;  %v3395_v26 = vmax.f32 %v3393_v19, %v3394_v30  ;;  %v3414_v14 = vsel %vm3084_vm13, %v2615_v1, -inf  ;;  %v2579_v38 = vrot.slane %v2565_v17, %v7541_v2  ;;  %v1985_v7 = vpop.permute.xlu0 %1984  ;;  %vm8989_vm0 = vmmov %vm8987_vm4  ;;  %v2085_v19 = vld [vmem:[#allocation3 + $0xc0] sm:$0xff] }
 0x25b   : > { %v3402_v27 = vmax.f32 %v3400_v12, %v3401_v20  ;;  %v3409_v15 = vmax.f32 %v3407_v10, %v3408_v45  ;;  %v3415_v16 = vrot.slane %v3414_v14, 4  ;;  %v2580_v28 = vcombine.high %v2572_v49, %v2572_v49  ;;  %v639_v29 = vpop.permute.xlu1 %638  ;;  %2055 = vst.msk [vmem:[#allocation3 + $0xd0] sm:$0xff] %vm2028_vm11, %v1985_v7 }
 0x25c   : > { %v3396_v33 = vrot.slane %v3395_v26, 2  ;;  %v2581_v56 = vcombine.high %v2579_v38, %v2579_v38  ;;  %v3337_v39 = vsel %vm3084_vm13, %v2572_v49, -inf  ;;  %v3351_v59 = vsel %vm3084_vm13, %v2579_v38, -inf  ;;  %706 = vst.msk [vmem:[#allocation3 + $0xe8] sm:$0xff] %vm8987_vm4, %v639_v29  ;;  %vm8990_vm4 = vmmov %vm8989_vm0 }
 0x25d   : > { %v3403_v25 = vrot.slane %v3402_v27, 2  ;;  %v3410_v31 = vrot.slane %v3409_v15, 2  ;;  %v3416_v40 = vmax.f32 %v3414_v14, %v3415_v16  ;;  %v3338_v47 = vrot.slane %v3337_v39, 4 }
 0x25e   : > { %v3397_v24 = vmax.f32 %v3395_v26, %v3396_v33  ;;  %v3344_v44 = vsel %vm3084_vm13, %v2580_v28, -inf  ;;  %v3352_v41 = vrot.slane %v3351_v59, 4  ;;  %v3358_v21 = vsel %vm3084_vm13, %v2581_v56, -inf  ;;  %v641_v53 = vpop.permute.xlu0 %640  ;;  %v6421_v33 = vld [vmem:[%s8966_s3] sm:$0xff]  }
 0x25f   : > { %v3404_v37 = vmax.f32 %v3402_v27, %v3403_v25  ;;  %v3411_v46 = vmax.f32 %v3409_v15, %v3410_v31  ;;  %v3417_v48 = vrot.slane %v3416_v40, 2  ;;  %v3339_v34 = vmax.f32 %v3337_v39, %v3338_v47  ;;  %v1987_v58 = vpop.permute.xlu1 %1986  ;;  %707 = vst.msk [vmem:[#allocation3 + $0xf0] sm:$0xff] %vm8989_vm0, %v641_v53  ;;  %v2086_v4 = vld [vmem:[#allocation3 + $0xc8] sm:$0xff] }
 0x260   : > { %v3398_v35 = vrot.slane %v3397_v24, 1  ;;  %v3345_v32 = vrot.slane %v3344_v44, 4  ;;  %v3353_v51 = vmax.f32 %v3351_v59, %v3352_v41  ;;  %v3359_v52 = vrot.slane %v3358_v21, 4  ;;  %2056 = vst.msk [vmem:[#allocation3 + $0xd8] sm:$0xff] %vm2028_vm11, %v1987_v58 }
 0x261   : > { %v3405_v57 = vrot.slane %v3404_v37, 1  ;;  %v3412_v60 = vrot.slane %v3411_v46, 1  ;;  %v3418_v43 = vmax.f32 %v3416_v40, %v3417_v48  ;;  %v3340_v61 = vrot.slane %v3339_v34, 2 }
 0x262   : > { %v3346_v22 = vmax.f32 %v3344_v44, %v3345_v32  ;;  %v3354_v5 = vrot.slane %v3353_v51, 2  ;;  %v3360_v17 = vmax.f32 %v3358_v21, %v3359_v52  ;;  %v3399_v49 = vmax.f32 %v3397_v24, %v3398_v35  ;;  %v830_v30 = vpop.permute.xlu0 %829  ;;  %v2087_v55 = vld [vmem:[#allocation3 + $0xd0] sm:$0xff]  ;;  %v6422_v21 = vld [vmem:[%s8966_s3 + $0x8] sm:$0xff]   ;;  %v6423_v52 = vld [vmem:[%s8966_s3 + $0x10] sm:$0xff]  }
 0x263   : > { %v3413_v6 = vmax.f32 %v3411_v46, %v3412_v60  ;;  %v3419_v36 = vrot.slane %v3418_v43, 1  ;;  %v3341_v8 = vmax.f32 %v3339_v34, %v3340_v61  ;;  %v643_v63 = vpop.permute.xlu1 %642  ;;  %v3406_v12 = vmax.f32 %v3404_v37, %v3405_v57  ;;  %898 = vst.msk [vmem:[#allocation3 + $0xe0] sm:$0xff] %vm869_vm5, %v830_v30  ;;  %v6424_v61 = vld [vmem:[%s8966_s3 + $0x18] sm:$0xff]  }
 0x264   : > { %v3347_v9 = vrot.slane %v3346_v22, 2  ;;  %v3355_v3 = vmax.f32 %v3353_v51, %v3354_v5  ;;  %v3361_v1 = vrot.slane %v3360_v17, 2  ;;  %708 = vst.msk [vmem:[#allocation3 + $0xf8] sm:$0xff] %vm8990_vm4, %v643_v63  ;;  %vm8991_vm0 = vcmask 1043459  }
 0x265   : > { %v3420_v10 = vmax.f32 %v3418_v43, %v3419_v36  ;;  %v3342_v13 = vrot.slane %v3341_v8, 1  ;;  %v4281_v14 = vsel %vm8991_vm0, %v4041_v18, %v7997_v23  ;;  %v4043_v38 = vsel %vm3981_vm14, %v3399_v49, -inf }
 0x266   : > { %v3348_v20 = vmax.f32 %v3346_v22, %v3347_v9  ;;  %v3356_v45 = vrot.slane %v3355_v3, 1  ;;  %v3362_v26 = vmax.f32 %v3360_v17, %v3361_v1  ;;  %v4049_v27 = vsel %vm3981_vm14, %v3413_v6, -inf  ;;  %v834_v62 = vpop.permute.xlu0 %833  ;;  %v6425_v17 = vld [vmem:[%s8966_s3 + $0x20] sm:$0xff]   ;;  %v6426_v9 = vld [vmem:[%s8966_s3 + $0x28] sm:$0xff]  }
 0x267   : > { %v3343_v15 = vmax.f32 %v3341_v8, %v3342_v13  ;;  %v2105_v16 = vpack.c.bf16 %v2086_v4, %v2085_v19  ;;  %v832_v28 = vpop.permute.xlu1 %831  ;;  %v2088_v29 = vld [vmem:[#allocation3 + $0xd8] sm:$0xff]  ;;  %v4046_v18 = vsel %vm3981_vm14, %v3406_v12, -inf  ;;  %v4052_v23 = vsel %vm3981_vm14, %v3420_v10, -inf  ;;  %900 = vst.msk [vmem:[#allocation3 + $0xf0] sm:$0xff] %vm869_vm5, %v834_v62 }
 0x268   : > { %v3349_v56 = vrot.slane %v3348_v20, 1  ;;  %v3357_v39 = vmax.f32 %v3355_v3, %v3356_v45  ;;  %v3363_v59 = vrot.slane %v3362_v26, 1  ;;  %899 = vst.msk [vmem:[#allocation3 + $0xe8] sm:$0xff] %vm869_vm5, %v832_v28  ;;  %v2106_v11 = vpack.c.bf16 %v2088_v29, %v2087_v55  ;;  %v6427_v55 = vld [vmem:[%s8966_s3 + $0x30] sm:$0xff]  }
 0x269   : > { %v4042_v7 = vsel %vm3981_vm14, %v3343_v15, -inf  ;;  %vm8992_vm4 = vcmask 220160   ;;  %v6559_v24 = vmov 0  }
 0x26a   : > { %6331 = vmatprep.mubr.msk.bf16.mxu0 %vm8992_vm4, %v2105_v16  ;;  %v3350_v25 = vmax.f32 %v3348_v20, %v3349_v56  ;;  %v3364_v31 = vmax.f32 %v3362_v26, %v3363_v59  ;;  %v4044_v40 = vmax.f32 %v4042_v7, %v4043_v38  ;;  %v4048_v47 = vsel %vm3981_vm14, %v3357_v39, -inf  ;;  %vm8993_vm0 = vmmov %vm8992_vm4  ;;  %4829 = vmatprep.subr.bf16.mxu1 %v6559_v24  ;;  %v1023_v34 = vpop.permute.xlu0 %1022  ;;  %v4715_v38 = vld [vmem:[#allocation5 + $0x8] sm:$0xff] }
 0x26b   : > { %6332 = vmatmul.mubr.msk.bf16.gmra.mrb[24].mxu0 %vm8993_vm0, %v2106_v11  ;;  %v4050_v44 = vmax.f32 %v4048_v47, %v4049_v27  ;;  %v836_v41 = vpop.permute.xlu1 %835  ;;  %4830 = vmatpush1.bf16.msra.mxu1 %v6421_v33  ;;  %1091 = vst.msk [vmem:[#allocation3 + $0xe0] sm:$0xff] %vm1062_vm6, %v1023_v34  ;;  %vm4590_vm4 = vcmask 786048  }
 0x26c   : > { %v4045_v37 = vsel %vm3981_vm14, %v3350_v25, -inf  ;;  %v4051_v46 = vsel %vm3981_vm14, %v3364_v31, -inf  ;;  %v4282_v48 = vsel %vm4264_vm3, %v4044_v40, %v4281_v14  ;;  %901 = vst.msk [vmem:[#allocation3 + $0xf8] sm:$0xff] %vm869_vm5, %v836_v41  ;;  %4831 = vmatprep.subr.bf16.mxu1 %v6559_v24  ;;  %vm4394_vm5 = vcmask 261248  }
 0x26d   : > { %v4047_v58 = vmax.f32 %v4045_v37, %v4046_v18  ;;  %v4053_v35 = vmax.f32 %v4051_v46, %v4052_v23 }
 0x26e   : > { %v1027_v57 = vpop.permute.xlu0 %1026 }
 0x26f   : > { %v4283_v32 = vsel %vm4266_vm2, %v4047_v58, %v4282_v48  ;;  %v1025_v51 = vpop.permute.xlu1 %1024  ;;  %4832 = vmatpush1.bf16.msra.mxu1 %v6422_v21  ;;  %1093 = vst.msk [vmem:[#allocation3 + $0xf0] sm:$0xff] %vm1062_vm6, %v1027_v57 }
 0x270   : > { %v4284_v53 = vsel %vm4268_vm12, %v4050_v44, %v4283_v32  ;;  %1092 = vst.msk [vmem:[#allocation3 + $0xe8] sm:$0xff] %vm1062_vm6, %v1025_v51  ;;  %4833 = vmatprep.subr.bf16.mxu1 %v6559_v24 }
 0x271   : > { %v4285_v60 = vsel %vm4270_vm1, %v4053_v35, %v4284_v53 }
 0x272   : > { %4332 = vst.msk [vmem:[#allocation4 + $0x31] sm:$0xff] %vm3981_vm14, %v4285_v60  ;;  %v1216_v22 = vpop.permute.xlu0 %1215 }
 0x273   : > { %v1029_v43 = vpop.permute.xlu1 %1028  ;;  %4834 = vmatpush1.bf16.msra.mxu1 %v6423_v52  ;;  %1284 = vst.msk [vmem:[#allocation3 + $0xe0] sm:$0xff] %vm1255_vm7, %v1216_v22  ;;  %v6429_v52 = vld [vmem:[%s8966_s3 + $0x40] sm:$0xff]  }
 0x274   : > { %1094 = vst.msk [vmem:[#allocation3 + $0xf8] sm:$0xff] %vm1062_vm6, %v1029_v43  ;;  %4835 = vmatprep.subr.bf16.mxu1 %v6559_v24  ;;  %vm4443_vm6 = vcmask 392448  }
 0x276   : > { %v1220_v49 = vpop.permute.xlu0 %1219 }
 0x277   : > { %v1218_v5 = vpop.permute.xlu1 %1217  ;;  %4836 = vmatpush1.bf16.msra.mxu1 %v6424_v61  ;;  %1286 = vst.msk [vmem:[#allocation3 + $0xf0] sm:$0xff] %vm1255_vm7, %v1220_v49 }
 0x278   : > { %1285 = vst.msk [vmem:[#allocation3 + $0xe8] sm:$0xff] %vm1255_vm7, %v1218_v5  ;;  %4837 = vmatprep.subr.bf16.mxu1 %v6559_v24 }
 0x279   : > { %v4454_v6 = vld [vmem:[#allocation4 + $0x30] sm:$0xff] }
 0x27a   : > { %v4552_v36 = vld [vmem:[#allocation4 + $0x32] sm:$0xff]  ;;  %4472 = vrot.lane.b32.xlu0 %v4454_v6, %s6554_s28  ;;  %4618 = vrot.lane.b32.xlu1 %v4454_v6, %s8979_s23  ;;  %v1409_v3 = vpop.permute.xlu0 %1408 }
 0x27b   : > { %4707 = vst.msk [vmem:[#allocation5 + $0x18] sm:$0xff] %vm3981_vm14, %v4552_v36  ;;  %v4341_v8 = vld [vmem:[#allocation4 + $0x30] sm:$0xff]  ;;  %v1222_v63 = vpop.permute.xlu1 %1221  ;;  %4838 = vmatpush1.bf16.msra.mxu1 %v6425_v17 }
 0x27c   : > { %4349 = vst.msk [vmem:[#allocation5 + $0x30] sm:$0xff] %vm3981_vm14, %v4341_v8  ;;  %4839 = vmatprep.subr.bf16.mxu1 %v6559_v24  ;;  %v4503_v1 = vld [vmem:[#allocation4 + $0x31] sm:$0xff] }
 0x27d   : > { %1287 = vst.msk [vmem:[#allocation3 + $0xf8] sm:$0xff] %vm1255_vm7, %v1222_v63  ;;  %v6321_v19 = vpop.f32.mrb[12].mxu0  ;;  %vm8994_vm7 = vcmask 1042434  }
 0x27e   : > { %1477 = vst.msk [vmem:[#allocation3 + $0xe0] sm:$0xff] %vm1448_vm8, %v1409_v3  ;;  %4521 = vrot.lane.b32.xlu0 %v4503_v1, %s6555_s29  ;;  %4667 = vrot.lane.b32.xlu1 %v4503_v1, %s6558_s24  ;;  %v2278_v4 = vadd.f32 %v7923_v42, %v6321_v19  ;;  %v2269_v30 = vpop.f32.mrb[13].mxu0  ;;  %v1413_v14 = vpop.permute.xlu0 %1412 }
 0x27f   : > { %v2270_v12 = vadd.f32 %v7923_v42, %v2269_v30  ;;  %v1411_v10 = vpop.permute.xlu1 %1410  ;;  %v6322_v13 = vpop.f32.mrb[14].mxu0  ;;  %4840 = vmatpush1.bf16.msra.mxu1 %v6426_v9  ;;  %1479 = vst.msk [vmem:[#allocation3 + $0xf0] sm:$0xff] %vm1448_vm8, %v1413_v14 }
 0x280   : > { %v2362_v20 = vmax.f32 %v2278_v4, 0.0  ;;  %1478 = vst.msk [vmem:[#allocation3 + $0xe8] sm:$0xff] %vm1448_vm8, %v1411_v10  ;;  %v2281_v45 = vadd.f32 %v7923_v42, %v6322_v13  ;;  %v2272_v26 = vpop.f32.mrb[15].mxu0  ;;  %4841 = vmatprep.subr.bf16.mxu1 %v6559_v24 }
 0x281   : > { %v2360_v15 = vmax.f32 %v2270_v12, 0.0  ;;  %v2273_v16 = vadd.f32 %v7923_v42, %v2272_v26  ;;  %v6428_v42 = vld [vmem:[%s8966_s3 + $0x38] sm:$0xff]  }
 0x282   : > { %v4717_v27 = vld [vmem:[#allocation5 + $0x18] sm:$0xff]  ;;  %4570 = vrot.lane.b32.xlu0 %v4552_v36, %s6556_s14  ;;  %4376 = vrot.lane.b32.xlu1 %v4503_v1, %s6552_s26  ;;  %v2650_v29 = vcombine.high %v2362_v20, %v2362_v20  ;;  %v2657_v33 = vrot.slane %v2362_v20, %v7541_v2  ;;  %v8086_v56 = vmax.f32 %v2281_v45, 0.0  ;;  %v1603_v31 = vpop.permute.xlu0 %1602 }
 0x283   : > { %v4731_v28 = vpack.c.bf16 %v4717_v27, %v4715_v38  ;;  %v2616_v39 = vcombine.high %v2360_v15, %v2360_v15  ;;  %v2623_v59 = vrot.slane %v2360_v15, %v7541_v2  ;;  %v8089_v62 = vmax.f32 %v2273_v16, 0.0  ;;  %v1415_v11 = vpop.permute.xlu1 %1414  ;;  %4842 = vmatpush1.bf16.msra.mxu1 %v6427_v55  ;;  %1671 = vst.msk [vmem:[#allocation3 + $0xe0] sm:$0xff] %vm1642_vm9, %v1603_v31 }
 0x284   : > { %v2664_v18 = vrot.slane %v2650_v29, %v7541_v2  ;;  %v2665_v23 = vcombine.high %v2657_v33, %v2657_v33  ;;  %v3477_v7 = vsel %vm3084_vm13, %v2657_v33, -inf  ;;  %v2667_v25 = vcombine.high %v8086_v56, %v8086_v56  ;;  %1480 = vst.msk [vmem:[#allocation3 + $0xf8] sm:$0xff] %vm1448_vm8, %v1415_v11  ;;  %4843 = vmatprep.subr.bf16.mxu1 %v6559_v24 }
 0x285   : > { %6184 = vmatprep.mubr.msk.bf16.mxu1 %vm3981_vm14, %v4731_v28  ;;  %v3478_v40 = vrot.slane %v3477_v7, 4  ;;  %v2630_v47 = vrot.slane %v2616_v39, %v7541_v2  ;;  %v2631_v44 = vcombine.high %v2623_v59, %v2623_v59  ;;  %v3421_v41 = vsel %vm3084_vm13, %v2623_v59, -inf }
 0x286   : > { %4425 = vrot.lane.b32.xlu1 %v4552_v36, %s6553_s27  ;;  %v2666_v21 = vcombine.high %v2664_v18, %v2664_v18  ;;  %v3484_v37 = vsel %vm3084_vm13, %v2665_v23, -inf  ;;  %v3491_v46 = vsel %vm3084_vm13, %v2664_v18, -inf  ;;  %v3422_v48 = vrot.slane %v3421_v41, 4  ;;  %v1607_v61 = vpop.permute.xlu0 %1606 }
 0x287   : > { %v3479_v34 = vmax.f32 %v3477_v7, %v3478_v40  ;;  %v3485_v58 = vrot.slane %v3484_v37, 4  ;;  %v3492_v35 = vrot.slane %v3491_v46, 4  ;;  %v2632_v32 = vcombine.high %v2630_v47, %v2630_v47  ;;  %v1605_v51 = vpop.permute.xlu1 %1604  ;;  %4844 = vmatpush1.bf16.msra.mxu1 %v6428_v42  ;;  %1673 = vst.msk [vmem:[#allocation3 + $0xf0] sm:$0xff] %vm1642_vm9, %v1607_v61 }
 0x288   : > { %v3498_v53 = vsel %vm3084_vm13, %v2666_v21, -inf  ;;  %v3423_v57 = vmax.f32 %v3421_v41, %v3422_v48  ;;  %v3428_v60 = vsel %vm3084_vm13, %v2631_v44, -inf  ;;  %v3435_v43 = vsel %vm3084_vm13, %v2630_v47, -inf  ;;  %1672 = vst.msk [vmem:[#allocation3 + $0xe8] sm:$0xff] %vm1642_vm9, %v1605_v51  ;;  %4845 = vmatprep.subr.bf16.mxu1 %v6559_v24 }
 0x289   : > { %v3480_v22 = vrot.slane %v3479_v34, 2  ;;  %v3486_v5 = vmax.f32 %v3484_v37, %v3485_v58  ;;  %v3493_v17 = vmax.f32 %v3491_v46, %v3492_v35  ;;  %v3499_v49 = vrot.slane %v3498_v53, 4 }
 0x28a   : > { %v3424_v6 = vrot.slane %v3423_v57, 2  ;;  %v3429_v36 = vrot.slane %v3428_v60, 4  ;;  %v3436_v8 = vrot.slane %v3435_v43, 4  ;;  %v3442_v63 = vsel %vm3084_vm13, %v2632_v32, -inf  ;;  %v1796_v13 = vpop.permute.xlu0 %1795 }
 0x28b   : > { %v3481_v9 = vmax.f32 %v3479_v34, %v3480_v22  ;;  %v3487_v3 = vrot.slane %v3486_v5, 2  ;;  %v3494_v1 = vrot.slane %v3493_v17, 2  ;;  %v3500_v19 = vmax.f32 %v3498_v53, %v3499_v49  ;;  %v1609_v4 = vpop.permute.xlu1 %1608  ;;  %4846 = vmatpush1.bf16.msra.mxu1 %v6429_v52  ;;  %1864 = vst.msk [vmem:[#allocation3 + $0xe0] sm:$0xff] %vm1835_vm10, %v1796_v13 }
 0x28c   : > { %v3425_v30 = vmax.f32 %v3423_v57, %v3424_v6  ;;  %v3430_v12 = vmax.f32 %v3428_v60, %v3429_v36  ;;  %v3437_v24 = vmax.f32 %v3435_v43, %v3436_v8  ;;  %v3443_v10 = vrot.slane %v3442_v63, 4  ;;  %1674 = vst.msk [vmem:[#allocation3 + $0xf8] sm:$0xff] %vm1642_vm9, %v1609_v4 }
 0x28d   : > { %v3482_v55 = vrot.slane %v3481_v9, 1  ;;  %v3488_v20 = vmax.f32 %v3486_v5, %v3487_v3  ;;  %v3495_v45 = vmax.f32 %v3493_v17, %v3494_v1  ;;  %v3501_v26 = vrot.slane %v3500_v19, 2 }
 0x28e   : > { %v3426_v14 = vrot.slane %v3425_v30, 1  ;;  %v3431_v38 = vrot.slane %v3430_v12, 2  ;;  %v3438_v27 = vrot.slane %v3437_v24, 2  ;;  %v3444_v15 = vmax.f32 %v3442_v63, %v3443_v10  ;;  %v1800_v23 = vpop.permute.xlu0 %1799 }
 0x28f   : > { %v3483_v16 = vmax.f32 %v3481_v9, %v3482_v55  ;;  %v3489_v28 = vrot.slane %v3488_v20, 1  ;;  %v3496_v29 = vrot.slane %v3495_v45, 1  ;;  %v3502_v33 = vmax.f32 %v3500_v19, %v3501_v26  ;;  %v1798_v39 = vpop.permute.xlu1 %1797  ;;  %1866 = vst.msk [vmem:[#allocation3 + $0xf0] sm:$0xff] %vm1835_vm10, %v1800_v23 }
 0x290   : > { %v3427_v59 = vmax.f32 %v3425_v30, %v3426_v14  ;;  %v3432_v11 = vmax.f32 %v3430_v12, %v3431_v38  ;;  %v3439_v42 = vmax.f32 %v3437_v24, %v3438_v27  ;;  %v3445_v18 = vrot.slane %v3444_v15, 2  ;;  %1865 = vst.msk [vmem:[#allocation3 + $0xe8] sm:$0xff] %vm1835_vm10, %v1798_v39 }
 0x291   : > { %v3490_v7 = vmax.f32 %v3488_v20, %v3489_v28  ;;  %v3497_v31 = vmax.f32 %v3495_v45, %v3496_v29  ;;  %v3503_v40 = vrot.slane %v3502_v33, 1  ;;  %v4055_v47 = vsel %vm3981_vm14, %v3483_v16, -inf }
 0x292   : > { %v3433_v44 = vrot.slane %v3432_v11, 1  ;;  %v3440_v41 = vrot.slane %v3439_v42, 1  ;;  %v3446_v21 = vmax.f32 %v3444_v15, %v3445_v18  ;;  %v4054_v37 = vsel %vm3981_vm14, %v3427_v59, -inf  ;;  %v1989_v57 = vpop.permute.xlu0 %1988 }
 0x293   : > { %v3504_v46 = vmax.f32 %v3502_v33, %v3503_v40  ;;  %v4058_v48 = vsel %vm3981_vm14, %v3490_v7, -inf  ;;  %v4061_v34 = vsel %vm3981_vm14, %v3497_v31, -inf  ;;  %v4056_v58 = vmax.f32 %v4054_v37, %v4055_v47  ;;  %v1802_v35 = vpop.permute.xlu1 %1801  ;;  %2057 = vst.msk [vmem:[#allocation3 + $0xe0] sm:$0xff] %vm2028_vm11, %v1989_v57 }
 0x294   : > { %v3434_v32 = vmax.f32 %v3432_v11, %v3433_v44  ;;  %v3441_v51 = vmax.f32 %v3439_v42, %v3440_v41  ;;  %v3447_v52 = vrot.slane %v3446_v21, 1  ;;  %v2674_v53 = vrot.slane %v8086_v56, %v7541_v2  ;;  %1867 = vst.msk [vmem:[#allocation3 + $0xf8] sm:$0xff] %vm1835_vm10, %v1802_v35 }
 0x295   : > { %v8129_v60 = vsel %vm3981_vm14, %v3504_v46, -inf  ;;  %v2681_v43 = vrot.slane %v2667_v25, %v7541_v2  ;;  %v2633_v61 = vcombine.high %v8089_v62, %v8089_v62  ;;  %v2640_v22 = vrot.slane %v8089_v62, %v7541_v2 }
 0x296   : > { %v3448_v5 = vmax.f32 %v3446_v21, %v3447_v52  ;;  %v4057_v17 = vsel %vm3981_vm14, %v3434_v32, -inf  ;;  %v4060_v49 = vsel %vm3981_vm14, %v3441_v51, -inf  ;;  %v2682_v6 = vcombine.high %v2674_v53, %v2674_v53  ;;  %v1993_v19 = vpop.permute.xlu0 %1992 }
 0x297   : > { %v4059_v36 = vmax.f32 %v4057_v17, %v4058_v48  ;;  %v4062_v8 = vmax.f32 %v4060_v49, %v4061_v34  ;;  %v2683_v63 = vcombine.high %v2681_v43, %v2681_v43  ;;  %v3505_v56 = vsel %vm3084_vm13, %v2674_v53, -inf  ;;  %v1991_v25 = vpop.permute.xlu1 %1990  ;;  %2059 = vst.msk [vmem:[#allocation3 + $0xf0] sm:$0xff] %vm2028_vm11, %v1993_v19 }
 0x298   : > { %v8144_v9 = vsel %vm3981_vm14, %v3448_v5, -inf  ;;  %v3506_v3 = vrot.slane %v3505_v56, 4  ;;  %v3512_v62 = vsel %vm3084_vm13, %v2682_v6, -inf  ;;  %v3519_v1 = vsel %vm3084_vm13, %v2681_v43, -inf  ;;  %2058 = vst.msk [vmem:[#allocation3 + $0xe8] sm:$0xff] %vm2028_vm11, %v1991_v25 }
 0x299   : > { %v4065_v4 = vmax.f32 %v8144_v9, %v8129_v60  ;;  %v4286_v30 = vsel %vm4258_vm15, %v4059_v36, %v4056_v58  ;;  %v3513_v12 = vrot.slane %v3512_v62, 4  ;;  %v3520_v24 = vrot.slane %v3519_v1, 4 }
 0x29a   : > { %v8154_v10 = vsel %vm8994_vm7, %v4062_v8, %v4286_v30  ;;  %v3507_v13 = vmax.f32 %v3505_v56, %v3506_v3  ;;  %v3526_v55 = vsel %vm3084_vm13, %v2683_v63, -inf  ;;  %v2647_v20 = vrot.slane %v2633_v61, %v7541_v2  ;;  %v4371_v33 = vpop.permute.xlu0 %4370  ;;  %v2089_v17 = vld [vmem:[#allocation3 + $0xe0] sm:$0xff] }
 0x29b   : > { %v3514_v45 = vmax.f32 %v3512_v62, %v3513_v12  ;;  %v3521_v26 = vmax.f32 %v3519_v1, %v3520_v24  ;;  %v3527_v14 = vrot.slane %v3526_v55, 4  ;;  %v2648_v38 = vcombine.high %v2640_v22, %v2640_v22  ;;  %v1995_v27 = vpop.permute.xlu1 %1994  ;;  %4395 = vst.msk [vmem:[#allocation5] sm:$0xff] %vm4394_vm5, %v4371_v33 }
 0x29c   : > { %v3508_v15 = vrot.slane %v3507_v13, 2  ;;  %v2649_v16 = vcombine.high %v2647_v20, %v2647_v20  ;;  %v3449_v28 = vsel %vm3084_vm13, %v2640_v22, -inf  ;;  %v3463_v29 = vsel %vm3084_vm13, %v2647_v20, -inf  ;;  %2060 = vst.msk [vmem:[#allocation3 + $0xf8] sm:$0xff] %vm2028_vm11, %v1995_v27  ;;  %vm8996_vm11 = vmmov %vm8993_vm0 }
 0x29d   : > { %v3515_v39 = vrot.slane %v3514_v45, 2  ;;  %v3522_v59 = vrot.slane %v3521_v26, 2  ;;  %v3528_v11 = vmax.f32 %v3526_v55, %v3527_v14  ;;  %v3450_v42 = vrot.slane %v3449_v28, 4 }
 0x29e   : > { %v3509_v18 = vmax.f32 %v3507_v13, %v3508_v15  ;;  %v3456_v23 = vsel %vm3084_vm13, %v2648_v38, -inf  ;;  %v3464_v7 = vrot.slane %v3463_v29, 4  ;;  %v3470_v31 = vsel %vm3084_vm13, %v2649_v16, -inf  ;;  %v4420_v58 = vpop.permute.xlu0 %4419  ;;  %v2091_v3 = vld [vmem:[#allocation3 + $0xf0] sm:$0xff] }
 0x29f   : > { %v3516_v40 = vmax.f32 %v3514_v45, %v3515_v39  ;;  %v3523_v47 = vmax.f32 %v3521_v26, %v3522_v59  ;;  %v3529_v44 = vrot.slane %v3528_v11, 2  ;;  %v3451_v41 = vmax.f32 %v3449_v28, %v3450_v42  ;;  %v4373_v21 = vpop.permute.xlu1 %4372  ;;  %4444 = vst.msk [vmem:[#allocation5] sm:$0xff] %vm4443_vm6, %v4420_v58  ;;  %v2090_v56 = vld [vmem:[#allocation3 + $0xe8] sm:$0xff] }
 0x2a0   : > { %v3510_v37 = vrot.slane %v3509_v18, 1  ;;  %v3457_v46 = vrot.slane %v3456_v23, 4  ;;  %v3465_v48 = vmax.f32 %v3463_v29, %v3464_v7  ;;  %v3471_v34 = vrot.slane %v3470_v31, 4  ;;  %4396 = vst.msk [vmem:[#allocation5 + $0x10] sm:$0xff] %vm4394_vm5, %v4373_v21 }
 0x2a1   : > { %v3517_v35 = vrot.slane %v3516_v40, 1  ;;  %v3524_v32 = vrot.slane %v3523_v47, 1  ;;  %v3530_v51 = vmax.f32 %v3528_v11, %v3529_v44  ;;  %v3452_v52 = vrot.slane %v3451_v41, 2 }
 0x2a2   : > { %v3458_v53 = vmax.f32 %v3456_v23, %v3457_v46  ;;  %v3466_v57 = vrot.slane %v3465_v48, 2  ;;  %v3472_v43 = vmax.f32 %v3470_v31, %v3471_v34  ;;  %vm4492_vm8 = vcmask 523648   ;;  %v4469_v25 = vpop.permute.xlu0 %4468 }
 0x2a3   : > { %v3511_v61 = vmax.f32 %v3509_v18, %v3510_v37  ;;  %v3531_v22 = vrot.slane %v3530_v51, 1  ;;  %v3453_v5 = vmax.f32 %v3451_v41, %v3452_v52  ;;  %v4422_v49 = vpop.permute.xlu1 %4421  ;;  %v3525_v6 = vmax.f32 %v3523_v47, %v3524_v32  ;;  %v2092_v62 = vld [vmem:[#allocation3 + $0xf8] sm:$0xff]  ;;  %4493 = vst.msk [vmem:[#allocation5] sm:$0xff] %vm4492_vm8, %v4469_v25 }
 0x2a4   : > { %v3459_v36 = vrot.slane %v3458_v53, 2  ;;  %v3467_v8 = vmax.f32 %v3465_v48, %v3466_v57  ;;  %v3473_v63 = vrot.slane %v3472_v43, 2  ;;  %4445 = vst.msk [vmem:[#allocation5 + $0x10] sm:$0xff] %vm4443_vm6, %v4422_v49  ;;  %v3518_v1 = vmax.f32 %v3516_v40, %v3517_v35 }
 0x2a5   : > { %v3532_v19 = vmax.f32 %v3530_v51, %v3531_v22  ;;  %v3454_v30 = vrot.slane %v3453_v5, 1  ;;  %vm4541_vm9 = vcmask 654848   ;;  %vm8995_vm10 = vcmask 1043459  }
 0x2a6   : > { %v3460_v12 = vmax.f32 %v3458_v53, %v3459_v36  ;;  %v3468_v24 = vrot.slane %v3467_v8, 1  ;;  %v3474_v13 = vmax.f32 %v3472_v43, %v3473_v63  ;;  %v4288_v55 = vsel %vm8995_vm10, %v4065_v4, %v8154_v10  ;;  %v4518_v28 = vpop.permute.xlu0 %4517  ;;  %v8206_v53 = vld [vmem:[%s8965_s2] ss:$0 sm:$0xff] }
 0x2a7   : > { %v4067_v20 = vsel %vm3981_vm14, %v3511_v61, -inf  ;;  %v3455_v45 = vmax.f32 %v3453_v5, %v3454_v30  ;;  %v2107_v26 = vpack.c.bf16 %v2090_v56, %v2089_v17  ;;  %v2108_v14 = vpack.c.bf16 %v2092_v62, %v2091_v3  ;;  %4542 = vst.msk [vmem:[#allocation5] sm:$0xff] %vm4541_vm9, %v4518_v28 }
 0x2a8   : > { %v4073_v38 = vsel %vm3981_vm14, %v3525_v6, -inf  ;;  %v3461_v27 = vrot.slane %v3460_v12, 1  ;;  %v3469_v15 = vmax.f32 %v3467_v8, %v3468_v24  ;;  %v3475_v16 = vrot.slane %v3474_v13, 1 }
 0x2a9   : > { %v4070_v29 = vsel %vm3981_vm14, %v3518_v1, -inf  ;;  %v4076_v33 = vsel %vm3981_vm14, %v3532_v19, -inf  ;;  %v4066_v39 = vsel %vm3981_vm14, %v3455_v45, -inf  ;;  %6335 = vmatprep.mubr.msk.bf16.mxu0 %vm8996_vm11, %v2107_v26  ;;  %vm4640_vm7 = vcmask 917248  }
 0x2aa   : > { %v3462_v60 = vmax.f32 %v3460_v12, %v3461_v27  ;;  %v3476_v9 = vmax.f32 %v3474_v13, %v3475_v16  ;;  %v4068_v4 = vmax.f32 %v4066_v39, %v4067_v20  ;;  %v4072_v10 = vsel %vm3981_vm14, %v3469_v15, -inf  ;;  %6336 = vmatmul.mubr.msk.bf16.gmra.mrb[28].mxu0 %vm8993_vm0, %v2108_v14  ;;  %v4567_v7 = vpop.permute.xlu0 %4566 }
 0x2ab   : > { %v4074_v59 = vmax.f32 %v4072_v10, %v4073_v38  ;;  %4591 = vst.msk [vmem:[#allocation5] sm:$0xff] %vm4590_vm4, %v4567_v7  ;;  %vm4689_vm10 = vcmask 1048448   ;;  %vm8997_vm11 = vcmask 1042434   ;;  %vm8998_vm0 = vcmask 1043459  }
 0x2ac   : > { %v4069_v11 = vsel %vm3981_vm14, %v3462_v60, -inf  ;;  %v4075_v42 = vsel %vm3981_vm14, %v3476_v9, -inf  ;;  %v4289_v18 = vsel %vm4264_vm3, %v4068_v4, %v4288_v55  ;;  %v4471_v23 = vpop.permute.xlu1 %4470 }
 0x2ad   : > { %v4071_v31 = vmax.f32 %v4069_v11, %v4070_v29  ;;  %v4077_v40 = vmax.f32 %v4075_v42, %v4076_v33  ;;  %4494 = vst.msk [vmem:[#allocation5 + $0x10] sm:$0xff] %vm4492_vm8, %v4471_v23 }
 0x2ae   : > { %v4617_v21 = vpop.permute.xlu0 %4616 }
 0x2af   : > { %v4290_v47 = vsel %vm4266_vm2, %v4071_v31, %v4289_v18  ;;  %4641 = vst.msk [vmem:[#allocation5] sm:$0xff] %vm4640_vm7, %v4617_v21 }
 0x2b0   : > { %v4291_v44 = vsel %vm4268_vm12, %v4074_v59, %v4290_v47  ;;  %v4520_v41 = vpop.permute.xlu1 %4519 }
 0x2b1   : > { %v4292_v37 = vsel %vm4270_vm1, %v4077_v40, %v4291_v44  ;;  %4543 = vst.msk [vmem:[#allocation5 + $0x10] sm:$0xff] %vm4541_vm9, %v4520_v41 }
 0x2b2   : > { %4333 = vst.msk [vmem:[#allocation4 + $0x41] sm:$0xff] %vm3981_vm14, %v4292_v37  ;;  %v4666_v48 = vpop.permute.xlu0 %4665 }
 0x2b3   : > { %4690 = vst.msk [vmem:[#allocation5] sm:$0xff] %vm4689_vm10, %v4666_v48 }
 0x2b4   : > { %v4569_v46 = vpop.permute.xlu1 %4568 }
 0x2b5   : > { %4592 = vst.msk [vmem:[#allocation5 + $0x10] sm:$0xff] %vm4590_vm4, %v4569_v46 }
 0x2b6   : > { %v4375_v34 = vpop.permute.xlu0 %4374 }
 0x2b7   : > { %4397 = vst.msk [vmem:[#allocation5 + $0x20] sm:$0xff] %vm4394_vm5, %v4375_v34 }
 0x2b9   : > { %v4602_v58 = vld [vmem:[#allocation4 + $0x40] sm:$0xff] }
 0x2ba   : > { %v4553_v35 = vld [vmem:[#allocation4 + $0x42] sm:$0xff]  ;;  %4620 = vrot.lane.b32.xlu0 %v4602_v58, %s8979_s23  ;;  %4474 = vrot.lane.b32.xlu1 %v4602_v58, %s6554_s28  ;;  %4350 = vst.msk [vmem:[#allocation5 + $0x40] sm:$0xff] %vm3981_vm14, %v4602_v58  ;;  %v4424_v32 = vpop.permute.xlu0 %4423 }
 0x2bb   : > { %4708 = vst.msk [vmem:[#allocation5 + $0x28] sm:$0xff] %vm3981_vm14, %v4553_v35  ;;  %v4651_v51 = vld [vmem:[#allocation4 + $0x41] sm:$0xff] }
 0x2bc   : > { %4446 = vst.msk [vmem:[#allocation5 + $0x20] sm:$0xff] %vm4443_vm6, %v4424_v32 }
 0x2bd   : > { %v6325_v52 = vpop.f32.mrb[16].mxu0 }
 0x2be   : > { %4669 = vrot.lane.b32.xlu0 %v4651_v51, %s6558_s24  ;;  %4523 = vrot.lane.b32.xlu1 %v4651_v51, %s6555_s29  ;;  %v2294_v57 = vadd.f32 %v8206_v53, %v6325_v52  ;;  %v2285_v43 = vpop.f32.mrb[17].mxu0 }
 0x2bf   : > { %v2286_v61 = vadd.f32 %v8206_v53, %v2285_v43  ;;  %v6326_v22 = vpop.f32.mrb[18].mxu0 }
 0x2c0   : > { %v2366_v5 = vmax.f32 %v2294_v57, 0.0  ;;  %v2297_v17 = vadd.f32 %v8206_v53, %v6326_v22  ;;  %v2288_v49 = vpop.f32.mrb[19].mxu0 }
 0x2c1   : > { %v2364_v6 = vmax.f32 %v2286_v61, 0.0  ;;  %v2289_v36 = vadd.f32 %v8206_v53, %v2288_v49 }
 0x2c2   : > { %4378 = vrot.lane.b32.xlu0 %v4651_v51, %s6552_s26  ;;  %4572 = vrot.lane.b32.xlu1 %v4553_v35, %s6556_s14  ;;  %v2718_v8 = vcombine.high %v2366_v5, %v2366_v5  ;;  %v2725_v63 = vrot.slane %v2366_v5, %v7541_v2  ;;  %v8215_v56 = vmax.f32 %v2297_v17, 0.0 }
 0x2c3   : > { %v2684_v25 = vcombine.high %v2364_v6, %v2364_v6  ;;  %v2691_v3 = vrot.slane %v2364_v6, %v7541_v2  ;;  %v8218_v62 = vmax.f32 %v2289_v36, 0.0 }
 0x2c4   : > { %v2732_v1 = vrot.slane %v2718_v8, %v7541_v2  ;;  %v2733_v19 = vcombine.high %v2725_v63, %v2725_v63  ;;  %v3589_v30 = vsel %vm3084_vm13, %v2725_v63, -inf  ;;  %v2735_v12 = vcombine.high %v8215_v56, %v8215_v56 }
 0x2c5   : > { %v3590_v24 = vrot.slane %v3589_v30, 4  ;;  %v2698_v13 = vrot.slane %v2684_v25, %v7541_v2  ;;  %v2699_v55 = vcombine.high %v2691_v3, %v2691_v3  ;;  %v3533_v20 = vsel %vm3084_vm13, %v2691_v3, -inf }
 0x2c6   : > { %4427 = vrot.lane.b32.xlu0 %v4553_v35, %s6553_s27  ;;  %v2734_v45 = vcombine.high %v2732_v1, %v2732_v1  ;;  %v3596_v26 = vsel %vm3084_vm13, %v2733_v19, -inf  ;;  %v3603_v14 = vsel %vm3084_vm13, %v2732_v1, -inf  ;;  %v3534_v38 = vrot.slane %v3533_v20, 4 }
 0x2c7   : > { %v3591_v27 = vmax.f32 %v3589_v30, %v3590_v24  ;;  %v3597_v15 = vrot.slane %v3596_v26, 4  ;;  %v3604_v16 = vrot.slane %v3603_v14, 4  ;;  %v2700_v28 = vcombine.high %v2698_v13, %v2698_v13 }
 0x2c8   : > { %v3610_v29 = vsel %vm3084_vm13, %v2734_v45, -inf  ;;  %v3535_v33 = vmax.f32 %v3533_v20, %v3534_v38  ;;  %v3540_v39 = vsel %vm3084_vm13, %v2699_v55, -inf  ;;  %v3547_v60 = vsel %vm3084_vm13, %v2698_v13, -inf }
 0x2c9   : > { %v3592_v9 = vrot.slane %v3591_v27, 2  ;;  %v3598_v4 = vmax.f32 %v3596_v26, %v3597_v15  ;;  %v3605_v10 = vmax.f32 %v3603_v14, %v3604_v16  ;;  %v3611_v59 = vrot.slane %v3610_v29, 4 }
 0x2ca   : > { %v3536_v11 = vrot.slane %v3535_v33, 2  ;;  %v3541_v42 = vrot.slane %v3540_v39, 4  ;;  %v3548_v18 = vrot.slane %v3547_v60, 4  ;;  %v3554_v23 = vsel %vm3084_vm13, %v2700_v28, -inf }
 0x2cb   : > { %v3593_v7 = vmax.f32 %v3591_v27, %v3592_v9  ;;  %v3599_v31 = vrot.slane %v3598_v4, 2  ;;  %v3606_v40 = vrot.slane %v3605_v10, 2  ;;  %v3612_v47 = vmax.f32 %v3610_v29, %v3611_v59 }
 0x2cc   : > { %v3537_v44 = vmax.f32 %v3535_v33, %v3536_v11  ;;  %v3542_v41 = vmax.f32 %v3540_v39, %v3541_v42  ;;  %v3549_v21 = vmax.f32 %v3547_v60, %v3548_v18  ;;  %v3555_v37 = vrot.slane %v3554_v23, 4 }
 0x2cd   : > { %v3594_v46 = vrot.slane %v3593_v7, 1  ;;  %v3600_v48 = vmax.f32 %v3598_v4, %v3599_v31  ;;  %v3607_v34 = vmax.f32 %v3605_v10, %v3606_v40  ;;  %v3613_v58 = vrot.slane %v3612_v47, 2 }
 0x2ce   : > { %v3538_v35 = vrot.slane %v3537_v44, 1  ;;  %v3543_v32 = vrot.slane %v3542_v41, 2  ;;  %v3550_v51 = vrot.slane %v3549_v21, 2  ;;  %v3556_v52 = vmax.f32 %v3554_v23, %v3555_v37 }
 0x2cf   : > { %v3595_v57 = vmax.f32 %v3593_v7, %v3594_v46  ;;  %v3601_v43 = vrot.slane %v3600_v48, 1  ;;  %v3608_v61 = vrot.slane %v3607_v34, 1  ;;  %v3614_v22 = vmax.f32 %v3612_v47, %v3613_v58 }
 0x2d0   : > { %v3539_v5 = vmax.f32 %v3537_v44, %v3538_v35  ;;  %v3544_v17 = vmax.f32 %v3542_v41, %v3543_v32  ;;  %v3551_v49 = vmax.f32 %v3549_v21, %v3550_v51  ;;  %v3557_v6 = vrot.slane %v3556_v52, 2 }
 0x2d1   : > { %v3602_v36 = vmax.f32 %v3600_v48, %v3601_v43  ;;  %v3609_v8 = vmax.f32 %v3607_v34, %v3608_v61  ;;  %v3615_v63 = vrot.slane %v3614_v22, 1  ;;  %v4079_v25 = vsel %vm3981_vm14, %v3595_v57, -inf }
 0x2d2   : > { %v3545_v3 = vrot.slane %v3544_v17, 1  ;;  %v3552_v1 = vrot.slane %v3551_v49, 1  ;;  %v3558_v19 = vmax.f32 %v3556_v52, %v3557_v6  ;;  %v4078_v30 = vsel %vm3981_vm14, %v3539_v5, -inf }
 0x2d3   : > { %v3616_v24 = vmax.f32 %v3614_v22, %v3615_v63  ;;  %v4082_v13 = vsel %vm3981_vm14, %v3602_v36, -inf  ;;  %v4085_v55 = vsel %vm3981_vm14, %v3609_v8, -inf  ;;  %v4080_v20 = vmax.f32 %v4078_v30, %v4079_v25 }
 0x2d4   : > { %v3546_v45 = vmax.f32 %v3544_v17, %v3545_v3  ;;  %v3553_v26 = vmax.f32 %v3551_v49, %v3552_v1  ;;  %v3559_v14 = vrot.slane %v3558_v19, 1  ;;  %v2742_v38 = vrot.slane %v8215_v56, %v7541_v2 }
 0x2d5   : > { %v8240_v27 = vsel %vm3981_vm14, %v3616_v24, -inf  ;;  %v2749_v15 = vrot.slane %v2735_v12, %v7541_v2  ;;  %v2701_v16 = vcombine.high %v8218_v62, %v8218_v62  ;;  %v2708_v28 = vrot.slane %v8218_v62, %v7541_v2 }
 0x2d6   : > { %v3560_v29 = vmax.f32 %v3558_v19, %v3559_v14  ;;  %v4081_v33 = vsel %vm3981_vm14, %v3546_v45, -inf  ;;  %v4084_v39 = vsel %vm3981_vm14, %v3553_v26, -inf  ;;  %v2750_v60 = vcombine.high %v2742_v38, %v2742_v38 }
 0x2d7   : > { %v4083_v9 = vmax.f32 %v4081_v33, %v4082_v13  ;;  %v4086_v4 = vmax.f32 %v4084_v39, %v4085_v55  ;;  %v2751_v10 = vcombine.high %v2749_v15, %v2749_v15  ;;  %v3617_v59 = vsel %vm3084_vm13, %v2742_v38, -inf }
 0x2d8   : > { %v4087_v56 = vsel %vm3981_vm14, %v3560_v29, -inf  ;;  %v3618_v12 = vrot.slane %v3617_v59, 4  ;;  %v3624_v11 = vsel %vm3084_vm13, %v2750_v60, -inf  ;;  %v3631_v42 = vsel %vm3084_vm13, %v2749_v15, -inf }
 0x2d9   : > { %v4089_v62 = vmax.f32 %v4087_v56, %v8240_v27  ;;  %v4293_v18 = vsel %vm4258_vm15, %v4083_v9, %v4080_v20  ;;  %v3625_v23 = vrot.slane %v3624_v11, 4  ;;  %v3632_v7 = vrot.slane %v3631_v42, 4 }
 0x2da   : > { %v4294_v31 = vsel %vm8997_vm11, %v4086_v4, %v4293_v18  ;;  %v3619_v40 = vmax.f32 %v3617_v59, %v3618_v12  ;;  %v3638_v47 = vsel %vm3084_vm13, %v2751_v10, -inf  ;;  %v2715_v44 = vrot.slane %v2701_v16, %v7541_v2 }
 0x2db   : > { %v3626_v41 = vmax.f32 %v3624_v11, %v3625_v23  ;;  %v3633_v21 = vmax.f32 %v3631_v42, %v3632_v7  ;;  %v3639_v37 = vrot.slane %v3638_v47, 4  ;;  %v2716_v46 = vcombine.high %v2708_v28, %v2708_v28 }
 0x2dc   : > { %v3620_v48 = vrot.slane %v3619_v40, 2  ;;  %v2717_v34 = vcombine.high %v2715_v44, %v2715_v44  ;;  %v3561_v58 = vsel %vm3084_vm13, %v2708_v28, -inf  ;;  %v3575_v35 = vsel %vm3084_vm13, %v2715_v44, -inf }
 0x2dd   : > { %v3627_v32 = vrot.slane %v3626_v41, 2  ;;  %v3634_v51 = vrot.slane %v3633_v21, 2  ;;  %v3640_v52 = vmax.f32 %v3638_v47, %v3639_v37  ;;  %v3562_v57 = vrot.slane %v3561_v58, 4 }
 0x2de   : > { %v3621_v43 = vmax.f32 %v3619_v40, %v3620_v48  ;;  %v3568_v61 = vsel %vm3084_vm13, %v2716_v46, -inf  ;;  %v3576_v22 = vrot.slane %v3575_v35, 4  ;;  %v3582_v5 = vsel %vm3084_vm13, %v2717_v34, -inf }
 0x2df   : > { %v3628_v17 = vmax.f32 %v3626_v41, %v3627_v32  ;;  %v3635_v49 = vmax.f32 %v3633_v21, %v3634_v51  ;;  %v3641_v6 = vrot.slane %v3640_v52, 2  ;;  %v3563_v36 = vmax.f32 %v3561_v58, %v3562_v57 }
 0x2e0   : > { %v3622_v8 = vrot.slane %v3621_v43, 1  ;;  %v3569_v63 = vrot.slane %v3568_v61, 4  ;;  %v3577_v25 = vmax.f32 %v3575_v35, %v3576_v22  ;;  %v3583_v3 = vrot.slane %v3582_v5, 4 }
 0x2e1   : > { %v3629_v1 = vrot.slane %v3628_v17, 1  ;;  %v3636_v19 = vrot.slane %v3635_v49, 1  ;;  %v3642_v30 = vmax.f32 %v3640_v52, %v3641_v6  ;;  %v3564_v24 = vrot.slane %v3563_v36, 2 }
 0x2e2   : > { %v3570_v13 = vmax.f32 %v3568_v61, %v3569_v63  ;;  %v3578_v55 = vrot.slane %v3577_v25, 2  ;;  %v3584_v20 = vmax.f32 %v3582_v5, %v3583_v3  ;;  %v3623_v45 = vmax.f32 %v3621_v43, %v3622_v8  ;;  %v4714_v5 = vld [vmem:[#allocation5] sm:$0xff] }
 0x2e3   : > { %v3643_v26 = vrot.slane %v3642_v30, 1  ;;  %v3565_v14 = vmax.f32 %v3563_v36, %v3564_v24  ;;  %v3637_v38 = vmax.f32 %v3635_v49, %v3636_v19  ;;  %v3630_v28 = vmax.f32 %v3628_v17, %v3629_v1 }
 0x2e4   : > { %v3571_v27 = vrot.slane %v3570_v13, 2  ;;  %v3579_v15 = vmax.f32 %v3577_v25, %v3578_v55  ;;  %v3585_v16 = vrot.slane %v3584_v20, 2  ;;  %v4295_v4 = vsel %vm8998_vm0, %v4089_v62, %v4294_v31  ;;  %v4719_v55 = vld [vmem:[#allocation5 + $0x28] sm:$0xff] }
 0x2e5   : > { %v3644_v29 = vmax.f32 %v3642_v30, %v3643_v26  ;;  %v3566_v33 = vrot.slane %v3565_v14, 1  ;;  %v4091_v10 = vsel %vm3981_vm14, %v3623_v45, -inf  ;;  %v4097_v56 = vsel %vm3981_vm14, %v3637_v38, -inf }
 0x2e6   : > { %v3572_v39 = vmax.f32 %v3570_v13, %v3571_v27  ;;  %v3580_v60 = vrot.slane %v3579_v15, 1  ;;  %v3586_v9 = vmax.f32 %v3584_v20, %v3585_v16  ;;  %v4094_v18 = vsel %vm3981_vm14, %v3630_v28, -inf }
 0x2e7   : > { %v3567_v59 = vmax.f32 %v3565_v14, %v3566_v33  ;;  %v4100_v23 = vsel %vm3981_vm14, %v3644_v29, -inf }
 0x2e8   : > { %v3573_v12 = vrot.slane %v3572_v39, 1  ;;  %v3581_v11 = vmax.f32 %v3579_v15, %v3580_v60  ;;  %v3587_v42 = vrot.slane %v3586_v9, 1 }
 0x2e9   : > { %v4090_v7 = vsel %vm3981_vm14, %v3567_v59, -inf }
 0x2ea   : > { %v3574_v40 = vmax.f32 %v3572_v39, %v3573_v12  ;;  %v3588_v47 = vmax.f32 %v3586_v9, %v3587_v42  ;;  %v4092_v44 = vmax.f32 %v4090_v7, %v4091_v10  ;;  %v4096_v41 = vsel %vm3981_vm14, %v3581_v11, -inf }
 0x2eb   : > { %v4098_v62 = vmax.f32 %v4096_v41, %v4097_v56 }
 0x2ec   : > { %v4093_v31 = vsel %vm3981_vm14, %v3574_v40, -inf  ;;  %v4099_v21 = vsel %vm3981_vm14, %v3588_v47, -inf  ;;  %v4296_v37 = vsel %vm4264_vm3, %v4092_v44, %v4295_v4  ;;  %v4473_v46 = vpop.permute.xlu0 %4472  ;;  %v4619_v48 = vpop.permute.xlu1 %4618 }
 0x2ed   : > { %v4095_v34 = vmax.f32 %v4093_v31, %v4094_v18  ;;  %v4101_v58 = vmax.f32 %v4099_v21, %v4100_v23  ;;  %4495 = vst.msk [vmem:[#allocation5 + $0x20] sm:$0xff] %vm4492_vm8, %v4473_v46 }
 0x2ee   : > { %4642 = vst.msk [vmem:[#allocation5 + $0x10] sm:$0xff] %vm4640_vm7, %v4619_v48 }
 0x2ef   : > { %v4297_v35 = vsel %vm4266_vm2, %v4095_v34, %v4296_v37 }
 0x2f0   : > { %v4298_v32 = vsel %vm4268_vm12, %v4098_v62, %v4297_v35  ;;  %v4522_v51 = vpop.permute.xlu0 %4521  ;;  %v4668_v52 = vpop.permute.xlu1 %4667 }
 0x2f1   : > { %v4299_v57 = vsel %vm4270_vm1, %v4101_v58, %v4298_v32  ;;  %4544 = vst.msk [vmem:[#allocation5 + $0x20] sm:$0xff] %vm4541_vm9, %v4522_v51 }
 0x2f2   : > { %4691 = vst.msk [vmem:[#allocation5 + $0x10] sm:$0xff] %vm4689_vm10, %v4668_v52 }
 0x2f3   : > { %4334 = vst.msk [vmem:[#allocation4 + $0x51] sm:$0xff] %vm3981_vm14, %v4299_v57 }
 0x2f4   : > { %v4571_v43 = vpop.permute.xlu0 %4570  ;;  %v4377_v61 = vpop.permute.xlu1 %4376 }
 0x2f5   : > { %4593 = vst.msk [vmem:[#allocation5 + $0x20] sm:$0xff] %vm4590_vm4, %v4571_v43 }
 0x2f6   : > { %4398 = vst.msk [vmem:[#allocation5 + $0x30] sm:$0xff] %vm4394_vm5, %v4377_v61 }
 0x2f8   : > { %v4426_v22 = vpop.permute.xlu1 %4425 }
 0x2f9   : > { %v4716_v17 = vld [vmem:[#allocation5 + $0x10] sm:$0xff]  ;;  %4447 = vst.msk [vmem:[#allocation5 + $0x30] sm:$0xff] %vm4443_vm6, %v4426_v22 }
 0x2fa   : > { %v4456_v49 = vld [vmem:[#allocation4 + $0x50] sm:$0xff]  ;;  %v4730_v6 = vpack.c.bf16 %v4716_v17, %v4714_v5 }
 0x2fb   : > { %v4554_v36 = vld [vmem:[#allocation4 + $0x52] sm:$0xff]  ;;  %4476 = vrot.lane.b32.xlu0 %v4456_v49, %s6554_s28  ;;  %4622 = vrot.lane.b32.xlu1 %v4456_v49, %s8979_s23  ;;  %4351 = vst.msk [vmem:[#allocation5 + $0x50] sm:$0xff] %vm3981_vm14, %v4456_v49 }
 0x2fc   : > { %4709 = vst.msk [vmem:[#allocation5 + $0x38] sm:$0xff] %vm3981_vm14, %v4554_v36  ;;  %4862 = vmatmul.mubr.bf16.vlgmr.msra.gmra.mrb[0].mxu1 %v4730_v6  ;;  %v4505_v8 = vld [vmem:[#allocation4 + $0x51] sm:$0xff] }
 0x2fe   : > { %v6329_v63 = vpop.f32.mrb[20].mxu0 }
 0x2ff   : > { %4525 = vrot.lane.b32.xlu0 %v4505_v8, %s6555_s29  ;;  %4671 = vrot.lane.b32.xlu1 %v4505_v8, %s6558_s24  ;;  %v2310_v25 = vadd.f32 %v8206_v53, %v6329_v63  ;;  %v2301_v3 = vpop.f32.mrb[21].mxu0 }
 0x300   : > { %v2302_v1 = vadd.f32 %v8206_v53, %v2301_v3  ;;  %v6330_v19 = vpop.f32.mrb[22].mxu0 }
 0x301   : > { %v2370_v30 = vmax.f32 %v2310_v25, 0.0  ;;  %v2313_v24 = vadd.f32 %v8206_v53, %v6330_v19  ;;  %v2304_v13 = vpop.f32.mrb[23].mxu0 }
 0x302   : > { %v2368_v45 = vmax.f32 %v2302_v1, 0.0  ;;  %v2305_v26 = vadd.f32 %v8206_v53, %v2304_v13 }
 0x303   : > { %v4721_v20 = vld [vmem:[#allocation5 + $0x38] sm:$0xff]  ;;  %4574 = vrot.lane.b32.xlu0 %v4554_v36, %s6556_s14  ;;  %4380 = vrot.lane.b32.xlu1 %v4505_v8, %s6552_s26  ;;  %v2786_v38 = vcombine.high %v2370_v30, %v2370_v30  ;;  %v2793_v27 = vrot.slane %v2370_v30, %v7541_v2  ;;  %v8299_v15 = vmax.f32 %v2313_v24, 0.0 }
 0x304   : > { %v4733_v14 = vpack.c.bf16 %v4721_v20, %v4719_v55  ;;  %v2752_v16 = vcombine.high %v2368_v45, %v2368_v45  ;;  %v2759_v28 = vrot.slane %v2368_v45, %v7541_v2  ;;  %v8302_v29 = vmax.f32 %v2305_v26, 0.0 }
 0x305   : > { %v2800_v33 = vrot.slane %v2786_v38, %v7541_v2  ;;  %v2801_v39 = vcombine.high %v2793_v27, %v2793_v27  ;;  %v3701_v60 = vsel %vm3084_vm13, %v2793_v27, -inf  ;;  %v2803_v9 = vcombine.high %v8299_v15, %v8299_v15 }
 0x306   : > { %6185 = vmatprep.mubr.msk.bf16.mxu1 %vm3981_vm14, %v4733_v14  ;;  %v3702_v4 = vrot.slane %v3701_v60, 4  ;;  %v2766_v10 = vrot.slane %v2752_v16, %v7541_v2  ;;  %v2767_v59 = vcombine.high %v2759_v28, %v2759_v28  ;;  %v3645_v56 = vsel %vm3084_vm13, %v2759_v28, -inf }
 0x307   : > { %4429 = vrot.lane.b32.xlu1 %v4554_v36, %s6553_s27  ;;  %v2802_v12 = vcombine.high %v2800_v33, %v2800_v33  ;;  %v3708_v11 = vsel %vm3084_vm13, %v2801_v39, -inf  ;;  %v3715_v42 = vsel %vm3084_vm13, %v2800_v33, -inf  ;;  %v3646_v18 = vrot.slane %v3645_v56, 4 }
 0x308   : > { %v3703_v23 = vmax.f32 %v3701_v60, %v3702_v4  ;;  %v3709_v7 = vrot.slane %v3708_v11, 4  ;;  %v3716_v40 = vrot.slane %v3715_v42, 4  ;;  %v2768_v47 = vcombine.high %v2766_v10, %v2766_v10 }
 0x309   : > { %v3722_v44 = vsel %vm3084_vm13, %v2802_v12, -inf  ;;  %v3647_v41 = vmax.f32 %v3645_v56, %v3646_v18  ;;  %v3652_v62 = vsel %vm3084_vm13, %v2767_v59, -inf  ;;  %v3659_v31 = vsel %vm3084_vm13, %v2766_v10, -inf }
 0x30a   : > { %v3704_v21 = vrot.slane %v3703_v23, 2  ;;  %v3710_v37 = vmax.f32 %v3708_v11, %v3709_v7  ;;  %v3717_v46 = vmax.f32 %v3715_v42, %v3716_v40  ;;  %v3723_v48 = vrot.slane %v3722_v44, 4 }
 0x30b   : > { %v3648_v34 = vrot.slane %v3647_v41, 2  ;;  %v3653_v58 = vrot.slane %v3652_v62, 4  ;;  %v3660_v35 = vrot.slane %v3659_v31, 4  ;;  %v3666_v32 = vsel %vm3084_vm13, %v2768_v47, -inf }
 0x30c   : > { %v3705_v51 = vmax.f32 %v3703_v23, %v3704_v21  ;;  %v3711_v52 = vrot.slane %v3710_v37, 2  ;;  %v3718_v57 = vrot.slane %v3717_v46, 2  ;;  %v3724_v43 = vmax.f32 %v3722_v44, %v3723_v48 }
 0x30d   : > { %v3649_v61 = vmax.f32 %v3647_v41, %v3648_v34  ;;  %v3654_v22 = vmax.f32 %v3652_v62, %v3653_v58  ;;  %v3661_v5 = vmax.f32 %v3659_v31, %v3660_v35  ;;  %v3667_v17 = vrot.slane %v3666_v32, 4 }
 0x30e   : > { %v3706_v49 = vrot.slane %v3705_v51, 1  ;;  %v3712_v6 = vmax.f32 %v3710_v37, %v3711_v52  ;;  %v3719_v36 = vmax.f32 %v3717_v46, %v3718_v57  ;;  %v3725_v8 = vrot.slane %v3724_v43, 2 }
 0x30f   : > { %v3650_v63 = vrot.slane %v3649_v61, 1  ;;  %v3655_v25 = vrot.slane %v3654_v22, 2  ;;  %v3662_v3 = vrot.slane %v3661_v5, 2  ;;  %v3668_v1 = vmax.f32 %v3666_v32, %v3667_v17 }
 0x310   : > { %v3707_v19 = vmax.f32 %v3705_v51, %v3706_v49  ;;  %v3713_v30 = vrot.slane %v3712_v6, 1  ;;  %v3720_v24 = vrot.slane %v3719_v36, 1  ;;  %v3726_v13 = vmax.f32 %v3724_v43, %v3725_v8 }
 0x311   : > { %v3651_v55 = vmax.f32 %v3649_v61, %v3650_v63  ;;  %v3656_v20 = vmax.f32 %v3654_v22, %v3655_v25  ;;  %v3663_v45 = vmax.f32 %v3661_v5, %v3662_v3  ;;  %v3669_v26 = vrot.slane %v3668_v1, 2 }
 0x312   : > { %v3714_v14 = vmax.f32 %v3712_v6, %v3713_v30  ;;  %v3721_v38 = vmax.f32 %v3719_v36, %v3720_v24  ;;  %v3727_v27 = vrot.slane %v3726_v13, 1  ;;  %v4103_v16 = vsel %vm3981_vm14, %v3707_v19, -inf }
 0x313   : > { %v3657_v28 = vrot.slane %v3656_v20, 1  ;;  %v3664_v33 = vrot.slane %v3663_v45, 1  ;;  %v3670_v39 = vmax.f32 %v3668_v1, %v3669_v26  ;;  %v4102_v60 = vsel %vm3981_vm14, %v3651_v55, -inf }
 0x314   : > { %v3728_v4 = vmax.f32 %v3726_v13, %v3727_v27  ;;  %v4106_v10 = vsel %vm3981_vm14, %v3714_v14, -inf  ;;  %v4109_v59 = vsel %vm3981_vm14, %v3721_v38, -inf  ;;  %v4104_v56 = vmax.f32 %v4102_v60, %v4103_v16 }
 0x315   : > { %v3658_v12 = vmax.f32 %v3656_v20, %v3657_v28  ;;  %v3665_v11 = vmax.f32 %v3663_v45, %v3664_v33  ;;  %v3671_v42 = vrot.slane %v3670_v39, 1  ;;  %v2810_v18 = vrot.slane %v8299_v15, %v7541_v2 }
 0x316   : > { %v8325_v23 = vsel %vm3981_vm14, %v3728_v4, -inf  ;;  %v2817_v7 = vrot.slane %v2803_v9, %v7541_v2  ;;  %v2769_v40 = vcombine.high %v8302_v29, %v8302_v29  ;;  %v2776_v47 = vrot.slane %v8302_v29, %v7541_v2 }
 0x317   : > { %v3672_v44 = vmax.f32 %v3670_v39, %v3671_v42  ;;  %v4105_v41 = vsel %vm3981_vm14, %v3658_v12, -inf  ;;  %v4108_v62 = vsel %vm3981_vm14, %v3665_v11, -inf  ;;  %v2818_v31 = vcombine.high %v2810_v18, %v2810_v18 }
 0x318   : > { %v4107_v21 = vmax.f32 %v4105_v41, %v4106_v10  ;;  %v4110_v37 = vmax.f32 %v4108_v62, %v4109_v59  ;;  %v2819_v46 = vcombine.high %v2817_v7, %v2817_v7  ;;  %v3729_v48 = vsel %vm3084_vm13, %v2810_v18, -inf }
 0x319   : > { %v4111_v15 = vsel %vm3981_vm14, %v3672_v44, -inf  ;;  %v3730_v9 = vrot.slane %v3729_v48, 4  ;;  %v3736_v34 = vsel %vm3084_vm13, %v2818_v31, -inf  ;;  %v3743_v58 = vsel %vm3084_vm13, %v2817_v7, -inf }
 0x31a   : > { %v4113_v29 = vmax.f32 %v4111_v15, %v8325_v23  ;;  %v4300_v35 = vsel %vm4258_vm15, %v4107_v21, %v4104_v56  ;;  %v3737_v32 = vrot.slane %v3736_v34, 4  ;;  %v3744_v51 = vrot.slane %v3743_v58, 4 }
 0x31b   : > { %v4301_v52 = vsel %vm8997_vm11, %v4110_v37, %v4300_v35  ;;  %v3731_v57 = vmax.f32 %v3729_v48, %v3730_v9  ;;  %v3750_v43 = vsel %vm3084_vm13, %v2819_v46, -inf  ;;  %v2783_v61 = vrot.slane %v2769_v40, %v7541_v2 }
 0x31c   : > { %v3738_v22 = vmax.f32 %v3736_v34, %v3737_v32  ;;  %v3745_v5 = vmax.f32 %v3743_v58, %v3744_v51  ;;  %v3751_v17 = vrot.slane %v3750_v43, 4  ;;  %v2784_v49 = vcombine.high %v2776_v47, %v2776_v47 }
 0x31d   : > { %v3732_v6 = vrot.slane %v3731_v57, 2  ;;  %v2785_v36 = vcombine.high %v2783_v61, %v2783_v61  ;;  %v3673_v8 = vsel %vm3084_vm13, %v2776_v47, -inf  ;;  %v3687_v63 = vsel %vm3084_vm13, %v2783_v61, -inf }
 0x31e   : > { %v3739_v25 = vrot.slane %v3738_v22, 2  ;;  %v3746_v3 = vrot.slane %v3745_v5, 2  ;;  %v3752_v1 = vmax.f32 %v3750_v43, %v3751_v17  ;;  %v3674_v19 = vrot.slane %v3673_v8, 4 }
 0x31f   : > { %v3733_v30 = vmax.f32 %v3731_v57, %v3732_v6  ;;  %v3680_v24 = vsel %vm3084_vm13, %v2784_v49, -inf  ;;  %v3688_v13 = vrot.slane %v3687_v63, 4  ;;  %v3694_v55 = vsel %vm3084_vm13, %v2785_v36, -inf }
 0x320   : > { %v3740_v20 = vmax.f32 %v3738_v22, %v3739_v25  ;;  %v3747_v45 = vmax.f32 %v3745_v5, %v3746_v3  ;;  %v3753_v26 = vrot.slane %v3752_v1, 2  ;;  %v3675_v14 = vmax.f32 %v3673_v8, %v3674_v19 }
 0x321   : > { %v3734_v38 = vrot.slane %v3733_v30, 1  ;;  %v3681_v27 = vrot.slane %v3680_v24, 4  ;;  %v3689_v16 = vmax.f32 %v3687_v63, %v3688_v13  ;;  %v3695_v28 = vrot.slane %v3694_v55, 4 }
 0x322   : > { %v3741_v33 = vrot.slane %v3740_v20, 1  ;;  %v3748_v39 = vrot.slane %v3747_v45, 1  ;;  %v3754_v60 = vmax.f32 %v3752_v1, %v3753_v26  ;;  %v3676_v4 = vrot.slane %v3675_v14, 2 }
 0x323   : > { %v3682_v10 = vmax.f32 %v3680_v24, %v3681_v27  ;;  %v3690_v59 = vrot.slane %v3689_v16, 2  ;;  %v3696_v56 = vmax.f32 %v3694_v55, %v3695_v28  ;;  %v3735_v12 = vmax.f32 %v3733_v30, %v3734_v38 }
 0x324   : > { %v3755_v11 = vrot.slane %v3754_v60, 1  ;;  %v3677_v42 = vmax.f32 %v3675_v14, %v3676_v4  ;;  %v3749_v18 = vmax.f32 %v3747_v45, %v3748_v39  ;;  %v3742_v47 = vmax.f32 %v3740_v20, %v3741_v33  ;;  %v4705_v45 = vld [vmem:[#allocation4 + $0x92] sm:$0xff] }
 0x325   : > { %v3683_v23 = vrot.slane %v3682_v10, 2  ;;  %v3691_v7 = vmax.f32 %v3689_v16, %v3690_v59  ;;  %v3697_v40 = vrot.slane %v3696_v56, 2  ;;  %v4302_v37 = vsel %vm8998_vm0, %v4113_v29, %v4301_v52  ;;  %4713 = vst.msk [vmem:[#allocation5 + $0x78] sm:$0xff] %vm3981_vm14, %v4705_v45 }
 0x326   : > { %v3756_v44 = vmax.f32 %v3754_v60, %v3755_v11  ;;  %v3678_v41 = vrot.slane %v3677_v42, 1  ;;  %v4115_v46 = vsel %vm3981_vm14, %v3735_v12, -inf  ;;  %v4121_v15 = vsel %vm3981_vm14, %v3749_v18, -inf }
 0x327   : > { %v3684_v62 = vmax.f32 %v3682_v10, %v3683_v23  ;;  %v3692_v31 = vrot.slane %v3691_v7, 1  ;;  %v3698_v21 = vmax.f32 %v3696_v56, %v3697_v40  ;;  %v4118_v35 = vsel %vm3981_vm14, %v3742_v47, -inf }
 0x328   : > { %v3679_v48 = vmax.f32 %v3677_v42, %v3678_v41  ;;  %v4124_v32 = vsel %vm3981_vm14, %v3756_v44, -inf }
 0x329   : > { %v3685_v9 = vrot.slane %v3684_v62, 1  ;;  %v3693_v34 = vmax.f32 %v3691_v7, %v3692_v31  ;;  %v3699_v58 = vrot.slane %v3698_v21, 1 }
 0x32a   : > { %v4114_v51 = vsel %vm3981_vm14, %v3679_v48, -inf }
 0x32b   : > { %v3686_v57 = vmax.f32 %v3684_v62, %v3685_v9  ;;  %v3700_v43 = vmax.f32 %v3698_v21, %v3699_v58  ;;  %v4116_v61 = vmax.f32 %v4114_v51, %v4115_v46  ;;  %v4120_v22 = vsel %vm3981_vm14, %v3693_v34, -inf }
 0x32c   : > { %v4122_v29 = vmax.f32 %v4120_v22, %v4121_v15  ;;  %v4621_v49 = vpop.permute.xlu0 %4620  ;;  %v4475_v6 = vpop.permute.xlu1 %4474 }
 0x32d   : > { %v4117_v52 = vsel %vm3981_vm14, %v3686_v57, -inf  ;;  %v4123_v5 = vsel %vm3981_vm14, %v3700_v43, -inf  ;;  %v4303_v17 = vsel %vm4264_vm3, %v4116_v61, %v4302_v37  ;;  %4643 = vst.msk [vmem:[#allocation5 + $0x20] sm:$0xff] %vm4640_vm7, %v4621_v49 }
 0x32e   : > { %v4119_v36 = vmax.f32 %v4117_v52, %v4118_v35  ;;  %v4125_v8 = vmax.f32 %v4123_v5, %v4124_v32  ;;  %4496 = vst.msk [vmem:[#allocation5 + $0x30] sm:$0xff] %vm4492_vm8, %v4475_v6 }
 0x330   : > { %v4304_v63 = vsel %vm4266_vm2, %v4119_v36, %v4303_v17  ;;  %v4670_v3 = vpop.permute.xlu0 %4669  ;;  %v4524_v1 = vpop.permute.xlu1 %4523 }
 0x331   : > { %v4305_v25 = vsel %vm4268_vm12, %v4122_v29, %v4304_v63  ;;  %4692 = vst.msk [vmem:[#allocation5 + $0x20] sm:$0xff] %vm4689_vm10, %v4670_v3 }
 0x332   : > { %v4306_v19 = vsel %vm4270_vm1, %v4125_v8, %v4305_v25  ;;  %4545 = vst.msk [vmem:[#allocation5 + $0x30] sm:$0xff] %vm4541_vm9, %v4524_v1 }
 0x333   : > { %4335 = vst.msk [vmem:[#allocation4 + $0x61] sm:$0xff] %vm3981_vm14, %v4306_v19 }
 0x334   : > { %v4379_v30 = vpop.permute.xlu0 %4378  ;;  %v4573_v24 = vpop.permute.xlu1 %4572 }
 0x335   : > { %4399 = vst.msk [vmem:[#allocation5 + $0x40] sm:$0xff] %vm4394_vm5, %v4379_v30 }
 0x336   : > { %4594 = vst.msk [vmem:[#allocation5 + $0x30] sm:$0xff] %vm4590_vm4, %v4573_v24 }
 0x338   : > { %v4428_v13 = vpop.permute.xlu0 %4427 }
 0x339   : > { %4448 = vst.msk [vmem:[#allocation5 + $0x40] sm:$0xff] %vm4443_vm6, %v4428_v13 }
 0x33a   : > { %v4604_v55 = vld [vmem:[#allocation4 + $0x60] sm:$0xff] }
 0x33b   : > { %v4555_v20 = vld [vmem:[#allocation4 + $0x62] sm:$0xff]  ;;  %4624 = vrot.lane.b32.xlu0 %v4604_v55, %s8979_s23  ;;  %4478 = vrot.lane.b32.xlu1 %v4604_v55, %s6554_s28  ;;  %4352 = vst.msk [vmem:[#allocation5 + $0x60] sm:$0xff] %vm3981_vm14, %v4604_v55 }
 0x33c   : > { %4710 = vst.msk [vmem:[#allocation5 + $0x48] sm:$0xff] %vm3981_vm14, %v4555_v20  ;;  %v4653_v26 = vld [vmem:[#allocation4 + $0x61] sm:$0xff] }
 0x33e   : > { %v6333_v14 = vpop.f32.mrb[24].mxu0 }
 0x33f   : > { %4673 = vrot.lane.b32.xlu0 %v4653_v26, %s6558_s24  ;;  %4527 = vrot.lane.b32.xlu1 %v4653_v26, %s6555_s29  ;;  %v2326_v38 = vadd.f32 %v8206_v53, %v6333_v14  ;;  %v2317_v27 = vpop.f32.mrb[25].mxu0 }
 0x340   : > { %v2318_v16 = vadd.f32 %v8206_v53, %v2317_v27  ;;  %v6334_v28 = vpop.f32.mrb[26].mxu0 }
 0x341   : > { %v2374_v33 = vmax.f32 %v2326_v38, 0.0  ;;  %v2329_v39 = vadd.f32 %v8206_v53, %v6334_v28  ;;  %v2320_v60 = vpop.f32.mrb[27].mxu0 }
 0x342   : > { %v2372_v4 = vmax.f32 %v2318_v16, 0.0  ;;  %v2321_v10 = vadd.f32 %v8206_v53, %v2320_v60 }
 0x343   : > { %4382 = vrot.lane.b32.xlu0 %v4653_v26, %s6552_s26  ;;  %4576 = vrot.lane.b32.xlu1 %v4555_v20, %s6556_s14  ;;  %v2854_v59 = vcombine.high %v2374_v33, %v2374_v33  ;;  %v2861_v56 = vrot.slane %v2374_v33, %v7541_v2  ;;  %v8385_v12 = vmax.f32 %v2329_v39, 0.0 }
 0x344   : > { %v2820_v11 = vcombine.high %v2372_v4, %v2372_v4  ;;  %v2827_v42 = vrot.slane %v2372_v4, %v7541_v2  ;;  %v8388_v18 = vmax.f32 %v2321_v10, 0.0 }
 0x345   : > { %v2868_v23 = vrot.slane %v2854_v59, %v7541_v2  ;;  %v2869_v7 = vcombine.high %v2861_v56, %v2861_v56  ;;  %v3813_v40 = vsel %vm3084_vm13, %v2861_v56, -inf  ;;  %v2871_v53 = vcombine.high %v8385_v12, %v8385_v12 }
 0x346   : > { %v3814_v47 = vrot.slane %v3813_v40, 4  ;;  %v2834_v44 = vrot.slane %v2820_v11, %v7541_v2  ;;  %v2835_v41 = vcombine.high %v2827_v42, %v2827_v42  ;;  %v3757_v62 = vsel %vm3084_vm13, %v2827_v42, -inf }
 0x347   : > { %4431 = vrot.lane.b32.xlu0 %v4555_v20, %s6553_s27  ;;  %v2870_v31 = vcombine.high %v2868_v23, %v2868_v23  ;;  %v3820_v21 = vsel %vm3084_vm13, %v2869_v7, -inf  ;;  %v3827_v37 = vsel %vm3084_vm13, %v2868_v23, -inf  ;;  %v3758_v46 = vrot.slane %v3757_v62, 4 }
 0x348   : > { %v3815_v48 = vmax.f32 %v3813_v40, %v3814_v47  ;;  %v3821_v15 = vrot.slane %v3820_v21, 4  ;;  %v3828_v9 = vrot.slane %v3827_v37, 4  ;;  %v2836_v34 = vcombine.high %v2834_v44, %v2834_v44 }
 0x349   : > { %v3834_v58 = vsel %vm3084_vm13, %v2870_v31, -inf  ;;  %v3759_v35 = vmax.f32 %v3757_v62, %v3758_v46  ;;  %v3764_v32 = vsel %vm3084_vm13, %v2835_v41, -inf  ;;  %v3771_v51 = vsel %vm3084_vm13, %v2834_v44, -inf }
 0x34a   : > { %v3816_v57 = vrot.slane %v3815_v48, 2  ;;  %v3822_v43 = vmax.f32 %v3820_v21, %v3821_v15  ;;  %v3829_v61 = vmax.f32 %v3827_v37, %v3828_v9  ;;  %v3835_v22 = vrot.slane %v3834_v58, 4 }
 0x34b   : > { %v3760_v29 = vrot.slane %v3759_v35, 2  ;;  %v3765_v52 = vrot.slane %v3764_v32, 4  ;;  %v3772_v5 = vrot.slane %v3771_v51, 4  ;;  %v3778_v17 = vsel %vm3084_vm13, %v2836_v34, -inf }
 0x34c   : > { %v3817_v49 = vmax.f32 %v3815_v48, %v3816_v57  ;;  %v3823_v6 = vrot.slane %v3822_v43, 2  ;;  %v3830_v36 = vrot.slane %v3829_v61, 2  ;;  %v3836_v8 = vmax.f32 %v3834_v58, %v3835_v22 }
 0x34d   : > { %v3761_v63 = vmax.f32 %v3759_v35, %v3760_v29  ;;  %v3766_v25 = vmax.f32 %v3764_v32, %v3765_v52  ;;  %v3773_v3 = vmax.f32 %v3771_v51, %v3772_v5  ;;  %v3779_v1 = vrot.slane %v3778_v17, 4 }
 0x34e   : > { %v3818_v19 = vrot.slane %v3817_v49, 1  ;;  %v3824_v30 = vmax.f32 %v3822_v43, %v3823_v6  ;;  %v3831_v24 = vmax.f32 %v3829_v61, %v3830_v36  ;;  %v3837_v13 = vrot.slane %v3836_v8, 2 }
 0x34f   : > { %v3762_v55 = vrot.slane %v3761_v63, 1  ;;  %v3767_v20 = vrot.slane %v3766_v25, 2  ;;  %v3774_v45 = vrot.slane %v3773_v3, 2  ;;  %v3780_v26 = vmax.f32 %v3778_v17, %v3779_v1 }
 0x350   : > { %v3819_v14 = vmax.f32 %v3817_v49, %v3818_v19  ;;  %v3825_v38 = vrot.slane %v3824_v30, 1  ;;  %v3832_v27 = vrot.slane %v3831_v24, 1  ;;  %v3838_v16 = vmax.f32 %v3836_v8, %v3837_v13 }
 0x351   : > { %v3763_v28 = vmax.f32 %v3761_v63, %v3762_v55  ;;  %v3768_v33 = vmax.f32 %v3766_v25, %v3767_v20  ;;  %v3775_v39 = vmax.f32 %v3773_v3, %v3774_v45  ;;  %v3781_v60 = vrot.slane %v3780_v26, 2 }
 0x352   : > { %v3826_v4 = vmax.f32 %v3824_v30, %v3825_v38  ;;  %v3833_v10 = vmax.f32 %v3831_v24, %v3832_v27  ;;  %v3839_v59 = vrot.slane %v3838_v16, 1  ;;  %v4127_v56 = vsel %vm3981_vm14, %v3819_v14, -inf }
 0x353   : > { %v3769_v11 = vrot.slane %v3768_v33, 1  ;;  %v3776_v42 = vrot.slane %v3775_v39, 1  ;;  %v3782_v23 = vmax.f32 %v3780_v26, %v3781_v60  ;;  %v4126_v7 = vsel %vm3981_vm14, %v3763_v28, -inf }
 0x354   : > { %v3840_v40 = vmax.f32 %v3838_v16, %v3839_v59  ;;  %v4130_v47 = vsel %vm3981_vm14, %v3826_v4, -inf  ;;  %v4133_v44 = vsel %vm3981_vm14, %v3833_v10, -inf  ;;  %v4128_v41 = vmax.f32 %v4126_v7, %v4127_v56 }
 0x355   : > { %v3770_v62 = vmax.f32 %v3768_v33, %v3769_v11  ;;  %v3777_v31 = vmax.f32 %v3775_v39, %v3776_v42  ;;  %v3783_v21 = vrot.slane %v3782_v23, 1  ;;  %v2878_v37 = vrot.slane %v8385_v12, %v7541_v2 }
 0x356   : > { %v8410_v46 = vsel %vm3981_vm14, %v3840_v40, -inf  ;;  %v2885_v48 = vrot.slane %v2871_v53, %v7541_v2  ;;  %v2837_v15 = vcombine.high %v8388_v18, %v8388_v18  ;;  %v2844_v9 = vrot.slane %v8388_v18, %v7541_v2 }
 0x357   : > { %v3784_v34 = vmax.f32 %v3782_v23, %v3783_v21  ;;  %v4129_v58 = vsel %vm3981_vm14, %v3770_v62, -inf  ;;  %v4132_v35 = vsel %vm3981_vm14, %v3777_v31, -inf  ;;  %v2886_v32 = vcombine.high %v2878_v37, %v2878_v37 }
 0x358   : > { %v4131_v51 = vmax.f32 %v4129_v58, %v4130_v47  ;;  %v4134_v57 = vmax.f32 %v4132_v35, %v4133_v44  ;;  %v2887_v43 = vcombine.high %v2885_v48, %v2885_v48  ;;  %v3841_v61 = vsel %vm3084_vm13, %v2878_v37, -inf }
 0x359   : > { %v4135_v12 = vsel %vm3981_vm14, %v3784_v34, -inf  ;;  %v3842_v53 = vrot.slane %v3841_v61, 4  ;;  %v3848_v22 = vsel %vm3084_vm13, %v2886_v32, -inf  ;;  %v3855_v29 = vsel %vm3084_vm13, %v2885_v48, -inf }
 0x35a   : > { %v4137_v18 = vmax.f32 %v4135_v12, %v8410_v46  ;;  %v4307_v52 = vsel %vm4258_vm15, %v4131_v51, %v4128_v41  ;;  %v3849_v5 = vrot.slane %v3848_v22, 4  ;;  %v3856_v17 = vrot.slane %v3855_v29, 4 }
 0x35b   : > { %v4308_v49 = vsel %vm8997_vm11, %v4134_v57, %v4307_v52  ;;  %v3843_v6 = vmax.f32 %v3841_v61, %v3842_v53  ;;  %v3862_v36 = vsel %vm3084_vm13, %v2887_v43, -inf  ;;  %v2851_v8 = vrot.slane %v2837_v15, %v7541_v2 }
 0x35c   : > { %v3850_v63 = vmax.f32 %v3848_v22, %v3849_v5  ;;  %v3857_v25 = vmax.f32 %v3855_v29, %v3856_v17  ;;  %v3863_v3 = vrot.slane %v3862_v36, 4  ;;  %v2852_v1 = vcombine.high %v2844_v9, %v2844_v9 }
 0x35d   : > { %v3844_v19 = vrot.slane %v3843_v6, 2  ;;  %v2853_v30 = vcombine.high %v2851_v8, %v2851_v8  ;;  %v3785_v24 = vsel %vm3084_vm13, %v2844_v9, -inf  ;;  %v3799_v13 = vsel %vm3084_vm13, %v2851_v8, -inf }
 0x35e   : > { %v3851_v55 = vrot.slane %v3850_v63, 2  ;;  %v3858_v20 = vrot.slane %v3857_v25, 2  ;;  %v3864_v45 = vmax.f32 %v3862_v36, %v3863_v3  ;;  %v3786_v26 = vrot.slane %v3785_v24, 4 }
 0x35f   : > { %v3845_v14 = vmax.f32 %v3843_v6, %v3844_v19  ;;  %v3792_v38 = vsel %vm3084_vm13, %v2852_v1, -inf  ;;  %v3800_v27 = vrot.slane %v3799_v13, 4  ;;  %v3806_v16 = vsel %vm3084_vm13, %v2853_v30, -inf }
 0x360   : > { %v3852_v28 = vmax.f32 %v3850_v63, %v3851_v55  ;;  %v3859_v33 = vmax.f32 %v3857_v25, %v3858_v20  ;;  %v3865_v39 = vrot.slane %v3864_v45, 2  ;;  %v3787_v60 = vmax.f32 %v3785_v24, %v3786_v26 }
 0x361   : > { %v3846_v4 = vrot.slane %v3845_v14, 1  ;;  %v3793_v10 = vrot.slane %v3792_v38, 4  ;;  %v3801_v59 = vmax.f32 %v3799_v13, %v3800_v27  ;;  %v3807_v56 = vrot.slane %v3806_v16, 4  ;;  %v4718_v27 = vld [vmem:[#allocation5 + $0x20] sm:$0xff] }
 0x362   : > { %v3853_v11 = vrot.slane %v3852_v28, 1  ;;  %v3860_v42 = vrot.slane %v3859_v33, 1  ;;  %v3866_v23 = vmax.f32 %v3864_v45, %v3865_v39  ;;  %v3788_v7 = vrot.slane %v3787_v60, 2 }
 0x363   : > { %v3794_v40 = vmax.f32 %v3792_v38, %v3793_v10  ;;  %v3802_v47 = vrot.slane %v3801_v59, 2  ;;  %v3808_v44 = vmax.f32 %v3806_v16, %v3807_v56  ;;  %v3847_v41 = vmax.f32 %v3845_v14, %v3846_v4  ;;  %v6476_v10 = vld [vmem:[%s8965_s2] ss:$0 sm:$0xff] }
 0x364   : > { %v3867_v62 = vrot.slane %v3866_v23, 1  ;;  %v3789_v31 = vmax.f32 %v3787_v60, %v3788_v7  ;;  %v3861_v21 = vmax.f32 %v3859_v33, %v3860_v42  ;;  %v3854_v15 = vmax.f32 %v3852_v28, %v3853_v11 }
 0x365   : > { %v3795_v37 = vrot.slane %v3794_v40, 2  ;;  %v3803_v46 = vmax.f32 %v3801_v59, %v3802_v47  ;;  %v3809_v48 = vrot.slane %v3808_v44, 2  ;;  %v4309_v51 = vsel %vm8998_vm0, %v4137_v18, %v4308_v49  ;;  %v4723_v47 = vld [vmem:[#allocation5 + $0x48] sm:$0xff] }
 0x366   : > { %v3868_v9 = vmax.f32 %v3866_v23, %v3867_v62  ;;  %v3790_v34 = vrot.slane %v3789_v31, 1  ;;  %v4139_v57 = vsel %vm3981_vm14, %v3847_v41, -inf  ;;  %v4145_v61 = vsel %vm3981_vm14, %v3861_v21, -inf }
 0x367   : > { %v3796_v58 = vmax.f32 %v3794_v40, %v3795_v37  ;;  %v3804_v35 = vrot.slane %v3803_v46, 1  ;;  %v3810_v32 = vmax.f32 %v3808_v44, %v3809_v48  ;;  %v4142_v29 = vsel %vm3981_vm14, %v3854_v15, -inf }
 0x368   : > { %v3791_v43 = vmax.f32 %v3789_v31, %v3790_v34  ;;  %v4148_v52 = vsel %vm3981_vm14, %v3868_v9, -inf }
 0x369   : > { %v3797_v12 = vrot.slane %v3796_v58, 1  ;;  %v3805_v53 = vmax.f32 %v3803_v46, %v3804_v35  ;;  %v3811_v22 = vrot.slane %v3810_v32, 1 }
 0x36a   : > { %v4138_v5 = vsel %vm3981_vm14, %v3791_v43, -inf }
 0x36b   : > { %v3798_v17 = vmax.f32 %v3796_v58, %v3797_v12  ;;  %v3812_v6 = vmax.f32 %v3810_v32, %v3811_v22  ;;  %v4140_v36 = vmax.f32 %v4138_v5, %v4139_v57  ;;  %v4144_v8 = vsel %vm3981_vm14, %v3805_v53, -inf }
 0x36c   : > { %v4146_v18 = vmax.f32 %v4144_v8, %v4145_v61 }
 0x36d   : > { %v4141_v49 = vsel %vm3981_vm14, %v3798_v17, -inf  ;;  %v4147_v63 = vsel %vm3981_vm14, %v3812_v6, -inf  ;;  %v4310_v25 = vsel %vm4264_vm3, %v4140_v36, %v4309_v51  ;;  %v4477_v3 = vpop.permute.xlu0 %4476  ;;  %v4623_v1 = vpop.permute.xlu1 %4622 }
 0x36e   : > { %v4143_v19 = vmax.f32 %v4141_v49, %v4142_v29  ;;  %v4149_v30 = vmax.f32 %v4147_v63, %v4148_v52  ;;  %4497 = vst.msk [vmem:[#allocation5 + $0x40] sm:$0xff] %vm4492_vm8, %v4477_v3 }
 0x36f   : > { %4644 = vst.msk [vmem:[#allocation5 + $0x30] sm:$0xff] %vm4640_vm7, %v4623_v1 }
 0x370   : > { %v4311_v24 = vsel %vm4266_vm2, %v4143_v19, %v4310_v25 }
 0x371   : > { %v4312_v13 = vsel %vm4268_vm12, %v4146_v18, %v4311_v24  ;;  %v4526_v55 = vpop.permute.xlu0 %4525  ;;  %v4672_v20 = vpop.permute.xlu1 %4671 }
 0x372   : > { %v4313_v45 = vsel %vm4270_vm1, %v4149_v30, %v4312_v13  ;;  %4546 = vst.msk [vmem:[#allocation5 + $0x40] sm:$0xff] %vm4541_vm9, %v4526_v55 }
 0x373   : > { %4693 = vst.msk [vmem:[#allocation5 + $0x30] sm:$0xff] %vm4689_vm10, %v4672_v20 }
 0x374   : > { %4336 = vst.msk [vmem:[#allocation4 + $0x71] sm:$0xff] %vm3981_vm14, %v4313_v45 }
 0x375   : > { %v4575_v26 = vpop.permute.xlu0 %4574  ;;  %v4381_v14 = vpop.permute.xlu1 %4380 }
 0x376   : > { %4595 = vst.msk [vmem:[#allocation5 + $0x40] sm:$0xff] %vm4590_vm4, %v4575_v26 }
 0x377   : > { %4400 = vst.msk [vmem:[#allocation5 + $0x50] sm:$0xff] %vm4394_vm5, %v4381_v14 }
 0x379   : > { %v4430_v38 = vpop.permute.xlu1 %4429 }
 0x37a   : > { %v4720_v16 = vld [vmem:[#allocation5 + $0x30] sm:$0xff]  ;;  %4449 = vst.msk [vmem:[#allocation5 + $0x50] sm:$0xff] %vm4443_vm6, %v4430_v38 }
 0x37b   : > { %v4458_v28 = vld [vmem:[#allocation4 + $0x70] sm:$0xff]  ;;  %v4732_v33 = vpack.c.bf16 %v4720_v16, %v4718_v27 }
 0x37c   : > { %v4556_v39 = vld [vmem:[#allocation4 + $0x72] sm:$0xff]  ;;  %4480 = vrot.lane.b32.xlu0 %v4458_v28, %s6554_s28  ;;  %4626 = vrot.lane.b32.xlu1 %v4458_v28, %s8979_s23  ;;  %4353 = vst.msk [vmem:[#allocation5 + $0x70] sm:$0xff] %vm3981_vm14, %v4458_v28 }
 0x37d   : > { %4711 = vst.msk [vmem:[#allocation5 + $0x58] sm:$0xff] %vm3981_vm14, %v4556_v39  ;;  %4870 = vmatmul.mubr.bf16.gmra.mrb[4].mxu1 %v4732_v33  ;;  %v4507_v60 = vld [vmem:[#allocation4 + $0x71] sm:$0xff]  ;;  %v6337_v4 = vpop.f32.mrb[28].mxu0 }
 0x37e   : > { %v2342_v59 = vadd.f32 %v6476_v10, %v6337_v4  ;;  %v2333_v56 = vpop.f32.mrb[29].mxu0 }
 0x37f   : > { %v2334_v11 = vadd.f32 %v6476_v10, %v2333_v56  ;;  %v6338_v42 = vpop.f32.mrb[30].mxu0 }
 0x380   : > { %4529 = vrot.lane.b32.xlu0 %v4507_v60, %s6555_s29  ;;  %4675 = vrot.lane.b32.xlu1 %v4507_v60, %s6558_s24  ;;  %v2378_v23 = vmax.f32 %v2342_v59, 0.0  ;;  %v2345_v7 = vadd.f32 %v6476_v10, %v6338_v42  ;;  %v2336_v40 = vpop.f32.mrb[31].mxu0 }
 0x381   : > { %v2376_v41 = vmax.f32 %v2334_v11, 0.0  ;;  %v2337_v62 = vadd.f32 %v6476_v10, %v2336_v40 }
 0x382   : > { %v2922_v21 = vcombine.high %v2378_v23, %v2378_v23  ;;  %v2929_v37 = vrot.slane %v2378_v23, %v7541_v2  ;;  %v8468_v46 = vmax.f32 %v2345_v7, 0.0 }
 0x383   : > { %v2888_v48 = vcombine.high %v2376_v41, %v2376_v41  ;;  %v2895_v15 = vrot.slane %v2376_v41, %v7541_v2  ;;  %v8471_v9 = vmax.f32 %v2337_v62, 0.0 }
 0x384   : > { %v4725_v44 = vld [vmem:[#allocation5 + $0x58] sm:$0xff]  ;;  %4578 = vrot.lane.b32.xlu0 %v4556_v39, %s6556_s14  ;;  %4384 = vrot.lane.b32.xlu1 %v4507_v60, %s6552_s26  ;;  %v2936_v34 = vrot.slane %v2922_v21, %v7541_v2  ;;  %v2937_v58 = vcombine.high %v2929_v37, %v2929_v37  ;;  %v3925_v35 = vsel %vm3084_vm13, %v2929_v37, -inf  ;;  %v2939_v32 = vcombine.high %v8468_v46, %v8468_v46  ;;  %s324_s26 = scalar_lea.vmem [#allocation7], %s323_s25 }
 0x385   : > { %v4735_v31 = vpack.c.bf16 %v4725_v44, %v4723_v47  ;;  %v3926_v51 = vrot.slane %v3925_v35, 4  ;;  %v2902_v57 = vrot.slane %v2888_v48, %v7541_v2  ;;  %v2903_v43 = vcombine.high %v2895_v15, %v2895_v15 }
 0x386   : > { %v3869_v61 = vsel %vm3084_vm13, %v2895_v15, -inf  ;;  %v2938_v12 = vcombine.high %v2936_v34, %v2936_v34  ;;  %v3932_v53 = vsel %vm3084_vm13, %v2937_v58, -inf  ;;  %v3939_v22 = vsel %vm3084_vm13, %v2936_v34, -inf }
 0x387   : > { %6186 = vmatprep.mubr.msk.bf16.mxu1 %vm3981_vm14, %v4735_v31  ;;  %v3870_v29 = vrot.slane %v3869_v61, 4  ;;  %v3927_v52 = vmax.f32 %v3925_v35, %v3926_v51  ;;  %v3933_v5 = vrot.slane %v3932_v53, 4  ;;  %v3940_v17 = vrot.slane %v3939_v22, 4 }
 0x388   : > { %4433 = vrot.lane.b32.xlu1 %v4556_v39, %s6553_s27  ;;  %v2904_v6 = vcombine.high %v2902_v57, %v2902_v57  ;;  %v3946_v36 = vsel %vm3084_vm13, %v2938_v12, -inf  ;;  %v3876_v18 = vsel %vm3084_vm13, %v2903_v43, -inf  ;;  %v3883_v49 = vsel %vm3084_vm13, %v2902_v57, -inf }
 0x389   : > { %v3871_v8 = vmax.f32 %v3869_v61, %v3870_v29  ;;  %v3928_v63 = vrot.slane %v3927_v52, 2  ;;  %v3934_v25 = vmax.f32 %v3932_v53, %v3933_v5  ;;  %v3941_v3 = vmax.f32 %v3939_v22, %v3940_v17 }
 0x38a   : > { %v3947_v1 = vrot.slane %v3946_v36, 4  ;;  %v3877_v30 = vrot.slane %v3876_v18, 4  ;;  %v3884_v24 = vrot.slane %v3883_v49, 4  ;;  %v3890_v13 = vsel %vm3084_vm13, %v2904_v6, -inf }
 0x38b   : > { %v3872_v19 = vrot.slane %v3871_v8, 2  ;;  %v3929_v55 = vmax.f32 %v3927_v52, %v3928_v63  ;;  %v3935_v20 = vrot.slane %v3934_v25, 2  ;;  %v3942_v45 = vrot.slane %v3941_v3, 2 }
 0x38c   : > { %v3948_v26 = vmax.f32 %v3946_v36, %v3947_v1  ;;  %v3878_v38 = vmax.f32 %v3876_v18, %v3877_v30  ;;  %v3885_v27 = vmax.f32 %v3883_v49, %v3884_v24  ;;  %v3891_v16 = vrot.slane %v3890_v13, 4 }
 0x38d   : > { %v3873_v14 = vmax.f32 %v3871_v8, %v3872_v19  ;;  %v3930_v28 = vrot.slane %v3929_v55, 1  ;;  %v3936_v33 = vmax.f32 %v3934_v25, %v3935_v20  ;;  %v3943_v39 = vmax.f32 %v3941_v3, %v3942_v45 }
 0x38e   : > { %v3949_v60 = vrot.slane %v3948_v26, 2  ;;  %v3879_v10 = vrot.slane %v3878_v38, 2  ;;  %v3886_v59 = vrot.slane %v3885_v27, 2  ;;  %v3892_v56 = vmax.f32 %v3890_v13, %v3891_v16 }
 0x38f   : > { %v3874_v4 = vrot.slane %v3873_v14, 1  ;;  %v3931_v11 = vmax.f32 %v3929_v55, %v3930_v28  ;;  %v3937_v42 = vrot.slane %v3936_v33, 1  ;;  %v3944_v23 = vrot.slane %v3943_v39, 1 }
 0x390   : > { %v3950_v7 = vmax.f32 %v3948_v26, %v3949_v60  ;;  %v3880_v47 = vmax.f32 %v3878_v38, %v3879_v10  ;;  %v3887_v44 = vmax.f32 %v3885_v27, %v3886_v59  ;;  %v3893_v41 = vrot.slane %v3892_v56, 2 }
 0x391   : > { %v3875_v40 = vmax.f32 %v3873_v14, %v3874_v4  ;;  %v3938_v62 = vmax.f32 %v3936_v33, %v3937_v42  ;;  %v3945_v31 = vmax.f32 %v3943_v39, %v3944_v23  ;;  %v4151_v37 = vsel %vm3981_vm14, %v3931_v11, -inf }
 0x392   : > { %v3951_v21 = vrot.slane %v3950_v7, 1  ;;  %v3881_v48 = vrot.slane %v3880_v47, 1  ;;  %v3888_v15 = vrot.slane %v3887_v44, 1  ;;  %v3894_v34 = vmax.f32 %v3892_v56, %v3893_v41 }
 0x393   : > { %v4150_v58 = vsel %vm3981_vm14, %v3875_v40, -inf  ;;  %v4154_v51 = vsel %vm3981_vm14, %v3938_v62, -inf  ;;  %v4157_v57 = vsel %vm3981_vm14, %v3945_v31, -inf  ;;  %v2946_v22 = vrot.slane %v8468_v46, %v7541_v2 }
 0x394   : > { %v3952_v35 = vmax.f32 %v3950_v7, %v3951_v21  ;;  %v4152_v43 = vmax.f32 %v4150_v58, %v4151_v37  ;;  %v3882_v61 = vmax.f32 %v3880_v47, %v3881_v48  ;;  %v3889_v12 = vmax.f32 %v3887_v44, %v3888_v15 }
 0x395   : > { %v3895_v53 = vrot.slane %v3894_v34, 1  ;;  %v2953_v52 = vrot.slane %v2939_v32, %v7541_v2  ;;  %v2905_v5 = vcombine.high %v8471_v9, %v8471_v9  ;;  %v2912_v17 = vrot.slane %v8471_v9, %v7541_v2 }
 0x396   : > { %v8494_v29 = vsel %vm3981_vm14, %v3952_v35, -inf  ;;  %v4153_v36 = vsel %vm3981_vm14, %v3882_v61, -inf  ;;  %v4156_v8 = vsel %vm3981_vm14, %v3889_v12, -inf  ;;  %v2954_v18 = vcombine.high %v2946_v22, %v2946_v22 }
 0x397   : > { %v3896_v6 = vmax.f32 %v3894_v34, %v3895_v53  ;;  %v4155_v49 = vmax.f32 %v4153_v36, %v4154_v51  ;;  %v4158_v63 = vmax.f32 %v4156_v8, %v4157_v57  ;;  %v2955_v25 = vcombine.high %v2953_v52, %v2953_v52 }
 0x398   : > { %v3953_v3 = vsel %vm3084_vm13, %v2946_v22, -inf  ;;  %v3960_v1 = vsel %vm3084_vm13, %v2954_v18, -inf  ;;  %v3967_v19 = vsel %vm3084_vm13, %v2953_v52, -inf  ;;  %v2919_v26 = vrot.slane %v2905_v5, %v7541_v2 }
 0x399   : > { %v4159_v46 = vsel %vm3981_vm14, %v3896_v6, -inf  ;;  %v3954_v32 = vrot.slane %v3953_v3, 4  ;;  %v4314_v30 = vsel %vm4258_vm15, %v4155_v49, %v4152_v43  ;;  %v3961_v24 = vrot.slane %v3960_v1, 4 }
 0x39a   : > { %v4161_v9 = vmax.f32 %v4159_v46, %v8494_v29  ;;  %v3968_v13 = vrot.slane %v3967_v19, 4  ;;  %v4315_v55 = vsel %vm8997_vm11, %v4158_v63, %v4314_v30  ;;  %v3974_v45 = vsel %vm3084_vm13, %v2955_v25, -inf }
 0x39b   : > { %v3955_v20 = vmax.f32 %v3953_v3, %v3954_v32  ;;  %v3962_v14 = vmax.f32 %v3960_v1, %v3961_v24  ;;  %v3975_v27 = vrot.slane %v3974_v45, 4  ;;  %v2920_v16 = vcombine.high %v2912_v17, %v2912_v17 }
 0x39c   : > { %v3969_v38 = vmax.f32 %v3967_v19, %v3968_v13  ;;  %v2921_v33 = vcombine.high %v2919_v26, %v2919_v26  ;;  %v3897_v39 = vsel %vm3084_vm13, %v2912_v17, -inf  ;;  %v3911_v60 = vsel %vm3084_vm13, %v2919_v26, -inf }
 0x39d   : > { %v3956_v28 = vrot.slane %v3955_v20, 2  ;;  %v3963_v4 = vrot.slane %v3962_v14, 2  ;;  %v3976_v59 = vmax.f32 %v3974_v45, %v3975_v27  ;;  %v3898_v56 = vrot.slane %v3897_v39, 4 }
 0x39e   : > { %v3970_v10 = vrot.slane %v3969_v38, 2  ;;  %v3904_v42 = vsel %vm3084_vm13, %v2920_v16, -inf  ;;  %v3912_v23 = vrot.slane %v3911_v60, 4  ;;  %v3918_v7 = vsel %vm3084_vm13, %v2921_v33, -inf  ;;  %vm8999_vm13 = vmmov %vm8998_vm0 }
 0x39f   : > { %v3957_v11 = vmax.f32 %v3955_v20, %v3956_v28  ;;  %v3964_v40 = vmax.f32 %v3962_v14, %v3963_v4  ;;  %v3977_v44 = vrot.slane %v3976_v59, 2  ;;  %v3899_v41 = vmax.f32 %v3897_v39, %v3898_v56 }
 0x3a0   : > { %v3971_v47 = vmax.f32 %v3969_v38, %v3970_v10  ;;  %v3905_v31 = vrot.slane %v3904_v42, 4  ;;  %v3913_v21 = vmax.f32 %v3911_v60, %v3912_v23  ;;  %v3919_v37 = vrot.slane %v3918_v7, 4 }
 0x3a1   : > { %v3958_v62 = vrot.slane %v3957_v11, 1  ;;  %v3965_v48 = vrot.slane %v3964_v40, 1  ;;  %v3978_v34 = vmax.f32 %v3976_v59, %v3977_v44  ;;  %v3900_v58 = vrot.slane %v3899_v41, 2  ;;  %v4656_v44 = vld [vmem:[#allocation4 + $0x91] sm:$0xff] }
 0x3a2   : > { %v3972_v15 = vrot.slane %v3971_v47, 1  ;;  %v3906_v35 = vmax.f32 %v3904_v42, %v3905_v31  ;;  %v3914_v51 = vrot.slane %v3913_v21, 2  ;;  %v3920_v57 = vmax.f32 %v3918_v7, %v3919_v37 }
 0x3a3   : > { %v3959_v43 = vmax.f32 %v3957_v11, %v3958_v62  ;;  %v3979_v61 = vrot.slane %v3978_v34, 1  ;;  %v3901_v12 = vmax.f32 %v3899_v41, %v3900_v58  ;;  %v3966_v5 = vmax.f32 %v3964_v40, %v3965_v48  ;;  %v8551_v41 = vld [vmem:[%s8967_s4] ss:$0 sm:$0xff] }
 0x3a4   : > { %v3973_v53 = vmax.f32 %v3971_v47, %v3972_v15  ;;  %v3907_v22 = vrot.slane %v3906_v35, 2  ;;  %v3915_v29 = vmax.f32 %v3913_v21, %v3914_v51  ;;  %v3921_v52 = vrot.slane %v3920_v57, 2  ;;  %v4607_v47 = vld [vmem:[#allocation4 + $0x90] sm:$0xff] }
 0x3a5   : > { %v3980_v17 = vmax.f32 %v3978_v34, %v3979_v61  ;;  %v3902_v6 = vrot.slane %v3901_v12, 1  ;;  %v4316_v49 = vsel %vm8999_vm13, %v4161_v9, %v4315_v55  ;;  %v4163_v63 = vsel %vm3981_vm14, %v3959_v43, -inf }
 0x3a6   : > { %v3908_v36 = vmax.f32 %v3906_v35, %v3907_v22  ;;  %v3916_v8 = vrot.slane %v3915_v29, 1  ;;  %v3922_v18 = vmax.f32 %v3920_v57, %v3921_v52  ;;  %v4169_v3 = vsel %vm3981_vm14, %v3973_v53, -inf }
 0x3a7   : > { %v3903_v25 = vmax.f32 %v3901_v12, %v3902_v6  ;;  %v4166_v19 = vsel %vm3981_vm14, %v3966_v5, -inf  ;;  %v4172_v30 = vsel %vm3981_vm14, %v3980_v17, -inf  ;;  %vm5303_vm15 = vcmask 261120  }
 0x3a8   : > { %v3909_v46 = vrot.slane %v3908_v36, 1  ;;  %v3917_v32 = vmax.f32 %v3915_v29, %v3916_v8  ;;  %v3923_v1 = vrot.slane %v3922_v18, 1  ;;  %vm6067_vm0 = vcmask 73728  }
 0x3a9   : > { %v4162_v24 = vsel %vm3981_vm14, %v3903_v25, -inf }
 0x3aa   : > { %v3910_v13 = vmax.f32 %v3908_v36, %v3909_v46  ;;  %v3924_v20 = vmax.f32 %v3922_v18, %v3923_v1  ;;  %v4164_v45 = vmax.f32 %v4162_v24, %v4163_v63  ;;  %v4168_v26 = vsel %vm3981_vm14, %v3917_v32, -inf }
 0x3ab   : > { %v4170_v9 = vmax.f32 %v4168_v26, %v4169_v3 }
 0x3ac   : > { %v4165_v55 = vsel %vm3981_vm14, %v3910_v13, -inf  ;;  %v4171_v14 = vsel %vm3981_vm14, %v3924_v20, -inf  ;;  %v4317_v38 = vsel %vm4264_vm3, %v4164_v45, %v4316_v49  ;;  %vm8632_vm3 = vcmp.ge.s32.totalorder %v2416_v50, 64 }
 0x3ad   : > { %v4625_v27 = vpop.permute.xlu0 %4624  ;;  %v4479_v16 = vpop.permute.xlu1 %4478  ;;  %v4167_v28 = vmax.f32 %v4165_v55, %v4166_v19  ;;  %v4173_v33 = vmax.f32 %v4171_v14, %v4172_v30 }
 0x3ae   : > { %4645 = vst.msk [vmem:[#allocation5 + $0x40] sm:$0xff] %vm4640_vm7, %v4625_v27 }
 0x3af   : > { %4498 = vst.msk [vmem:[#allocation5 + $0x50] sm:$0xff] %vm4492_vm8, %v4479_v16  ;;  %v4318_v39 = vsel %vm4266_vm2, %v4167_v28, %v4317_v38  ;;  %vm8621_vm2 = vcmp.lt.s32.totalorder %v2416_v50, 64 }
 0x3b0   : > { %v4319_v60 = vsel %vm4268_vm12, %v4170_v9, %v4318_v39  ;;  %vm5078_vm12 = vcmask 254976  }
 0x3b1   : > { %v4674_v4 = vpop.permute.xlu0 %4673  ;;  %v4528_v10 = vpop.permute.xlu1 %4527  ;;  %v4320_v59 = vsel %vm4270_vm1, %v4173_v33, %v4319_v60  ;;  %vm8570_vm1 = vcmp.lt.s32.totalorder %v2416_v50, 32 }
 0x3b2   : > { %4694 = vst.msk [vmem:[#allocation5 + $0x40] sm:$0xff] %vm4689_vm10, %v4674_v4 }
 0x3b3   : > { %4547 = vst.msk [vmem:[#allocation5 + $0x50] sm:$0xff] %vm4541_vm9, %v4528_v10 }
 0x3b4   : > { %4337 = vst.msk [vmem:[#allocation4 + $0x81] sm:$0xff] %vm3981_vm14, %v4320_v59 }
 0x3b5   : > { %v4383_v56 = vpop.permute.xlu0 %4382  ;;  %v4577_v11 = vpop.permute.xlu1 %4576 }
 0x3b6   : > { %4401 = vst.msk [vmem:[#allocation5 + $0x60] sm:$0xff] %vm4394_vm5, %v4383_v56 }
 0x3b7   : > { %4596 = vst.msk [vmem:[#allocation5 + $0x50] sm:$0xff] %vm4590_vm4, %v4577_v11 }
 0x3b9   : > { %v4432_v42 = vpop.permute.xlu0 %4431 }
 0x3ba   : > { %4450 = vst.msk [vmem:[#allocation5 + $0x60] sm:$0xff] %vm4443_vm6, %v4432_v42 }
 0x3bb   : > { %v4606_v23 = vld [vmem:[#allocation4 + $0x80] sm:$0xff] }
 0x3bc   : > { %v4557_v7 = vld [vmem:[#allocation4 + $0x82] sm:$0xff]  ;;  %4628 = vrot.lane.b32.xlu0 %v4606_v23, %s8979_s23  ;;  %4482 = vrot.lane.b32.xlu1 %v4606_v23, %s6554_s28 }
 0x3bd   : > { %4712 = vst.msk [vmem:[#allocation5 + $0x68] sm:$0xff] %vm3981_vm14, %v4557_v7  ;;  %v4655_v40 = vld [vmem:[#allocation4 + $0x81] sm:$0xff] }
 0x3c0   : > { %4677 = vrot.lane.b32.xlu0 %v4655_v40, %s6558_s24  ;;  %4531 = vrot.lane.b32.xlu1 %v4655_v40, %s6555_s29 }
 0x3c4   : > { %4580 = vrot.lane.b32.xlu1 %v4557_v7, %s6556_s14  ;;  %v6560_v7 = vmov 1966171168   ;;  %s6082_s14 = scalar_lea.sflag [#allocation8], %s323_s25 }
 0x3c5   : > { %v5359_v40 = vunpack.c.l.s4 %v6560_v7 }
 0x3c8   : > { %4630 = vrot.lane.b32.xlu1 %v4607_v47, %s8979_s23 }
 0x3cc   : > { %4679 = vrot.lane.b32.xlu1 %v4656_v44, %s6558_s24 }
 0x3cf   : > { %v4863_v62 = vpop.f32.mrb[0].mxu1 }
 0x3d0   : > { %v4864_v31 = vadd.f32 %v8551_v41, %v4863_v62  ;;  %v4865_v21 = vpop.f32.mrb[1].mxu1 }
 0x3d1   : > { %v4866_v37 = vpop.f32.mrb[2].mxu1 }
 0x3d2   : > { %v4894_v48 = vmax.f32 %v4864_v31, 0.0  ;;  %v4867_v15 = vadd.f32 %v8551_v41, %v4866_v37  ;;  %v4868_v34 = vpop.f32.mrb[3].mxu1 }
 0x3d4   : > { %v4910_v58 = vcombine.high %v4894_v48, %v4894_v48  ;;  %v4917_v35 = vrot.slane %v4894_v48, %v7541_v2  ;;  %v4895_v51 = vmax.f32 %v4867_v15, 0.0 }
 0x3d6   : > { %v4924_v57 = vrot.slane %v4910_v58, %v7541_v2  ;;  %v4925_v43 = vcombine.high %v4917_v35, %v4917_v35  ;;  %v5079_v61 = vsel %vm5078_vm12, %v4917_v35, -inf  ;;  %v4927_v12 = vcombine.high %v4895_v51, %v4895_v51 }
 0x3d7   : > { %v5080_v53 = vrot.slane %v5079_v61, 4  ;;  %v4934_v22 = vrot.slane %v4895_v51, %v7541_v2 }
 0x3d8   : > { %v4926_v29 = vcombine.high %v4924_v57, %v4924_v57  ;;  %v5086_v52 = vsel %vm5078_vm12, %v4925_v43, -inf  ;;  %v5093_v5 = vsel %vm5078_vm12, %v4924_v57, -inf  ;;  %v4941_v17 = vrot.slane %v4927_v12, %v7541_v2 }
 0x3d9   : > { %v5081_v6 = vmax.f32 %v5079_v61, %v5080_v53  ;;  %v5087_v36 = vrot.slane %v5086_v52, 4  ;;  %v5094_v8 = vrot.slane %v5093_v5, 4  ;;  %v4942_v18 = vcombine.high %v4934_v22, %v4934_v22 }
 0x3da   : > { %v5100_v49 = vsel %vm5078_vm12, %v4926_v29, -inf  ;;  %v4943_v63 = vcombine.high %v4941_v17, %v4941_v17  ;;  %v5107_v25 = vsel %vm5078_vm12, %v4934_v22, -inf  ;;  %v5121_v3 = vsel %vm5078_vm12, %v4941_v17, -inf }
 0x3db   : > { %v5082_v46 = vrot.slane %v5081_v6, 2  ;;  %v5088_v32 = vmax.f32 %v5086_v52, %v5087_v36  ;;  %v5095_v1 = vmax.f32 %v5093_v5, %v5094_v8  ;;  %v5101_v19 = vrot.slane %v5100_v49, 4  ;;  %v6458_v5 = vld [vmem:[%s8968_s5 + $0xf8] sm:$0xff]  }
 0x3dc   : > { %v5108_v30 = vrot.slane %v5107_v25, 4  ;;  %v5114_v24 = vsel %vm5078_vm12, %v4942_v18, -inf  ;;  %v5122_v13 = vrot.slane %v5121_v3, 4  ;;  %v5128_v20 = vsel %vm5078_vm12, %v4943_v63, -inf }
 0x3dd   : > { %v5083_v45 = vmax.f32 %v5081_v6, %v5082_v46  ;;  %v5089_v26 = vrot.slane %v5088_v32, 2  ;;  %v5096_v9 = vrot.slane %v5095_v1, 2  ;;  %v5102_v55 = vmax.f32 %v5100_v49, %v5101_v19 }
 0x3de   : > { %v5109_v14 = vmax.f32 %v5107_v25, %v5108_v30  ;;  %v5115_v38 = vrot.slane %v5114_v24, 4  ;;  %v5123_v27 = vmax.f32 %v5121_v3, %v5122_v13  ;;  %v5129_v16 = vrot.slane %v5128_v20, 4 }
 0x3df   : > { %v5084_v28 = vrot.slane %v5083_v45, 1  ;;  %v5090_v33 = vmax.f32 %v5088_v32, %v5089_v26  ;;  %v5097_v39 = vmax.f32 %v5095_v1, %v5096_v9  ;;  %v5103_v60 = vrot.slane %v5102_v55, 2 }
 0x3e0   : > { %v5110_v4 = vrot.slane %v5109_v14, 2  ;;  %v5116_v10 = vmax.f32 %v5114_v24, %v5115_v38  ;;  %v5124_v59 = vrot.slane %v5123_v27, 2  ;;  %v5130_v56 = vmax.f32 %v5128_v20, %v5129_v16 }
 0x3e1   : > { %v5091_v11 = vrot.slane %v5090_v33, 1  ;;  %v5098_v42 = vrot.slane %v5097_v39, 1  ;;  %v5104_v23 = vmax.f32 %v5102_v55, %v5103_v60  ;;  %v5085_v48 = vmax.f32 %v5083_v45, %v5084_v28  ;;  %v4727_v28 = vld [vmem:[#allocation5 + $0x68] sm:$0xff]  ;;  %v4722_v60 = vld [vmem:[#allocation5 + $0x40] sm:$0xff] }
 0x3e2   : > { %v5111_v47 = vmax.f32 %v5109_v14, %v5110_v4  ;;  %v5117_v44 = vrot.slane %v5116_v10, 2  ;;  %v5125_v62 = vmax.f32 %v5123_v27, %v5124_v59  ;;  %v5131_v31 = vrot.slane %v5130_v56, 2 }
 0x3e3   : > { %v5099_v21 = vmax.f32 %v5097_v39, %v5098_v42  ;;  %v5105_v37 = vrot.slane %v5104_v23, 1  ;;  %v5092_v51 = vmax.f32 %v5090_v33, %v5091_v11  ;;  %v5360_v43 = vunpack.c.0.s8 %v5359_v40  ;;  %v4729_v33 = vld [vmem:[#allocation5 + $0x78] sm:$0xff] }
 0x3e4   : > { %v5112_v15 = vrot.slane %v5111_v47, 1  ;;  %v5118_v34 = vmax.f32 %v5116_v10, %v5117_v44  ;;  %v5126_v58 = vrot.slane %v5125_v62, 1  ;;  %v5132_v35 = vmax.f32 %v5130_v56, %v5131_v31 }
 0x3e5   : > { %v5106_v57 = vmax.f32 %v5104_v23, %v5105_v37  ;;  %v5310_v29 = vsel %vm5303_vm15, %v5099_v21, -inf  ;;  %v5304_v52 = vsel %vm5303_vm15, %v5085_v48, -inf  ;;  %v8577_v18 = vsub.s32 %v5360_v43, %v7526_v54 }
 0x3e6   : > { %v5119_v61 = vrot.slane %v5118_v34, 1  ;;  %v5127_v12 = vmax.f32 %v5125_v62, %v5126_v58  ;;  %v5133_v53 = vrot.slane %v5132_v35, 1  ;;  %v5113_v22 = vmax.f32 %v5111_v47, %v5112_v15 }
 0x3e7   : > { %v5307_v25 = vsel %vm5303_vm15, %v5092_v51, -inf  ;;  %v5313_v46 = vsel %vm5303_vm15, %v5106_v57, -inf  ;;  %v4737_v59 = vpack.c.bf16 %v4729_v33, %v4727_v28 }
 0x3e8   : > { %v5120_v17 = vmax.f32 %v5118_v34, %v5119_v61  ;;  %v5134_v6 = vmax.f32 %v5132_v35, %v5133_v53  ;;  %v5311_v36 = vsel %vm5303_vm15, %v5127_v12, -inf  ;;  %v5305_v8 = vsel %vm5303_vm15, %v5113_v22, -inf }
 0x3e9   : > { %v5312_v49 = vmax.f32 %v5310_v29, %v5311_v36  ;;  %v5306_v63 = vmax.f32 %v5304_v52, %v5305_v8 }
 0x3ea   : > { %v5308_v3 = vsel %vm5303_vm15, %v5120_v17, -inf  ;;  %v5314_v32 = vsel %vm5303_vm15, %v5134_v6, -inf }
 0x3eb   : > { %v5309_v1 = vmax.f32 %v5307_v25, %v5308_v3  ;;  %v5315_v19 = vmax.f32 %v5313_v46, %v5314_v32  ;;  %5356 = vst.msk [vmem:[#allocation6] sm:$0x1] %vm8570_vm1, %v5306_v63  ;;  %v5386_v45 = vrot.slane %v5312_v49, %v8577_v18 }
 0x3ed   : > { %v5364_v13 = vrot.slane %v5309_v1, %v8577_v18  ;;  %v5393_v55 = vrot.slane %v5386_v45, %v8577_v18  ;;  %v5408_v14 = vrot.slane %v5315_v19, %v8577_v18 }
 0x3ee   : > { %v4481_v30 = vpop.permute.xlu0 %4480  ;;  %v4627_v24 = vpop.permute.xlu1 %4626 }
 0x3ef   : > { %4499 = vst.msk [vmem:[#allocation5 + $0x60] sm:$0xff] %vm4492_vm8, %v4481_v30  ;;  %v5371_v20 = vrot.slane %v5364_v13, %v8577_v18  ;;  %v5415_v16 = vrot.slane %v5408_v14, %v8577_v18 }
 0x3f0   : > { %4646 = vst.msk [vmem:[#allocation5 + $0x50] sm:$0xff] %vm4640_vm7, %v4627_v24 }
 0x3f1   : > { %5372 = vrot.lane.b32.xlu0 %v5371_v20, %s6553_s27 }
 0x3f2   : > { %v4530_v26 = vpop.permute.xlu0 %4529  ;;  %v4676_v9 = vpop.permute.xlu1 %4675 }
 0x3f3   : > { %4548 = vst.msk [vmem:[#allocation5 + $0x60] sm:$0xff] %vm4541_vm9, %v4530_v26 }
 0x3f4   : > { %4695 = vst.msk [vmem:[#allocation5 + $0x50] sm:$0xff] %vm4689_vm10, %v4676_v9 }
 0x3f5   : > { %5394 = vrot.lane.b32.xlu0 %v5393_v55, %s6555_s29 }
 0x3f6   : > { %v4579_v38 = vpop.permute.xlu0 %4578  ;;  %v4385_v27 = vpop.permute.xlu1 %4384 }
 0x3f7   : > { %4597 = vst.msk [vmem:[#allocation5 + $0x60] sm:$0xff] %vm4590_vm4, %v4579_v38 }
 0x3f8   : > { %4402 = vst.msk [vmem:[#allocation5 + $0x70] sm:$0xff] %vm4394_vm5, %v4385_v27 }
 0x3f9   : > { %5416 = vrot.lane.b32.xlu0 %v5415_v16, %s8979_s23 }
 0x3fa   : > { %v4434_v39 = vpop.permute.xlu1 %4433 }
 0x3fb   : > { %v4724_v4 = vld [vmem:[#allocation5 + $0x50] sm:$0xff]  ;;  %4451 = vst.msk [vmem:[#allocation5 + $0x70] sm:$0xff] %vm4443_vm6, %v4434_v39  ;;  %vm8647_vm6 = vcmp.lt.s32.totalorder %v2416_v50, 96 }
 0x3fc   : > { %v4734_v10 = vpack.c.bf16 %v4724_v4, %v4722_v60 }
 0x3fe   : > { %4878 = vmatmul.mubr.bf16.gmra.mrb[8].mxu1 %v4734_v10 }
 0x3ff   : > { %6187 = vmatprep.mubr.msk.bf16.mxu1 %vm3981_vm14, %v4737_v59  ;;  %vm8616_vm14 = vcmp.ge.s32.totalorder %v2416_v50, 32 }
 0x400   : > { %vm8642_vm5 = vmand %vm8616_vm14, %vm8621_vm2 }
 0x42e   : > { %v4629_v56 = vpop.permute.xlu0 %4628  ;;  %v4483_v11 = vpop.permute.xlu1 %4482 }
 0x42f   : > { %4647 = vst.msk [vmem:[#allocation5 + $0x60] sm:$0xff] %vm4640_vm7, %v4629_v56 }
 0x430   : > { %4500 = vst.msk [vmem:[#allocation5 + $0x70] sm:$0xff] %vm4492_vm8, %v4483_v11  ;;  %vm8657_vm8 = vmand %vm8632_vm3, %vm8647_vm6 }
 0x432   : > { %v4678_v42 = vpop.permute.xlu0 %4677  ;;  %v4532_v23 = vpop.permute.xlu1 %4531 }
 0x433   : > { %4696 = vst.msk [vmem:[#allocation5 + $0x60] sm:$0xff] %vm4689_vm10, %v4678_v42 }
 0x434   : > { %4549 = vst.msk [vmem:[#allocation5 + $0x70] sm:$0xff] %vm4541_vm9, %v4532_v23  ;;  %vm5419_vm9 = vcmp.ge.s32.totalorder %v2416_v50, 96 }
 0x436   : > { %v4581_v7 = vpop.permute.xlu1 %4580 }
 0x437   : > { %4598 = vst.msk [vmem:[#allocation5 + $0x70] sm:$0xff] %vm4590_vm4, %v4581_v7  ;;  %vm5420_vm4 = vcmp.lt.s32.totalorder %v2416_v50, 128  ;;  %v6462_v50 = vld [vmem:[%s8970_s7] sm:$0xff]  }
 0x43a   : > { %v4631_v40 = vpop.permute.xlu1 %4630  ;;  %v4726_v44 = vld [vmem:[#allocation5 + $0x60] sm:$0xff] }
 0x43b   : > { %4648 = vst.msk [vmem:[#allocation5 + $0x70] sm:$0xff] %vm4640_vm7, %v4631_v40  ;;  %vm8669_vm7 = vmand %vm5419_vm9, %vm5420_vm4 }
 0x43e   : > { %v4680_v47 = vpop.permute.xlu1 %4679 }
 0x43f   : > { %4697 = vst.msk [vmem:[#allocation5 + $0x70] sm:$0xff] %vm4689_vm10, %v4680_v47  ;;  %vm6561_vm10 = vmmov 0  }
 0x446   : > { %v4728_v62 = vld [vmem:[#allocation5 + $0x70] sm:$0xff] }
 0x447   : > { %v4736_v31 = vpack.c.bf16 %v4728_v62, %v4726_v44 }
 0x449   : > { %4886 = vmatmul.mubr.bf16.gmra.mrb[12].mxu1 %v4736_v31 }
 0x450   : > { %v4871_v21 = vpop.f32.mrb[4].mxu1 }
 0x451   : > { %v4872_v37 = vadd.f32 %v8551_v41, %v4871_v21  ;;  %v4873_v48 = vpop.f32.mrb[5].mxu1 }
 0x452   : > { %v4874_v15 = vpop.f32.mrb[6].mxu1 }
 0x453   : > { %v4896_v34 = vmax.f32 %v4872_v37, 0.0  ;;  %v4875_v58 = vadd.f32 %v8551_v41, %v4874_v15  ;;  %v4876_v35 = vpop.f32.mrb[7].mxu1 }
 0x455   : > { %v4944_v51 = vcombine.high %v4896_v34, %v4896_v34  ;;  %v4951_v57 = vrot.slane %v4896_v34, %v7541_v2  ;;  %v4897_v43 = vmax.f32 %v4875_v58, 0.0 }
 0x457   : > { %v4958_v61 = vrot.slane %v4944_v51, %v7541_v2  ;;  %v4959_v12 = vcombine.high %v4951_v57, %v4951_v57  ;;  %v5135_v53 = vsel %vm5078_vm12, %v4951_v57, -inf  ;;  %v4961_v22 = vcombine.high %v4897_v43, %v4897_v43 }
 0x458   : > { %v5136_v29 = vrot.slane %v5135_v53, 4  ;;  %v4968_v52 = vrot.slane %v4897_v43, %v7541_v2 }
 0x459   : > { %v4960_v36 = vcombine.high %v4958_v61, %v4958_v61  ;;  %v5142_v8 = vsel %vm5078_vm12, %v4959_v12, -inf  ;;  %v5149_v49 = vsel %vm5078_vm12, %v4958_v61, -inf  ;;  %v4975_v63 = vrot.slane %v4961_v22, %v7541_v2 }
 0x45a   : > { %v5137_v25 = vmax.f32 %v5135_v53, %v5136_v29  ;;  %v5143_v3 = vrot.slane %v5142_v8, 4  ;;  %v5150_v46 = vrot.slane %v5149_v49, 4  ;;  %v4976_v32 = vcombine.high %v4968_v52, %v4968_v52 }
 0x45b   : > { %v5156_v1 = vsel %vm5078_vm12, %v4960_v36, -inf  ;;  %v4977_v19 = vcombine.high %v4975_v63, %v4975_v63  ;;  %v5163_v30 = vsel %vm5078_vm12, %v4968_v52, -inf  ;;  %v5177_v24 = vsel %vm5078_vm12, %v4975_v63, -inf }
 0x45c   : > { %v5138_v20 = vrot.slane %v5137_v25, 2  ;;  %v5144_v45 = vmax.f32 %v5142_v8, %v5143_v3  ;;  %v5151_v26 = vmax.f32 %v5149_v49, %v5150_v46  ;;  %v5157_v9 = vrot.slane %v5156_v1, 4 }
 0x45d   : > { %v5164_v55 = vrot.slane %v5163_v30, 4  ;;  %v5170_v14 = vsel %vm5078_vm12, %v4976_v32, -inf  ;;  %v5178_v38 = vrot.slane %v5177_v24, 4  ;;  %v5184_v27 = vsel %vm5078_vm12, %v4977_v19, -inf }
 0x45e   : > { %v5139_v16 = vmax.f32 %v5137_v25, %v5138_v20  ;;  %v5145_v28 = vrot.slane %v5144_v45, 2  ;;  %v5152_v33 = vrot.slane %v5151_v26, 2  ;;  %v5158_v39 = vmax.f32 %v5156_v1, %v5157_v9 }
 0x45f   : > { %v5165_v60 = vmax.f32 %v5163_v30, %v5164_v55  ;;  %v5171_v4 = vrot.slane %v5170_v14, 4  ;;  %v5179_v10 = vmax.f32 %v5177_v24, %v5178_v38  ;;  %v5185_v59 = vrot.slane %v5184_v27, 4 }
 0x460   : > { %v5140_v56 = vrot.slane %v5139_v16, 1  ;;  %v5146_v11 = vmax.f32 %v5144_v45, %v5145_v28  ;;  %v5153_v42 = vmax.f32 %v5151_v26, %v5152_v33  ;;  %v5159_v23 = vrot.slane %v5158_v39, 2 }
 0x461   : > { %v5166_v7 = vrot.slane %v5165_v60, 2  ;;  %v5172_v40 = vmax.f32 %v5170_v14, %v5171_v4  ;;  %v5180_v47 = vrot.slane %v5179_v10, 2  ;;  %v5186_v44 = vmax.f32 %v5184_v27, %v5185_v59 }
 0x462   : > { %v5147_v62 = vrot.slane %v5146_v11, 1  ;;  %v5154_v31 = vrot.slane %v5153_v42, 1  ;;  %v5160_v21 = vmax.f32 %v5158_v39, %v5159_v23  ;;  %v5141_v61 = vmax.f32 %v5139_v16, %v5140_v56 }
 0x463   : > { %v5167_v15 = vmax.f32 %v5165_v60, %v5166_v7  ;;  %v5173_v34 = vrot.slane %v5172_v40, 2  ;;  %v5181_v58 = vmax.f32 %v5179_v10, %v5180_v47  ;;  %v5187_v35 = vrot.slane %v5186_v44, 2  ;;  %v5373_v43 = vpop.permute.xlu0 %5372 }
 0x464   : > { %v5155_v51 = vmax.f32 %v5153_v42, %v5154_v31  ;;  %v5161_v57 = vrot.slane %v5160_v21, 1  ;;  %5378 = vst.msk [vmem:[#allocation6] sm:$0x1] %vm8642_vm5, %v5373_v43  ;;  %v5148_v52 = vmax.f32 %v5146_v11, %v5147_v62  ;;  %v5316_v46 = vsel %vm5303_vm15, %v5141_v61, -inf }
 0x465   : > { %v5168_v12 = vrot.slane %v5167_v15, 1  ;;  %v5174_v53 = vmax.f32 %v5172_v40, %v5173_v34  ;;  %v5182_v22 = vrot.slane %v5181_v58, 1  ;;  %v5188_v29 = vmax.f32 %v5186_v44, %v5187_v35 }
 0x466   : > { %v5162_v17 = vmax.f32 %v5160_v21, %v5161_v57  ;;  %v5322_v3 = vsel %vm5303_vm15, %v5155_v51, -inf  ;;  %v5319_v20 = vsel %vm5303_vm15, %v5148_v52, -inf }
 0x467   : > { %v5175_v36 = vrot.slane %v5174_v53, 1  ;;  %v5183_v8 = vmax.f32 %v5181_v58, %v5182_v22  ;;  %v5189_v49 = vrot.slane %v5188_v29, 1  ;;  %v5169_v63 = vmax.f32 %v5167_v15, %v5168_v12  ;;  %v5395_v25 = vpop.permute.xlu0 %5394 }
 0x468   : > { %5400 = vst.msk [vmem:[#allocation6] sm:$0x1] %vm8657_vm8, %v5395_v25  ;;  %v5325_v26 = vsel %vm5303_vm15, %v5162_v17, -inf }
 0x469   : > { %v5176_v32 = vmax.f32 %v5174_v53, %v5175_v36  ;;  %v5190_v1 = vmax.f32 %v5188_v29, %v5189_v49  ;;  %v5323_v19 = vsel %vm5303_vm15, %v5183_v8, -inf  ;;  %v5317_v30 = vsel %vm5303_vm15, %v5169_v63, -inf }
 0x46a   : > { %v5324_v24 = vmax.f32 %v5322_v3, %v5323_v19  ;;  %v5318_v13 = vmax.f32 %v5316_v46, %v5317_v30 }
 0x46b   : > { %v5320_v45 = vsel %vm5303_vm15, %v5176_v32, -inf  ;;  %v5326_v9 = vsel %vm5303_vm15, %v5190_v1, -inf  ;;  %v5417_v55 = vpop.permute.xlu0 %5416 }
 0x46c   : > { %v5321_v14 = vmax.f32 %v5319_v20, %v5320_v45  ;;  %v5327_v38 = vmax.f32 %v5325_v26, %v5326_v9  ;;  %5423 = vst.msk [vmem:[#allocation6 + $0x1] sm:$0x1] %vm8570_vm1, %v5318_v13  ;;  %v5450_v28 = vrot.slane %v5324_v24, %v8577_v18 }
 0x46d   : > { %5422 = vst.msk [vmem:[#allocation6] sm:$0x1] %vm8669_vm7, %v5417_v55 }
 0x46e   : > { %v5431_v27 = vrot.slane %v5321_v14, %v8577_v18  ;;  %v5457_v33 = vrot.slane %v5450_v28, %v8577_v18  ;;  %v5469_v39 = vrot.slane %v5327_v38, %v8577_v18 }
 0x470   : > { %v5438_v16 = vrot.slane %v5431_v27, %v8577_v18  ;;  %v5476_v60 = vrot.slane %v5469_v39, %v8577_v18 }
 0x472   : > { %5439 = vrot.lane.b32.xlu1 %v5438_v16, %s6553_s27 }
 0x476   : > { %5458 = vrot.lane.b32.xlu1 %v5457_v33, %s6555_s29 }
 0x47a   : > { %5477 = vrot.lane.b32.xlu1 %v5476_v60, %s8979_s23 }
 0x4d1   : > { %v4879_v4 = vpop.f32.mrb[8].mxu1 }
 0x4d2   : > { %v4880_v10 = vadd.f32 %v8551_v41, %v4879_v4  ;;  %v4881_v59 = vpop.f32.mrb[9].mxu1 }
 0x4d3   : > { %v4882_v56 = vpop.f32.mrb[10].mxu1 }
 0x4d4   : > { %v4898_v11 = vmax.f32 %v4880_v10, 0.0  ;;  %v4883_v42 = vadd.f32 %v8551_v41, %v4882_v56  ;;  %v4884_v23 = vpop.f32.mrb[11].mxu1 }
 0x4d6   : > { %v4978_v7 = vcombine.high %v4898_v11, %v4898_v11  ;;  %v4985_v40 = vrot.slane %v4898_v11, %v7541_v2  ;;  %v4899_v47 = vmax.f32 %v4883_v42, 0.0 }
 0x4d8   : > { %v4992_v44 = vrot.slane %v4978_v7, %v7541_v2  ;;  %v4993_v62 = vcombine.high %v4985_v40, %v4985_v40  ;;  %v5191_v31 = vsel %vm5078_vm12, %v4985_v40, -inf  ;;  %v4995_v21 = vcombine.high %v4899_v47, %v4899_v47 }
 0x4d9   : > { %v5192_v48 = vrot.slane %v5191_v31, 4  ;;  %v5002_v15 = vrot.slane %v4899_v47, %v7541_v2 }
 0x4da   : > { %v4994_v34 = vcombine.high %v4992_v44, %v4992_v44  ;;  %v5198_v58 = vsel %vm5078_vm12, %v4993_v62, -inf  ;;  %v5205_v35 = vsel %vm5078_vm12, %v4992_v44, -inf  ;;  %v5009_v51 = vrot.slane %v4995_v21, %v7541_v2 }
 0x4db   : > { %v5193_v57 = vmax.f32 %v5191_v31, %v5192_v48  ;;  %v5199_v43 = vrot.slane %v5198_v58, 4  ;;  %v5206_v61 = vrot.slane %v5205_v35, 4  ;;  %v5010_v12 = vcombine.high %v5002_v15, %v5002_v15 }
 0x4dc   : > { %v5212_v53 = vsel %vm5078_vm12, %v4994_v34, -inf  ;;  %v5011_v22 = vcombine.high %v5009_v51, %v5009_v51  ;;  %v5219_v29 = vsel %vm5078_vm12, %v5002_v15, -inf  ;;  %v5233_v52 = vsel %vm5078_vm12, %v5009_v51, -inf }
 0x4dd   : > { %v5194_v17 = vrot.slane %v5193_v57, 2  ;;  %v5200_v36 = vmax.f32 %v5198_v58, %v5199_v43  ;;  %v5207_v8 = vmax.f32 %v5205_v35, %v5206_v61  ;;  %v5213_v49 = vrot.slane %v5212_v53, 4 }
 0x4de   : > { %v5220_v63 = vrot.slane %v5219_v29, 4  ;;  %v5226_v25 = vsel %vm5078_vm12, %v5010_v12, -inf  ;;  %v5234_v3 = vrot.slane %v5233_v52, 4  ;;  %v5240_v46 = vsel %vm5078_vm12, %v5011_v22, -inf }
 0x4df   : > { %v5195_v32 = vmax.f32 %v5193_v57, %v5194_v17  ;;  %v5201_v1 = vrot.slane %v5200_v36, 2  ;;  %v5208_v19 = vrot.slane %v5207_v8, 2  ;;  %v5214_v30 = vmax.f32 %v5212_v53, %v5213_v49 }
 0x4e0   : > { %v5221_v24 = vmax.f32 %v5219_v29, %v5220_v63  ;;  %v5227_v13 = vrot.slane %v5226_v25, 4  ;;  %v5235_v20 = vmax.f32 %v5233_v52, %v5234_v3  ;;  %v5241_v45 = vrot.slane %v5240_v46, 4  ;;  %v6430_v3 = vld [vmem:[%s8968_s5 + $0xc0] sm:$0xff]  }
 0x4e1   : > { %v5196_v26 = vrot.slane %v5195_v32, 1  ;;  %v5202_v9 = vmax.f32 %v5200_v36, %v5201_v1  ;;  %v5209_v55 = vmax.f32 %v5207_v8, %v5208_v19  ;;  %v5215_v14 = vrot.slane %v5214_v30, 2  ;;  %6272 = vmatprep.subr.bf16.mxu0 %v6430_v3  ;;  %v6438_v19 = vld [vmem:[%s8968_s5 + $0x40] sm:$0xff]  }
 0x4e2   : > { %v5222_v38 = vrot.slane %v5221_v24, 2  ;;  %v5228_v27 = vmax.f32 %v5226_v25, %v5227_v13  ;;  %v5236_v16 = vrot.slane %v5235_v20, 2  ;;  %v5242_v28 = vmax.f32 %v5240_v46, %v5241_v45  ;;  %v6431_v46 = vld [vmem:[%s8968_s5 + $0x80] sm:$0xff]   ;;  %v6433_v13 = vld [vmem:[%s8968_s5 + $0x88] sm:$0xff]   ;;  %v6434_v45 = vld [vmem:[%s8968_s5 + $0xd0] sm:$0xff]   ;;  %6250 = vmatprep.subr.bf16.mxu1 %v6438_v19 }
 0x4e3   : > { %v5203_v33 = vrot.slane %v5202_v9, 1  ;;  %v5210_v39 = vrot.slane %v5209_v55, 1  ;;  %v5216_v60 = vmax.f32 %v5214_v30, %v5215_v14  ;;  %v5197_v7 = vmax.f32 %v5195_v32, %v5196_v26  ;;  %v6432_v32 = vld [vmem:[%s8968_s5 + $0xc8] sm:$0xff]   ;;  %6273 = vmatpush3.bf16.msra.mxu0 %v6431_v46 }
 0x4e4   : > { %v5223_v4 = vmax.f32 %v5221_v24, %v5222_v38  ;;  %v5229_v10 = vrot.slane %v5228_v27, 2  ;;  %v5237_v59 = vmax.f32 %v5235_v20, %v5236_v16  ;;  %v5243_v56 = vrot.slane %v5242_v28, 2  ;;  %v5440_v23 = vpop.permute.xlu1 %5439  ;;  %v6439_v20 = vld [vmem:[%s8968_s5] sm:$0xff]   ;;  %6274 = vmatprep.subr.bf16.mxu0 %v6432_v32  ;;  %v6442_v26 = vld [vmem:[%s8968_s5 + $0x48] sm:$0xff]   ;;  %v6436_v16 = vld [vmem:[%s8968_s5 + $0xd8] sm:$0xff]  }
 0x4e5   : > { %v5211_v11 = vmax.f32 %v5209_v55, %v5210_v39  ;;  %v5217_v42 = vrot.slane %v5216_v60, 1  ;;  %5442 = vst.msk [vmem:[#allocation6 + $0x1] sm:$0x1] %vm8642_vm5, %v5440_v23  ;;  %v5204_v31 = vmax.f32 %v5202_v9, %v5203_v33  ;;  %v5328_v57 = vsel %vm5303_vm15, %v5197_v7, -inf  ;;  %6251 = vmatpush3.bf16.msra.mxu1 %v6439_v20  ;;  %v6443_v9 = vld [vmem:[%s8968_s5 + $0x8] sm:$0xff]   ;;  %v6444_v55 = vld [vmem:[%s8968_s5 + $0x50] sm:$0xff]  }
 0x4e6   : > { %v5224_v40 = vrot.slane %v5223_v4, 1  ;;  %v5230_v47 = vmax.f32 %v5228_v27, %v5229_v10  ;;  %v5238_v44 = vrot.slane %v5237_v59, 1  ;;  %v5244_v62 = vmax.f32 %v5242_v28, %v5243_v56  ;;  %6252 = vmatprep.subr.bf16.mxu1 %v6442_v26  ;;  %v6435_v27 = vld [vmem:[%s8968_s5 + $0x90] sm:$0xff]   ;;  %v6437_v39 = vld [vmem:[%s8968_s5 + $0x98] sm:$0xff]   ;;  %v6446_v10 = vld [vmem:[%s8968_s5 + $0xe8] sm:$0xff]  }
 0x4e7   : > { %v5218_v21 = vmax.f32 %v5216_v60, %v5217_v42  ;;  %v5334_v51 = vsel %vm5303_vm15, %v5211_v11, -inf  ;;  %v5331_v52 = vsel %vm5303_vm15, %v5204_v31, -inf  ;;  %6275 = vmatpush3.bf16.msra.mxu0 %v6433_v13  ;;  %v6445_v28 = vld [vmem:[%s8968_s5 + $0x10] sm:$0xff]   ;;  %v6440_v60 = vld [vmem:[%s8968_s5 + $0xe0] sm:$0xff]  }
 0x4e8   : > { %v5231_v48 = vrot.slane %v5230_v47, 1  ;;  %v5239_v15 = vmax.f32 %v5237_v59, %v5238_v44  ;;  %v5245_v34 = vrot.slane %v5244_v62, 1  ;;  %v5225_v58 = vmax.f32 %v5223_v4, %v5224_v40  ;;  %v5459_v35 = vpop.permute.xlu1 %5458  ;;  %6276 = vmatprep.subr.bf16.mxu0 %v6434_v45  ;;  %v6441_v4 = vld [vmem:[%s8968_s5 + $0xa0] sm:$0xff]   ;;  %v6447_v59 = vld [vmem:[%s8968_s5 + $0xa8] sm:$0xff]  }
 0x4e9   : > { %5461 = vst.msk [vmem:[#allocation6 + $0x1] sm:$0x1] %vm8657_vm8, %v5459_v35  ;;  %v5337_v36 = vsel %vm5303_vm15, %v5218_v21, -inf  ;;  %6253 = vmatpush3.bf16.msra.mxu1 %v6443_v9 }
 0x4ea   : > { %v5232_v43 = vmax.f32 %v5230_v47, %v5231_v48  ;;  %v5246_v61 = vmax.f32 %v5244_v62, %v5245_v34  ;;  %v5335_v12 = vsel %vm5303_vm15, %v5239_v15, -inf  ;;  %v5329_v53 = vsel %vm5303_vm15, %v5225_v58, -inf  ;;  %6254 = vmatprep.subr.bf16.mxu1 %v6444_v55 }
 0x4eb   : > { %v5336_v22 = vmax.f32 %v5334_v51, %v5335_v12  ;;  %v5330_v29 = vmax.f32 %v5328_v57, %v5329_v53  ;;  %6277 = vmatpush3.bf16.msra.mxu0 %v6435_v27 }
 0x4ec   : > { %v5332_v17 = vsel %vm5303_vm15, %v5232_v43, -inf  ;;  %v5338_v8 = vsel %vm5303_vm15, %v5246_v61, -inf  ;;  %v5478_v49 = vpop.permute.xlu1 %5477  ;;  %6278 = vmatprep.subr.bf16.mxu0 %v6436_v16 }
 0x4ed   : > { %v5333_v63 = vmax.f32 %v5331_v52, %v5332_v17  ;;  %v5339_v25 = vmax.f32 %v5337_v36, %v5338_v8  ;;  %5481 = vst.msk [vmem:[#allocation6 + $0x2] sm:$0x1] %vm8570_vm1, %v5330_v29  ;;  %v5508_v24 = vrot.slane %v5336_v22, %v8577_v18  ;;  %6255 = vmatpush3.bf16.msra.mxu1 %v6445_v28 }
 0x4ee   : > { %5480 = vst.msk [vmem:[#allocation6 + $0x1] sm:$0x1] %vm8669_vm7, %v5478_v49 }
 0x4ef   : > { %v5489_v1 = vrot.slane %v5333_v63, %v8577_v18  ;;  %v5515_v14 = vrot.slane %v5508_v24, %v8577_v18  ;;  %v5527_v38 = vrot.slane %v5339_v25, %v8577_v18  ;;  %6279 = vmatpush3.bf16.msra.mxu0 %v6437_v39 }
 0x4f0   : > { %6280 = vmatprep.subr.bf16.mxu0 %v6440_v60 }
 0x4f1   : > { %v5496_v30 = vrot.slane %v5489_v1, %v8577_v18  ;;  %v5534_v33 = vrot.slane %v5527_v38, %v8577_v18 }
 0x4f3   : > { %5497 = vrot.lane.b32.xlu0 %v5496_v30, %s6553_s27  ;;  %6281 = vmatpush3.bf16.msra.mxu0 %v6441_v4 }
 0x4f4   : > { %6282 = vmatprep.subr.bf16.mxu0 %v6446_v10 }
 0x4f7   : > { %5516 = vrot.lane.b32.xlu0 %v5515_v14, %s6555_s29  ;;  %6283 = vmatpush3.bf16.msra.mxu0 %v6447_v59 }
 0x4fb   : > { %5535 = vrot.lane.b32.xlu0 %v5534_v33, %s8979_s23  ;;  %s6228_s23 = sshll.u32 %s6634_s13, 4  ;;  %s6562_s13 = smov [#allocation7]  }
 0x4fc   : > { %s8920_s28 = scalar_lea.hbm %s8972_s9, %s6228_s23  ;;  %s6481_s17 = sshll.u32 %s6562_s13, 4  ;;  %s6482_s17 = int_to_ptr.vmem [resolvable:$false] %s6481_s17 }
 0x4fd   : > { %s6483_s22 = scalar_lea.vmem %s6482_s17, 32 }
 0x51c   : > { %v4887_v56 = vpop.f32.mrb[12].mxu1 }
 0x51d   : > { %v4888_v11 = vadd.f32 %v8551_v41, %v4887_v56  ;;  %v4889_v42 = vpop.f32.mrb[13].mxu1 }
 0x51e   : > { %v4890_v23 = vpop.f32.mrb[14].mxu1 }
 0x51f   : > { %v4900_v7 = vmax.f32 %v4888_v11, 0.0  ;;  %v4891_v40 = vadd.f32 %v8551_v41, %v4890_v23  ;;  %v4892_v47 = vpop.f32.mrb[15].mxu1 }
 0x521   : > { %v5012_v44 = vcombine.high %v4900_v7, %v4900_v7  ;;  %v5019_v62 = vrot.slane %v4900_v7, %v7541_v2  ;;  %v4901_v31 = vmax.f32 %v4891_v40, 0.0  ;;  %v6448_v40 = vld [vmem:[%s8968_s5 + $0x58] sm:$0xff]  }
 0x522   : > { %6256 = vmatprep.subr.bf16.mxu1 %v6448_v40 }
 0x523   : > { %v5026_v21 = vrot.slane %v5012_v44, %v7541_v2  ;;  %v5027_v48 = vcombine.high %v5019_v62, %v5019_v62  ;;  %v5247_v15 = vsel %vm5078_vm12, %v5019_v62, -inf  ;;  %v5029_v34 = vcombine.high %v4901_v31, %v4901_v31 }
 0x524   : > { %v5248_v58 = vrot.slane %v5247_v15, 4  ;;  %v5036_v35 = vrot.slane %v4901_v31, %v7541_v2 }
 0x525   : > { %v5028_v51 = vcombine.high %v5026_v21, %v5026_v21  ;;  %v5254_v57 = vsel %vm5078_vm12, %v5027_v48, -inf  ;;  %v5261_v43 = vsel %vm5078_vm12, %v5026_v21, -inf  ;;  %v5043_v41 = vrot.slane %v5029_v34, %v7541_v2  ;;  %v6449_v21 = vld [vmem:[%s8968_s5 + $0x18] sm:$0xff]  }
 0x526   : > { %v5249_v61 = vmax.f32 %v5247_v15, %v5248_v58  ;;  %v5255_v12 = vrot.slane %v5254_v57, 4  ;;  %v5262_v53 = vrot.slane %v5261_v43, 4  ;;  %v5044_v22 = vcombine.high %v5036_v35, %v5036_v35  ;;  %6257 = vmatpush3.bf16.msra.mxu1 %v6449_v21  ;;  %v6467_v21 = vld [vmem:[%s8970_s7 + $0x28] sm:$0xff]  }
 0x527   : > { %v5268_v29 = vsel %vm5078_vm12, %v5028_v51, -inf  ;;  %v5045_v52 = vcombine.high %v5043_v41, %v5043_v41  ;;  %v5275_v17 = vsel %vm5078_vm12, %v5036_v35, -inf  ;;  %v5289_v36 = vsel %vm5078_vm12, %v5043_v41, -inf  ;;  %v6450_v41 = vld [vmem:[%s8968_s5 + $0x60] sm:$0xff]  }
 0x528   : > { %v5250_v8 = vrot.slane %v5249_v61, 2  ;;  %v5256_v49 = vmax.f32 %v5254_v57, %v5255_v12  ;;  %v5263_v63 = vmax.f32 %v5261_v43, %v5262_v53  ;;  %v5269_v25 = vrot.slane %v5268_v29, 4  ;;  %6258 = vmatprep.subr.bf16.mxu1 %v6450_v41 }
 0x529   : > { %v5276_v3 = vrot.slane %v5275_v17, 4  ;;  %v5282_v46 = vsel %vm5078_vm12, %v5044_v22, -inf  ;;  %v5290_v32 = vrot.slane %v5289_v36, 4  ;;  %v5296_v2 = vsel %vm5078_vm12, %v5045_v52, -inf  ;;  %v6452_v52 = vld [vmem:[%s8968_s5 + $0xf0] sm:$0xff]  }
 0x52a   : > { %v5251_v1 = vmax.f32 %v5249_v61, %v5250_v8  ;;  %v5257_v19 = vrot.slane %v5256_v49, 2  ;;  %v5264_v30 = vrot.slane %v5263_v63, 2  ;;  %v5270_v24 = vmax.f32 %v5268_v29, %v5269_v25  ;;  %v6451_v29 = vld [vmem:[%s8968_s5 + $0x20] sm:$0xff]   ;;  %6284 = vmatprep.subr.bf16.mxu0 %v6452_v52 }
 0x52b   : > { %v5277_v13 = vmax.f32 %v5275_v17, %v5276_v3  ;;  %v5283_v20 = vrot.slane %v5282_v46, 4  ;;  %v5291_v45 = vmax.f32 %v5289_v36, %v5290_v32  ;;  %v5297_v26 = vrot.slane %v5296_v2, 4  ;;  %v6453_v17 = vld [vmem:[%s8968_s5 + $0xb0] sm:$0xff]   ;;  %6259 = vmatpush3.bf16.msra.mxu1 %v6451_v29 }
 0x52c   : > { %v5252_v9 = vrot.slane %v5251_v1, 1  ;;  %v5258_v55 = vmax.f32 %v5256_v49, %v5257_v19  ;;  %v5265_v14 = vmax.f32 %v5263_v63, %v5264_v30  ;;  %v5271_v38 = vrot.slane %v5270_v24, 2  ;;  %6285 = vmatpush3.bf16.msra.mxu0 %v6453_v17  ;;  %v6456_v19 = vld [vmem:[%s8968_s5 + $0x70] sm:$0xff]  }
 0x52d   : > { %v5278_v27 = vrot.slane %v5277_v13, 2  ;;  %v5284_v16 = vmax.f32 %v5282_v46, %v5283_v20  ;;  %v5292_v28 = vrot.slane %v5291_v45, 2  ;;  %v5298_v33 = vmax.f32 %v5296_v2, %v5297_v26  ;;  %v6454_v2 = vld [vmem:[%s8968_s5 + $0x68] sm:$0xff]   ;;  %6286 = vmatprep.subr.bf16.mxu0 %v6458_v5  ;;  %v6460_v26 = vld [vmem:[%s8968_s5 + $0x78] sm:$0xff]  }
 0x52e   : > { %v5259_v39 = vrot.slane %v5258_v55, 1  ;;  %v5266_v60 = vrot.slane %v5265_v14, 1  ;;  %v5272_v4 = vmax.f32 %v5270_v24, %v5271_v38  ;;  %v5253_v7 = vmax.f32 %v5251_v1, %v5252_v9  ;;  %v6455_v1 = vld [vmem:[%s8968_s5 + $0x28] sm:$0xff]   ;;  %6260 = vmatprep.subr.bf16.mxu1 %v6454_v2  ;;  %v6459_v24 = vld [vmem:[%s8968_s5 + $0xb8] sm:$0xff]  }
 0x52f   : > { %v5279_v10 = vmax.f32 %v5277_v13, %v5278_v27  ;;  %v5285_v59 = vrot.slane %v5284_v16, 2  ;;  %v5293_v56 = vmax.f32 %v5291_v45, %v5292_v28  ;;  %v5299_v11 = vrot.slane %v5298_v33, 2  ;;  %6261 = vmatpush3.bf16.msra.mxu1 %v6455_v1  ;;  %v6457_v13 = vld [vmem:[%s8968_s5 + $0x30] sm:$0xff]   ;;  %v6461_v9 = vld [vmem:[%s8968_s5 + $0x38] sm:$0xff]  }
 0x530   : > { %v5267_v42 = vmax.f32 %v5265_v14, %v5266_v60  ;;  %v5273_v23 = vrot.slane %v5272_v4, 1  ;;  %v5260_v48 = vmax.f32 %v5258_v55, %v5259_v39  ;;  %v5340_v43 = vsel %vm5303_vm15, %v5253_v7, -inf  ;;  %6262 = vmatprep.subr.bf16.mxu1 %v6456_v19  ;;  %6287 = vmatpush3.bf16.msra.mxu0 %v6459_v24 }
 0x531   : > { %v5280_v47 = vrot.slane %v5279_v10, 1  ;;  %v5286_v44 = vmax.f32 %v5284_v16, %v5285_v59  ;;  %v5294_v62 = vrot.slane %v5293_v56, 1  ;;  %v5300_v31 = vmax.f32 %v5298_v33, %v5299_v11 }
 0x532   : > { %v5274_v15 = vmax.f32 %v5272_v4, %v5273_v23  ;;  %v5346_v57 = vsel %vm5303_vm15, %v5267_v42, -inf  ;;  %v5343_v49 = vsel %vm5303_vm15, %v5260_v48, -inf  ;;  %v5605_v60 = vsub.s32 1, %v7526_v54  ;;  %v6468_v48 = vld [vmem:[%s8970_s7 + $0x30] sm:$0xff]  }
 0x533   : > { %v5287_v34 = vrot.slane %v5286_v44, 1  ;;  %v5295_v58 = vmax.f32 %v5293_v56, %v5294_v62  ;;  %v5301_v35 = vrot.slane %v5300_v31, 1  ;;  %v5281_v51 = vmax.f32 %v5279_v10, %v5280_v47  ;;  %6263 = vmatpush3.bf16.msra.mxu1 %v6457_v13  ;;  %v6465_v62 = vld [vmem:[%s8970_s7 + $0x18] sm:$0xff]  }
 0x534   : > { %v5349_v25 = vsel %vm5303_vm15, %v5274_v15, -inf  ;;  %6264 = vmatprep.subr.bf16.mxu1 %v6460_v26  ;;  %v5613_v4 = vsub.s32 3, %v7526_v54  ;;  %v5601_v10 = vsub.s32 0, %v7526_v54  ;;  %v5609_v59 = vsub.s32 2, %v7526_v54  ;;  %v6463_v54 = vld [vmem:[%s8970_s7 + $0x8] sm:$0xff]   ;;  %v6469_v15 = vld [vmem:[%s8970_s7 + $0x38] sm:$0xff]  }
 0x535   : > { %v5288_v61 = vmax.f32 %v5286_v44, %v5287_v34  ;;  %v5302_v12 = vmax.f32 %v5300_v31, %v5301_v35  ;;  %v5347_v53 = vsel %vm5303_vm15, %v5295_v58, -inf  ;;  %v5341_v22 = vsel %vm5303_vm15, %v5281_v51, -inf  ;;  %v6464_v44 = vld [vmem:[%s8970_s7 + $0x10] sm:$0xff]   ;;  %v6466_v31 = vld [vmem:[%s8970_s7 + $0x20] sm:$0xff]  }
 0x536   : > { %v5348_v36 = vmax.f32 %v5346_v57, %v5347_v53  ;;  %v5342_v8 = vmax.f32 %v5340_v43, %v5341_v22  ;;  %v5687_v35 = vld [vmem:[%s8969_s6] sm:$0x1] }
 0x537   : > { %v5344_v63 = vsel %vm5303_vm15, %v5288_v61, -inf  ;;  %v5350_v3 = vsel %vm5303_vm15, %v5302_v12, -inf  ;;  %6265 = vmatpush3.bf16.msra.mxu1 %v6461_v9 }
 0x538   : > { %v5345_v46 = vmax.f32 %v5343_v49, %v5344_v63  ;;  %v5351_v32 = vmax.f32 %v5349_v25, %v5350_v3  ;;  %5539 = vst.msk [vmem:[#allocation6 + $0x3] sm:$0x1] %vm8570_vm1, %v5342_v8  ;;  %v5566_v45 = vrot.slane %v5348_v36, %v8577_v18  ;;  %6339 = vmatprep.subr.bf16.mxu1 %v6541_v0 }
 0x53a   : > { %v5547_v30 = vrot.slane %v5345_v46, %v8577_v18  ;;  %v5573_v55 = vrot.slane %v5566_v45, %v8577_v18  ;;  %v5585_v14 = vrot.slane %v5351_v32, %v8577_v18 }
 0x53c   : > { %v5554_v20 = vrot.slane %v5547_v30, %v8577_v18  ;;  %v5592_v38 = vrot.slane %v5585_v14, %v8577_v18 }
 0x53e   : > { %5555 = vrot.lane.b32.xlu1 %v5554_v20, %s6553_s27 }
 0x542   : > { %5574 = vrot.lane.b32.xlu1 %v5573_v55, %s6555_s29 }
 0x546   : > { %5593 = vrot.lane.b32.xlu1 %v5592_v38, %s9016_s21  ;;  %s6094_s21 = sshll.u32 %s324_s26, 4  ;;  %s8922_s21 = int_to_ptr.vmem [resolvable:$true] %s6094_s21 }
 0x547   : > { %s6477_s24 = scalar_lea.vmem %s8922_s21, 16  ;;  %p6484_p0 = scmp.lt.s32.totalorder %s8922_s21, %s6482_s17 }
 0x548   : > { %p6478_p11 = scmp.ne.s32.totalorder %s8922_s21, %s6477_s24  ;;  %p6485_p1 = scmp.lt.s32.totalorder %s6483_s22, %s6477_s24 }
 0x54a   : > { %p6479_p12 = pnand %p6478_p11, %p6651_p5  ;;  %p6486_p2 = por %p6485_p1, %p6484_p0 }
 0x54c   : > { %p6480_p13 = pneg %p6479_p12 }
 0x54e   : > { %p6487_p3 = pnand %p6486_p2, %p6480_p13 }
 0x565   : > { %v5498_v27 = vpop.permute.xlu0 %5497 }
 0x566   : > { %5500 = vst.msk [vmem:[#allocation6 + $0x2] sm:$0x1] %vm8642_vm5, %v5498_v27 }
 0x569   : > { %v5517_v16 = vpop.permute.xlu0 %5516 }
 0x56a   : > { %5519 = vst.msk [vmem:[#allocation6 + $0x2] sm:$0x1] %vm8657_vm8, %v5517_v16 }
 0x56d   : > { %v5536_v28 = vpop.permute.xlu0 %5535 }
 0x56e   : > { %5538 = vst.msk [vmem:[#allocation6 + $0x2] sm:$0x1] %vm8669_vm7, %v5536_v28 }
 0x5b0   : > { %v5556_v33 = vpop.permute.xlu1 %5555 }
 0x5b1   : > { %5558 = vst.msk [vmem:[#allocation6 + $0x3] sm:$0x1] %vm8642_vm5, %v5556_v33 }
 0x5b4   : > { %v5575_v18 = vpop.permute.xlu1 %5574 }
 0x5b5   : > { %5577 = vst.msk [vmem:[#allocation6 + $0x3] sm:$0x1] %vm8657_vm8, %v5575_v18 }
 0x5b8   : > { %v5594_v39 = vpop.permute.xlu1 %5593 }
 0x5b9   : > { %5596 = vst.msk [vmem:[#allocation6 + $0x3] sm:$0x1] %vm8669_vm7, %v5594_v39 }
 0x5c0   : > { %v5597_v56 = vld [vmem:[#allocation6] sm:$0xf] }
 0x5c1   : > { %v5606_v11 = vrot.slane %v5597_v56, %v5605_v60  ;;  %v5614_v37 = vrot.slane %v5597_v56, %v5613_v4  ;;  %v5602_v42 = vrot.slane %v5597_v56, %v5601_v10  ;;  %v5610_v23 = vrot.slane %v5597_v56, %v5609_v59 }
 0x5c3   : > { %v5620_v7 = vpack.c.bf16 %v5606_v11, %v5606_v11  ;;  %v5622_v6 = vpack.c.bf16 %v5614_v37, %v5614_v37  ;;  %v5619_v40 = vpack.c.bf16 %v5602_v42, %v5602_v42  ;;  %v5621_v47 = vpack.c.bf16 %v5610_v23, %v5610_v23 }
 0x5c5   : > { %5912 = vmatprep.mubr.bf16.mxu1 %v5620_v7  ;;  %5952 = vmatprep.mubr.bf16.mxu0 %v5622_v6 }
 0x5c6   : > { %5913 = vmatmul.mubr.bf16.vlgmr.msra.gmra.mrb[16].mxu1 %v5619_v40  ;;  %5953 = vmatmul.mubr.bf16.vlgmr.msra.gmra.mrb[32].mxu0 %v5621_v47 }
 0x5c7   : > { %6340 = vmatpush3.bf16.msra.mxu1 %v6462_v50  ;;  %6355 = vmatprep.mubr.msk.bf16.mxu1 %vm6561_vm10, %v6541_v0 }
 0x5c8   : > { %6341 = vmatprep.subr.bf16.mxu1 %v6541_v0 }
 0x5cb   : > { %6342 = vmatpush3.bf16.msra.mxu1 %v6463_v54 }
 0x5cc   : > { %6343 = vmatprep.subr.bf16.mxu1 %v6541_v0 }
 0x5cf   : > { %6344 = vmatpush3.bf16.msra.mxu1 %v6464_v44 }
 0x5d0   : > { %6345 = vmatprep.subr.bf16.mxu1 %v6541_v0 }
 0x5d3   : > { %6346 = vmatpush3.bf16.msra.mxu1 %v6465_v62 }
 0x5d4   : > { %6347 = vmatprep.subr.bf16.mxu1 %v6541_v0 }
 0x5d7   : > { %6348 = vmatpush3.bf16.msra.mxu1 %v6466_v31 }
 0x5d8   : > { %6349 = vmatprep.subr.bf16.mxu1 %v6541_v0 }
 0x5db   : > { %6350 = vmatpush3.bf16.msra.mxu1 %v6467_v21 }
 0x5dc   : > { %6351 = vmatprep.subr.bf16.mxu1 %v6541_v0 }
 0x5df   : > { %6352 = vmatpush3.bf16.msra.mxu1 %v6468_v48 }
 0x5e0   : > { %6353 = vmatprep.subr.bf16.mxu1 %v6541_v0  ;;  %v5978_v0 = vld [vmem:[%s8971_s8] sm:$0x1] }
 0x5e3   : > { %6354 = vmatpush3.bf16.msra.mxu1 %v6469_v15 }
 0x699   : > { %v6266_v34 = vpop.f32.mrb[16].mxu1  ;;  %v6288_v58 = vpop.f32.mrb[32].mxu0 }
 0x69a   : > { %v6267_v51 = vpop.f32.mrb[17].mxu1  ;;  %v6289_v57 = vpop.f32.mrb[33].mxu0 }
 0x69b   : > { %v6268_v43 = vadd.f32 %v6267_v51, %v6266_v34  ;;  %v6290_v41 = vadd.f32 %v6289_v57, %v6288_v58  ;;  %v6269_v61 = vpop.f32.mrb[18].mxu1  ;;  %v6291_v12 = vpop.f32.mrb[34].mxu0 }
 0x69c   : > { %v6270_v53 = vpop.f32.mrb[19].mxu1  ;;  %v6292_v22 = vpop.f32.mrb[35].mxu0 }
 0x69d   : > { %v5915_v29 = vadd.f32 %v6268_v43, %v5687_v35 }
 0x69f   : > { %v5955_v52 = vadd.f32 %v6290_v41, %v5915_v29 }
 0x6a1   : > { %v5960_v17 = vmax.f32 %v5955_v52, 0.0 }
 0x6a3   : > { %v5961_v36 = vpack.c.bf16 %v5960_v17, %v5960_v17 }
 0x6a5   : > { %6356 = vmatmul.mubr.bf16.vlgmr.msra.gmra.mrb[20].mxu1 %v5961_v36 }
 0x778   : > { %v6061_v8 = vpop.f32.mrb[20].mxu1 }
 0x779   : > { %v6062_v49 = vadd.f32 %v6061_v8, %v5978_v0  ;;  %v6357_v63 = vpop.f32.mrb[21].mxu1 }
 0x77a   : > { %v6064_v25 = vpop.f32.mrb[22].mxu1 }
 0x77b   : > { %v6358_v3 = vpop.f32.mrb[23].mxu1  ;;  %v6068_v46 = vsel %vm6067_vm0, %v6062_v49, -inf }
 0x77c   : > { %6069 = vmax.xlane.f32.xlu0 %v6068_v46 }
 0x809   : > { %v6070_v32 = vpop.xlane.xlu0 %6069 }
 0x80a   : > { %v6071_v2 = vsub.f32 %v6062_v49, %v6070_v32 }
 0x80c   : > { %v6072_v1 = vmul.f32 1.442695, %v6071_v2 }
 0x80e   : > { %6470 = vpow2.f32 %v6072_v1 }
 0x818   : > { %v6471_v19 = vpop.eup %6470 }
 0x819   : > { %v6074_v30 = vsel %vm6067_vm0, %v6471_v19, 0.0 }
 0x81a   : > { %6075 = vadd.xlane.f32.xlu1 %v6074_v30 }
 0x8a7   : > { %v6076_v5 = vpop.xlane.xlu1 %6075 }
 0x8a8   : > { %6472 = vrcp.f32 %v6076_v5 }
 0x8b2   : > { %v6473_v24 = vpop.eup %6472 }
 0x8b3   : > { %v6078_v13 = vmul.f32 %v6473_v24, %v6471_v19 }
 0x8b5   : > { %v6079_v20 = vmul.f32 %v6078_v13, %v6062_v49 }
 0x8b7   : > { %6080 = vst.msk [vmem:[%s324_s26] sm:$0x1] %vm6067_vm0, %v6079_v20 }
 0x8b8   : > { %6490 = shalt.err (!%p6487_p3)
}
 0x8b9   : > { %s6491_s16 = scalar_lea.hbm %s8920_s28, 16  ;;  %s6495_s26 = scalar_lea.hbm %s8972_s9, 32 }
 0x8ba   : > { %p6492_p4 = scmp.ne.s32.totalorder %s8920_s28, %s6491_s16  ;;  %p6496_p9 = scmp.lt.u32.totalorder %s8920_s28, %s8972_s9 }
 0x8bb   : > { %p6497_p10 = scmp.lt.u32.totalorder %s6495_s26, %s6491_s16  ;;  %p6499_p12 = scmp.lt.u32.totalorder %s6491_s16, %s8920_s28 }
 0x8bc   : > { %p6493_p7 = pnand %p6492_p4, %p6651_p5 }
 0x8bd   : > { %p6498_p11 = por %p6497_p10, %p6496_p9 }
 0x8be   : > { %p6494_p8 = pneg %p6493_p7 }
 0x8bf   : > { %p6500_p13 = por %p6499_p12, %p6498_p11 }
 0x8c1   : > { %p6501_p0 = pnand %p6500_p13, %p6494_p8 }
 0x8c3   : > { %6504 = shalt.err (!%p6501_p0)
}
 0x8c4   : > { %6359 = dma.vmem_to_hbm [thread:$0]  (%p6651_p5), %s8922_s21, 16, %s8920_s28, %s6082_s14  }
 0x8c5 PF: > { %p6365_p1 = scmp.ge.s32.totalorder %s6539_s12, 2  ;;  %s6106_s24 = sand.u32 1, %s6527_s30  }
 0x8c6   : > { %s6107_s13 = scalar_lea.sflag [#allocation8], %s6106_s24 }
 0x8c7   : > { %p6362_p2 = pnand %p6365_p1, %p6655_p6 }
 0x8c9   : > { %6522 = dma.done.wait (!%p6362_p2), %s6107_s13, 16  }
 0x8ca   : > { %6524 = vsyncadd (!%p6362_p2), %s6107_s13, 4294967280  ;;  %p19_p3 = scmp.ge.s32.totalorder %s6638_s15, 4   ;;  %s9017_s30 = smov %s6531_s10 }
 0x8cb   : > { %s9018_s10 = smov %s6535_s11  ;;  %s9019_s11 = smov %s6649_s18 }
 0x8cc   : > { %s9020_s12 = smov %s6638_s15  ;;  %21 = sbr.rel (!%p19_p3) target bundleno = 3 (0x3), region = 95 }
 0x8d3   :  { %6111 = vsyncpa [#allocation8], 1 }
 0x8d4   :  { %6113 = vsyncpa [#allocation8 + $0x1], 1 }

</bundles_post_ra>
